<compile_context>
chip_gen: v7x
topology: tpu7x:2x2x1
jax: 0.10.0
libtpu: 0.0.40
codegen_flags: <defaults>
</compile_context>

<pallas_src>
import functools

import jax
import jax.numpy as jnp
from jax.experimental import pallas as pl
from jax.experimental.pallas import tpu as pltpu

BN_EPS = 1e-5
_LANES = 128


def _round_up(v, m):
    return (v + m - 1) // m * m


def _pick_row_tile(N, H, W, Cpack):
    """Largest row tile whose pass-2 output block stays <= ~2 MiB, preferring
    >= 2 total grid steps so both v7x TensorCores have work."""
    target = 2 * 1024 * 1024
    divs = [d for d in range(1, H + 1) if H % d == 0]
    ok = [d for d in divs if (d == H or (d * W) % 8 == 0)]   # (8,128) store rule
    fits = [d for d in ok if d * W * Cpack * 4 <= target]
    tp = max(fits) if fits else min(ok)
    if N * (H // tp) < 2:                                    # v7x megacore split
        half = [d for d in fits if d <= H // 2]
        if half:
            tp = max(half)
    return tp


def _merge_weight(w, Cout, Cpack):
    """Merged sub-pixel RHS: rows = (dy, dx, cin) of the 3x3 input window,
    lanes = (k = 2r+s, cout), zero-padded to Cpack lanes.

    out[2p+r, 2q+s, cout] = sum_{dy,dx,cin} xpad[p+dy, q+dx, cin]
                                            * w[cin, cout, 3+r-2dy, 3+s-2dx]
    with nonzero taps only when r <= dy <= r+1 and s <= dx <= s+1.
    """
    Cin = w.shape[0]
    zeros = jnp.zeros((Cin, Cout), w.dtype)
    rows = []
    for dy in range(3):
        for dx in range(3):
            cols = []
            for r in (0, 1):
                for s in (0, 1):
                    if r <= dy <= r + 1 and s <= dx <= s + 1:
                        cols.append(w[:, :, 3 + r - 2 * dy, 3 + s - 2 * dx])
                    else:
                        cols.append(zeros)
            rows.append(jnp.concatenate(cols, axis=1))       # (Cin, 4*Cout)
    wm = jnp.concatenate(rows, axis=0)                       # (9*Cin, 4*Cout)
    return jnp.pad(wm, ((0, 0), (0, Cpack - 4 * Cout)))


# -----------------------------------------------------------------------------------
# Shared per-tile compute: ReLU -> single 3x3 im2col -> ONE merged MXU matmul
# -----------------------------------------------------------------------------------
def _convt_tile(x_ref, w_ref, *, tp, W, Cin, mm_dtype):
    # x_ref: (1, H+2, W+2, Cin) whole zero-padded NHWC image (re-used across row groups)
    row0 = pl.program_id(1) * tp
    xa = jnp.maximum(x_ref[0, pl.ds(row0, tp + 2), :, :], 0.0)      # ReLU, (tp+2, W+2, Cin)
    slabs = [xa[dy:dy + tp, dx:dx + W, :] for dy in range(3) for dx in range(3)]
    patch = jnp.concatenate(slabs, axis=-1)                         # (tp, W, 9*Cin)
    patch = patch.reshape(tp * W, 9 * Cin).astype(mm_dtype)
    return jnp.dot(patch, w_ref[...], preferred_element_type=jnp.float32)  # (M, Cpack)


# Pass 1: per-tile BN partial statistics only (no big intermediate written to HBM)
def _convt_stats_kernel(x_ref, w_ref, stats_ref, *, tp, W, Cin, mm_dtype):
    y = _convt_tile(x_ref, w_ref, tp=tp, W=W, Cin=Cin, mm_dtype=mm_dtype)
    stats_ref[0, 0, 0:1, :] = jnp.sum(y, axis=0, keepdims=True)
    stats_ref[0, 0, 1:2, :] = jnp.sum(y * y, axis=0, keepdims=True)


# Pass 2: recompute the cheap conv + fused BN apply, single lane-dense output write
def _convt_bn_kernel(x_ref, w_ref, scale_ref, shift_ref, o_ref, *, tp, W, Cin, mm_dtype):
    y = _convt_tile(x_ref, w_ref, tp=tp, W=W, Cin=Cin, mm_dtype=mm_dtype)
    o_ref[0] = y * scale_ref[...] + shift_ref[...]


@functools.partial(jax.jit, static_argnames=("row_tile", "mm_dtype"))
def upsample_forward(x, w, b, gamma, beta, *, row_tile=None, mm_dtype=None):
    """ReLU -> ConvTranspose2d(k=4, s=2, p=1) -> BatchNorm2d (training batch stats).

    x: (N, Cin, H, W) f32; w: (Cin, Cout, 4, 4) PyTorch ConvTranspose2d layout;
    b/gamma/beta: (Cout,).  Returns NCHW (N, Cout, 2H, 2W) f32.
    """
    del b  # conv bias is cancelled exactly by training-mode BN mean subtraction
    # TODO(synk): BatchNorm2d running_mean/running_var buffer updates (stateful side
    #             effects) are not produced; forward matches PyTorch training mode.
    # TODO(synk): nn.Dropout(0.5) branch (drop_out=True) not implemented (default Identity).
    N, Cin, H, W = x.shape
    Cout = w.shape[1]
    Cpack = _round_up(4 * Cout, _LANES)     # all 4 sub-pixel groups packed into lanes
    K = 9 * Cin

    if mm_dtype is None:
        # tiny K -> matmul is issue/latency bound; bf16 buys nothing and adds casts (v5e)
        mm_dtype = jnp.float32 if K < 128 else jnp.bfloat16

    if row_tile is None:
        row_tile = _pick_row_tile(N, H, W, Cpack)
    tp = row_tile
    assert H % tp == 0, "row_tile must divide H"
    G = H // tp
    M = tp * W

    # Input-sized glue only (the 4x-larger output never takes an extra XLA trip here).
    xp = jnp.pad(jnp.transpose(x, (0, 2, 3, 1)), ((0, 0), (1, 1), (1, 1), (0, 0)))
    wm = _merge_weight(w, Cout, Cpack).astype(mm_dtype)

    x_spec = pl.BlockSpec((1, H + 2, W + 2, Cin), lambda n, g: (n, 0, 0, 0))
    w_spec = pl.BlockSpec((K, Cpack), lambda n, g: (0, 0))       # VMEM-resident weight
    cparams = pltpu.CompilerParams(
        dimension_semantics=("parallel", "parallel"),            # megacore on v7x
        vmem_limit_bytes=48 * 1024 * 1024,   # headroom under v7x 64 MiB/TC; fine on v5e/v6e
    )

    # --- pass 1: per-tile partial BN stats (tiny output) ------------------------------
    stats = pl.pallas_call(
        functools.partial(_convt_stats_kernel, tp=tp, W=W, Cin=Cin, mm_dtype=mm_dtype),
        out_shape=jax.ShapeDtypeStruct((N, G, 2, Cpack), jnp.float32),
        grid=(N, G),
        in_specs=[x_spec, w_spec],
        out_specs=pl.BlockSpec((1, 1, 2, Cpack), lambda n, g: (n, g, 0, 0)),
        compiler_params=cparams,
    )(xp, wm)

    # --- tiny cross-tile combine (count = N * 2H * 2W) ---------------------------------
    tot = jnp.sum(stats, axis=(0, 1))[:, :4 * Cout].reshape(2, 4, Cout).sum(axis=1)
    count = jnp.float32(N * 4 * H * W)
    mean = tot[0] / count
    var = jnp.maximum(tot[1] / count - mean * mean, 0.0)
    # TODO(synk): E[y^2]-mean^2 can cancel for very large counts; switch to a Welford /
    #             pairwise combine across tiles if that regime is ever hit.
    inv_std = jax.lax.rsqrt(var + BN_EPS)
    scale_c = gamma * inv_std
    shift_c = beta - mean * scale_c
    scale_p = jnp.pad(jnp.tile(scale_c, 4), (0, Cpack - 4 * Cout)).reshape(1, Cpack)
    shift_p = jnp.pad(jnp.tile(shift_c, 4), (0, Cpack - 4 * Cout)).reshape(1, Cpack)

    # --- pass 2: recompute conv + BN apply, single lane-dense write --------------------
    out_flat = pl.pallas_call(
        functools.partial(_convt_bn_kernel, tp=tp, W=W, Cin=Cin, mm_dtype=mm_dtype),
        out_shape=jax.ShapeDtypeStruct((N, G * M, Cpack), jnp.float32),
        grid=(N, G),
        in_specs=[x_spec, w_spec,
                  pl.BlockSpec((1, Cpack), lambda n, g: (0, 0)),
                  pl.BlockSpec((1, Cpack), lambda n, g: (0, 0))],
        out_specs=pl.BlockSpec((1, M, Cpack), lambda n, g: (n, g, 0)),
        compiler_params=cparams,
    )(xp, wm, scale_p, shift_p)

    # --- final layout: (N, H*W rows, (k=2r+s, c) lanes) -> NCHW -------------------------
    # TODO(synk): this one exact-size XLA transpose could be folded into pass 2 via an
    #             in-kernel channel-major relayout / strided stores; kept in XLA for
    #             lowering robustness across generations.
    out = out_flat[..., :4 * Cout].reshape(N, G, tp, W, 2, 2, Cout)
    out = jnp.transpose(out, (0, 6, 1, 2, 4, 3, 5))   # (N, Cout, G, tp, r, W, s)
    return out.reshape(N, Cout, 2 * H, 2 * W)


# -----------------------------------------------------------------------------------
# Pure-JAX reference (exactly mirrors the PyTorch module forward, training mode)
# -----------------------------------------------------------------------------------
def _reference(x, w, b, gamma, beta):
    a = jnp.maximum(x, 0.0)                                        # ReLU
    # ConvTranspose2d(k=4, s=2, p=1) == lhs-dilated conv with channel-swapped, flipped kernel
    w_oihw = jnp.transpose(w, (1, 0, 2, 3))[:, :, ::-1, ::-1]
    y = jax.lax.conv_general_dilated(
        a, w_oihw, window_strides=(1, 1), padding=((2, 2), (2, 2)),
        lhs_dilation=(2, 2), dimension_numbers=("NCHW", "OIHW", "NCHW"))
    y = y + b[None, :, None, None]
    mean = jnp.mean(y, axis=(0, 2, 3), keepdims=True)
    var = jnp.mean((y - mean) ** 2, axis=(0, 2, 3), keepdims=True)
    y_hat = (y - mean) * jax.lax.rsqrt(var + BN_EPS)
    return gamma[None, :, None, None] * y_hat + beta[None, :, None, None]


if __name__ == "__main__":
    key = jax.random.PRNGKey(0)
    k_x, k_w, k_b, k_g, k_be = jax.random.split(key, 5)

    N, Cin, H, W = 2, 4, 16, 16
    Cout = 8

    x = jax.random.normal(k_x, (N, Cin, H, W), dtype=jnp.float32)
    # ConvTranspose2d weight layout: (in_channels, out_channels, kH, kW)
    w = 0.05 * jax.random.normal(k_w, (Cin, Cout, 4, 4), dtype=jnp.float32)
    b = 0.01 * jax.random.normal(k_b, (Cout,), dtype=jnp.float32)
    gamma = 1.0 + 0.1 * jax.random.normal(k_g, (Cout,), dtype=jnp.float32)
    beta = 0.1 * jax.random.normal(k_be, (Cout,), dtype=jnp.float32)

    ref = _reference(x, w, b, gamma, beta)

    # default path (auto-gated to f32 MXU at this tiny contraction depth)
    out = jax.block_until_ready(upsample_forward(x, w, b, gamma, beta))
    assert out.shape == (N, Cout, 2 * H, 2 * W), out.shape
    assert jnp.allclose(out, ref, atol=1e-3, rtol=1e-3), float(jnp.max(jnp.abs(out - ref)))

    # explicit bf16 MXU operands (f32 accumulation), loose tolerance
    out_bf16 = jax.block_until_ready(
        upsample_forward(x, w, b, gamma, beta, mm_dtype=jnp.bfloat16))
    assert jnp.allclose(out_bf16, ref, atol=5e-2, rtol=5e-2), \
        float(jnp.max(jnp.abs(out_bf16 - ref)))

    print("KERNEL_OK")
</pallas_src>

<mosaic_0001>
module attributes {stable_mosaic.version = 11 : i64} {
  func.func @_convt_stats_kernel(%arg0: i32, %arg1: i32, %arg2: memref<1x18x18x4xf32, #tpu.memory_space<vmem>>, %arg3: memref<36x128xf32, #tpu.memory_space<vmem>>, %arg4: memref<1x1x2x128xf32, #tpu.memory_space<vmem>>) attributes {dimension_semantics = [#tpu.dimension_semantics<parallel>, #tpu.dimension_semantics<parallel>], iteration_bounds = array<i64: 2, 1>, scalar_prefetch = 0 : i64, scratch_operands = 0 : i64, tpu.core_type = #tpu.core_type<tc>, window_params = [{transform_indices = @transform_0, window_bounds = array<i64: 1, 18, 18, 4>}, {pipeline_mode = #tpu.pipeline_mode<synchronous>, transform_indices = @transform_1, window_bounds = array<i64: 36, 128>}, {transform_indices = @transform_2, window_bounds = array<i64: 1, 1, 2, 128>}]} {
    %c16_i32 = arith.constant 16 : i32
    %0 = arith.muli %arg1, %c16_i32 : i32
    %c0 = arith.constant 0 : index
    %1 = arith.index_cast %0 : i32 to index
    %c0_0 = arith.constant 0 : index
    %c0_1 = arith.constant 0 : index
    %2 = vector.load %arg2[%c0, %1, %c0_0, %c0_1] : memref<1x18x18x4xf32, #tpu.memory_space<vmem>>, vector<1x18x18x4xf32>
    %3 = vector.shape_cast %2 : vector<1x18x18x4xf32> to vector<18x18x4xf32>
    %cst = arith.constant 0.000000e+00 : f32
    %4 = vector.broadcast %cst : f32 to vector<18x18x4xf32>
    %5 = arith.maximumf %3, %4 : vector<18x18x4xf32>
    %6 = vector.extract_strided_slice %5 {offsets = [0, 0, 0], sizes = [16, 16, 4], strides = [1, 1, 1]} : vector<18x18x4xf32> to vector<16x16x4xf32>
    %7 = vector.extract_strided_slice %5 {offsets = [0, 1, 0], sizes = [16, 16, 4], strides = [1, 1, 1]} : vector<18x18x4xf32> to vector<16x16x4xf32>
    %8 = vector.extract_strided_slice %5 {offsets = [0, 2, 0], sizes = [16, 16, 4], strides = [1, 1, 1]} : vector<18x18x4xf32> to vector<16x16x4xf32>
    %9 = vector.extract_strided_slice %5 {offsets = [1, 0, 0], sizes = [16, 16, 4], strides = [1, 1, 1]} : vector<18x18x4xf32> to vector<16x16x4xf32>
    %10 = vector.extract_strided_slice %5 {offsets = [1, 1, 0], sizes = [16, 16, 4], strides = [1, 1, 1]} : vector<18x18x4xf32> to vector<16x16x4xf32>
    %11 = vector.extract_strided_slice %5 {offsets = [1, 2, 0], sizes = [16, 16, 4], strides = [1, 1, 1]} : vector<18x18x4xf32> to vector<16x16x4xf32>
    %12 = vector.extract_strided_slice %5 {offsets = [2, 0, 0], sizes = [16, 16, 4], strides = [1, 1, 1]} : vector<18x18x4xf32> to vector<16x16x4xf32>
    %13 = vector.extract_strided_slice %5 {offsets = [2, 1, 0], sizes = [16, 16, 4], strides = [1, 1, 1]} : vector<18x18x4xf32> to vector<16x16x4xf32>
    %14 = vector.extract_strided_slice %5 {offsets = [2, 2, 0], sizes = [16, 16, 4], strides = [1, 1, 1]} : vector<18x18x4xf32> to vector<16x16x4xf32>
    %15 = tpu.concatenate %6, %7, %8, %9, %10, %11, %12, %13, %14 in 2 : vector<16x16x4xf32>, vector<16x16x4xf32>, vector<16x16x4xf32>, vector<16x16x4xf32>, vector<16x16x4xf32>, vector<16x16x4xf32>, vector<16x16x4xf32>, vector<16x16x4xf32>, vector<16x16x4xf32> -> vector<16x16x36xf32>
    %16 = vector.shape_cast %15 : vector<16x16x36xf32> to vector<256x36xf32>
    %c0_2 = arith.constant 0 : index
    %c0_3 = arith.constant 0 : index
    %17 = vector.load %arg3[%c0_2, %c0_3] : memref<36x128xf32, #tpu.memory_space<vmem>>, vector<36x128xf32>
    %cst_4 = arith.constant dense<0.000000e+00> : vector<256x128xf32>
    %18 = tpu.matmul %16, %17, %cst_4 {dimension_numbers = #tpu.dot_dimension_numbers<[1], [0], [0], [1], [0, 0, 1, 1], [], []>} : vector<256x36xf32>, vector<36x128xf32>, vector<256x128xf32> -> vector<256x128xf32>
    %cst_5 = arith.constant dense<0.000000e+00> : vector<128xf32>
    %19 = vector.multi_reduction <add>, %18, %cst_5 [0] : vector<256x128xf32> to vector<128xf32>
    %20 = vector.shape_cast %19 : vector<128xf32> to vector<1x128xf32>
    %c0_6 = arith.constant 0 : index
    %c0_7 = arith.constant 0 : index
    %c0_8 = arith.constant 0 : index
    %c0_9 = arith.constant 0 : index
    %21 = vector.load %arg4[%c0_6, %c0_7, %c0_8, %c0_9] : memref<1x1x2x128xf32, #tpu.memory_space<vmem>>, vector<1x1x1x128xf32>
    %22 = vector.shape_cast %21 : vector<1x1x1x128xf32> to vector<1x128xf32>
    %23 = vector.shape_cast %20 : vector<1x128xf32> to vector<1x1x1x128xf32>
    tpu.vector_store %arg4[%c0_6, %c0_7, %c0_8, %c0_9], %23 {strides = array<i32>} : memref<1x1x2x128xf32, #tpu.memory_space<vmem>>, vector<1x1x1x128xf32>,
    %24 = arith.mulf %18, %18 : vector<256x128xf32>
    %cst_10 = arith.constant dense<0.000000e+00> : vector<128xf32>
    %25 = vector.multi_reduction <add>, %24, %cst_10 [0] : vector<256x128xf32> to vector<128xf32>
    %26 = vector.shape_cast %25 : vector<128xf32> to vector<1x128xf32>
    %c0_11 = arith.constant 0 : index
    %c0_12 = arith.constant 0 : index
    %c1 = arith.constant 1 : index
    %c0_13 = arith.constant 0 : index
    %27 = vector.load %arg4[%c0_11, %c0_12, %c1, %c0_13] : memref<1x1x2x128xf32, #tpu.memory_space<vmem>>, vector<1x1x1x128xf32>
    %28 = vector.shape_cast %27 : vector<1x1x1x128xf32> to vector<1x128xf32>
    %29 = vector.shape_cast %26 : vector<1x128xf32> to vector<1x1x1x128xf32>
    tpu.vector_store %arg4[%c0_11, %c0_12, %c1, %c0_13], %29 {strides = array<i32>} : memref<1x1x2x128xf32, #tpu.memory_space<vmem>>, vector<1x1x1x128xf32>,
    return
  }
  func.func @transform_0(%arg0: i32, %arg1: i32) -> (i32, i32, i32, i32) {
    %c0_i32 = arith.constant 0 : i32
    %c0_i32_0 = arith.constant 0 : i32
    %c0_i32_1 = arith.constant 0 : i32
    %c0_i32_2 = arith.constant 0 : i32
    return %arg0, %c0_i32, %c0_i32_0, %c0_i32_1 : i32, i32, i32, i32
  }
  func.func @transform_1(%arg0: i32, %arg1: i32) -> (i32, i32) {
    %c0_i32 = arith.constant 0 : i32
    %c0_i32_0 = arith.constant 0 : i32
    %c0_i32_1 = arith.constant 0 : i32
    return %c0_i32, %c0_i32_0 : i32, i32
  }
  func.func @transform_2(%arg0: i32, %arg1: i32) -> (i32, i32, i32, i32) {
    %c0_i32 = arith.constant 0 : i32
    %c0_i32_0 = arith.constant 0 : i32
    %c0_i32_1 = arith.constant 0 : i32
    return %arg0, %arg1, %c0_i32, %c0_i32_0 : i32, i32, i32, i32
  }
}

module attributes {stable_mosaic.version = 11 : i64} {
  func.func @_convt_bn_kernel(%arg0: i32, %arg1: i32, %arg2: memref<1x18x18x4xf32, #tpu.memory_space<vmem>>, %arg3: memref<36x128xf32, #tpu.memory_space<vmem>>, %arg4: memref<1x128xf32, #tpu.memory_space<vmem>>, %arg5: memref<1x128xf32, #tpu.memory_space<vmem>>, %arg6: memref<1x256x128xf32, #tpu.memory_space<vmem>>) attributes {dimension_semantics = [#tpu.dimension_semantics<parallel>, #tpu.dimension_semantics<parallel>], iteration_bounds = array<i64: 2, 1>, scalar_prefetch = 0 : i64, scratch_operands = 0 : i64, tpu.core_type = #tpu.core_type<tc>, window_params = [{transform_indices = @transform_0, window_bounds = array<i64: 1, 18, 18, 4>}, {pipeline_mode = #tpu.pipeline_mode<synchronous>, transform_indices = @transform_1, window_bounds = array<i64: 36, 128>}, {pipeline_mode = #tpu.pipeline_mode<synchronous>, transform_indices = @transform_2, window_bounds = array<i64: 1, 128>}, {pipeline_mode = #tpu.pipeline_mode<synchronous>, transform_indices = @transform_3, window_bounds = array<i64: 1, 128>}, {transform_indices = @transform_4, window_bounds = array<i64: 1, 256, 128>}]} {
    %c16_i32 = arith.constant 16 : i32
    %0 = arith.muli %arg1, %c16_i32 : i32
    %c0 = arith.constant 0 : index
    %1 = arith.index_cast %0 : i32 to index
    %c0_0 = arith.constant 0 : index
    %c0_1 = arith.constant 0 : index
    %2 = vector.load %arg2[%c0, %1, %c0_0, %c0_1] : memref<1x18x18x4xf32, #tpu.memory_space<vmem>>, vector<1x18x18x4xf32>
    %3 = vector.shape_cast %2 : vector<1x18x18x4xf32> to vector<18x18x4xf32>
    %cst = arith.constant 0.000000e+00 : f32
    %4 = vector.broadcast %cst : f32 to vector<18x18x4xf32>
    %5 = arith.maximumf %3, %4 : vector<18x18x4xf32>
    %6 = vector.extract_strided_slice %5 {offsets = [0, 0, 0], sizes = [16, 16, 4], strides = [1, 1, 1]} : vector<18x18x4xf32> to vector<16x16x4xf32>
    %7 = vector.extract_strided_slice %5 {offsets = [0, 1, 0], sizes = [16, 16, 4], strides = [1, 1, 1]} : vector<18x18x4xf32> to vector<16x16x4xf32>
    %8 = vector.extract_strided_slice %5 {offsets = [0, 2, 0], sizes = [16, 16, 4], strides = [1, 1, 1]} : vector<18x18x4xf32> to vector<16x16x4xf32>
    %9 = vector.extract_strided_slice %5 {offsets = [1, 0, 0], sizes = [16, 16, 4], strides = [1, 1, 1]} : vector<18x18x4xf32> to vector<16x16x4xf32>
    %10 = vector.extract_strided_slice %5 {offsets = [1, 1, 0], sizes = [16, 16, 4], strides = [1, 1, 1]} : vector<18x18x4xf32> to vector<16x16x4xf32>
    %11 = vector.extract_strided_slice %5 {offsets = [1, 2, 0], sizes = [16, 16, 4], strides = [1, 1, 1]} : vector<18x18x4xf32> to vector<16x16x4xf32>
    %12 = vector.extract_strided_slice %5 {offsets = [2, 0, 0], sizes = [16, 16, 4], strides = [1, 1, 1]} : vector<18x18x4xf32> to vector<16x16x4xf32>
    %13 = vector.extract_strided_slice %5 {offsets = [2, 1, 0], sizes = [16, 16, 4], strides = [1, 1, 1]} : vector<18x18x4xf32> to vector<16x16x4xf32>
    %14 = vector.extract_strided_slice %5 {offsets = [2, 2, 0], sizes = [16, 16, 4], strides = [1, 1, 1]} : vector<18x18x4xf32> to vector<16x16x4xf32>
    %15 = tpu.concatenate %6, %7, %8, %9, %10, %11, %12, %13, %14 in 2 : vector<16x16x4xf32>, vector<16x16x4xf32>, vector<16x16x4xf32>, vector<16x16x4xf32>, vector<16x16x4xf32>, vector<16x16x4xf32>, vector<16x16x4xf32>, vector<16x16x4xf32>, vector<16x16x4xf32> -> vector<16x16x36xf32>
    %16 = vector.shape_cast %15 : vector<16x16x36xf32> to vector<256x36xf32>
    %c0_2 = arith.constant 0 : index
    %c0_3 = arith.constant 0 : index
    %17 = vector.load %arg3[%c0_2, %c0_3] : memref<36x128xf32, #tpu.memory_space<vmem>>, vector<36x128xf32>
    %cst_4 = arith.constant dense<0.000000e+00> : vector<256x128xf32>
    %18 = tpu.matmul %16, %17, %cst_4 {dimension_numbers = #tpu.dot_dimension_numbers<[1], [0], [0], [1], [0, 0, 1, 1], [], []>} : vector<256x36xf32>, vector<36x128xf32>, vector<256x128xf32> -> vector<256x128xf32>
    %c0_5 = arith.constant 0 : index
    %c0_6 = arith.constant 0 : index
    %19 = vector.load %arg4[%c0_5, %c0_6] : memref<1x128xf32, #tpu.memory_space<vmem>>, vector<1x128xf32>
    %20 = vector.broadcast %19 : vector<1x128xf32> to vector<256x128xf32>
    %21 = arith.mulf %18, %20 : vector<256x128xf32>
    %c0_7 = arith.constant 0 : index
    %c0_8 = arith.constant 0 : index
    %22 = vector.load %arg5[%c0_7, %c0_8] : memref<1x128xf32, #tpu.memory_space<vmem>>, vector<1x128xf32>
    %23 = vector.broadcast %22 : vector<1x128xf32> to vector<256x128xf32>
    %24 = arith.addf %21, %23 : vector<256x128xf32>
    %c0_9 = arith.constant 0 : index
    %c0_10 = arith.constant 0 : index
    %c0_11 = arith.constant 0 : index
    %25 = vector.load %arg6[%c0_9, %c0_10, %c0_11] : memref<1x256x128xf32, #tpu.memory_space<vmem>>, vector<1x256x128xf32>
    %26 = vector.shape_cast %25 : vector<1x256x128xf32> to vector<256x128xf32>
    %27 = vector.shape_cast %24 : vector<256x128xf32> to vector<1x256x128xf32>
    tpu.vector_store %arg6[%c0_9, %c0_10, %c0_11], %27 {strides = array<i32>} : memref<1x256x128xf32, #tpu.memory_space<vmem>>, vector<1x256x128xf32>,
    return
  }
  func.func @transform_0(%arg0: i32, %arg1: i32) -> (i32, i32, i32, i32) {
    %c0_i32 = arith.constant 0 : i32
    %c0_i32_0 = arith.constant 0 : i32
    %c0_i32_1 = arith.constant 0 : i32
    %c0_i32_2 = arith.constant 0 : i32
    return %arg0, %c0_i32, %c0_i32_0, %c0_i32_1 : i32, i32, i32, i32
  }
  func.func @transform_1(%arg0: i32, %arg1: i32) -> (i32, i32) {
    %c0_i32 = arith.constant 0 : i32
    %c0_i32_0 = arith.constant 0 : i32
    %c0_i32_1 = arith.constant 0 : i32
    return %c0_i32, %c0_i32_0 : i32, i32
  }
  func.func @transform_2(%arg0: i32, %arg1: i32) -> (i32, i32) {
    %c0_i32 = arith.constant 0 : i32
    %c0_i32_0 = arith.constant 0 : i32
    %c0_i32_1 = arith.constant 0 : i32
    return %c0_i32, %c0_i32_0 : i32, i32
  }
  func.func @transform_3(%arg0: i32, %arg1: i32) -> (i32, i32) {
    %c0_i32 = arith.constant 0 : i32
    %c0_i32_0 = arith.constant 0 : i32
    %c0_i32_1 = arith.constant 0 : i32
    return %c0_i32, %c0_i32_0 : i32, i32
  }
  func.func @transform_4(%arg0: i32, %arg1: i32) -> (i32, i32, i32) {
    %c0_i32 = arith.constant 0 : i32
    %c0_i32_0 = arith.constant 0 : i32
    return %arg0, %arg1, %c0_i32 : i32, i32, i32
  }
}

</mosaic_0001>

<bundles_post_ra>
// kernel: tile.18
= control target key start
LH: loop header
LB: loop body
LE: loop exit
PB: predicated region body
PF: predicated region fallthrough
CT: control target
= control target key end

     0   :  { %s22_s0 = inlined_call_operand.vmem [shape: f32[8], index: 0, kind: input, shape index: {}]   ;;  %s23_s1 = inlined_call_operand.vmem [shape: f32[4,8], index: 1, kind: output, shape index: {}]  }
   0x1   :  { %v4_v0 = vld [vmem:[%s22_s0] ss:$0 sm:$0xff] }
   0x2   :  { %5 = vst [vmem:[%s23_s1] sm:$0xf] %v4_v0 }

// kernel: tile.19
= control target key start
LH: loop header
LB: loop body
LE: loop exit
PB: predicated region body
PF: predicated region fallthrough
CT: control target
= control target key end

     0   :  { %vm7_vm0 = vcmask 64512   ;;  %s37_s8 = smov 8   ;;  %s38_s9 = smov 16   ;;  %vm13_vm1 = vcmask 261312   ;;  %vm19_vm2 = vcmask 195712   ;;  %vm25_vm3 = vcmask 130112   ;;  %s55_s0 = inlined_call_operand.vmem [shape: f32[4,8], index: 0, kind: input, shape index: {}]   ;;  %s56_s1 = inlined_call_operand.vmem [shape: f32[32], index: 1, kind: output, shape index: {}]  }
   0x1   :  { %v4_v0 = vld [vmem:[%s55_s0] sm:$0xf]  ;;  %s36_s0 = smov 24  }
   0x2   :  { %5 = vst [vmem:[#allocation1] sm:$0xf] %v4_v0 }
   0x9   :  { %v10_v1 = vld [vmem:[#allocation1 + $0x3] sm:$0x1]   ;;  %v22_v2 = vld [vmem:[#allocation1 + $0x1] sm:$0x1]   ;;  %v6_v3 = vld [vmem:[#allocation1] sm:$0x1]  }
   0xa   :  { %11 = vrot.lane.b32.xlu0 %v10_v1, %s36_s0  ;;  %23 = vrot.lane.b32.xlu1 %v22_v2, %s37_s8  ;;  %v16_v4 = vld [vmem:[#allocation1 + $0x2] sm:$0x1]   ;;  %8 = vst.msk [vmem:[#allocation0] sm:$0x1] %vm7_vm0, %v6_v3  }
   0xe   :  { %17 = vrot.lane.b32.xlu0 %v16_v4, %s38_s9 }
  0x7c   :  { %v12_v5 = vpop.permute.xlu0 %11   ;;  %v24_v6 = vpop.permute.xlu1 %23  }
  0x7d   :  { %14 = vst.msk [vmem:[#allocation0] sm:$0x1] %vm13_vm1, %v12_v5  }
  0x80   :  { %v18_v7 = vpop.permute.xlu0 %17  }
  0x81   :  { %20 = vst.msk [vmem:[#allocation0] sm:$0x1] %vm19_vm2, %v18_v7  }
  0x82   :  { %26 = vst.msk [vmem:[#allocation0] sm:$0x1] %vm25_vm3, %v24_v6  }
  0x89   :  { %v30_v8 = vld [vmem:[#allocation0] sm:$0x1] }
  0x8a   :  { %32 = vst [vmem:[%s56_s1] sm:$0x1] %v30_v8 }

// kernel: upsample_forward.2
= control target key start
LH: loop header
LB: loop body
LE: loop exit
PB: predicated region body
PF: predicated region fallthrough
CT: control target
= control target key end

     0   :  { %s2284_s9 = smov 0   ;;  %s2286_s10 = smov 0   ;;  %s3877_s0 = inlined_call_operand.vmem [shape: f32[2,18,18,4], index: 0, kind: input, shape index: {}]   ;;  %s3878_s1 = inlined_call_operand.vmem [shape: f32[36,128], index: 1, kind: input, shape index: {}]   ;;  %s3879_s2 = inlined_call_operand.vmem [shape: f32[2,1,2,128], index: 2, kind: output, shape index: {}]  }
   0x1   :  { %s2288_s11 = smov 0  }
   0x2 LB: > { %s24_s12 = sadd.s32 1, %s2255_s10  ;;  %p2057_p0 = scmp.ge.s32.totalorder %s2259_s11, 1  ;;  %s2259_s11 = sphi %s2288_s11, %s12_s11   ;;  %s2255_s10 = sphi %s2286_s10, %s4173_s10   ;;  %s2251_s9 = sphi %s2284_s9, %s4172_s9  }
   0x3   : > { %p26_p1 = scmp.ge.s32.totalorder %s24_s12, 2  ;;  %p126_p2 = scmp.lt.s32.totalorder %s2259_s11, 3 }
   0x5   : > { %s4175_s12 = smov (%p26_p1, %s24_s12), 0  ;;  %p127_p3 = pnand %p2057_p0, %p126_p2 }
   0x7   : > { %130 = sbr.rel (%p127_p3) target bundleno = 884 (0x374), region = 28 }
   0xe   : > { %p150_p4 = scmp.lt.s32.totalorder %s2251_s9, 1  ;;  %vm321_vm0 = vcmask 1046528   ;;  %s2261_s17 = smov 4   ;;  %vm498_vm1 = vcmask 1045504   ;;  %vm1643_vm2 = vcmask 1043456   ;;  %vm1277_vm3 = vcmask 31744  }
   0xf   : > { %s2262_s18 = smov 8   ;;  %s2263_s19 = smov 12   ;;  %vm1310_vm4 = vcmask 64512   ;;  %vm1343_vm5 = vcmask 97280   ;;  %vm1376_vm6 = vcmask 130048   ;;  %vm1409_vm7 = vcmask 162816  }
  0x10   : > { %s4177_s9 = smov (!%p150_p4, %s2251_s9), 1  ;;  %s2264_s20 = smov 16   ;;  %vm1442_vm8 = vcmask 195584   ;;  %vm1475_vm9 = vcmask 228352   ;;  %vm1508_vm10 = vcmask 261120   ;;  %vm1546_vm11 = vcmask 293888  }
  0x11   : > { %s2204_s13 = smul.u32 432, %s4177_s9  ;;  %s2265_s25 = smov 20  }
  0x12   : > { %s2266_s30 = smov 24   ;;  %s2267_s5 = smov 28  }
  0x13   : > { %s2308_s16 = scalar_lea.vmem %s3877_s0, %s2204_s13  ;;  %s2268_s6 = smov 32  }
  0x14   : > { %v168_v0 = vld [vmem:[%s2308_s16 + $0x18] sm:$0xff]  ;;  %v169_v1 = vld [vmem:[%s2308_s16 + $0x20] sm:$0xff]  ;;  %v166_v5 = vld [vmem:[%s2308_s16 + $0x8] sm:$0xff]  ;;  %s2059_s7 = sshll.u32 %s4177_s9, 1 }
  0x15   : > { %v165_v2 = vld [vmem:[%s2308_s16] sm:$0xff]  ;;  %v2313_v3 = vmax.f32 %v168_v0, 0.0  ;;  %v2315_v4 = vmax.f32 %v169_v1, 0.0  ;;  %v2321_v7 = vld [vmem:[%s2308_s16 + $0x28] sm:$0x3]  ;;  %v2323_v8 = vmax.f32 %v166_v5, 0.0  ;;  %s161_s14 = scalar_lea.vmem %s3879_s2, %s2059_s7 }
  0x16   : > { %v2318_v6 = vmax.f32 %v165_v2, 0.0  ;;  %v3888_v9 = vmax.f32 %v2321_v7, 0.0  ;;  %v2327_v10 = vld [vmem:[%s2308_s16 + $0x10] sm:$0x3]  ;;  %v172_v11 = vld [vmem:[%s2308_s16 + $0x38] sm:$0xff]  ;;  %v174_v27 = vld [vmem:[%s2308_s16 + $0x48] sm:$0xff] }
  0x17   : > { %3994 = vst [vmem:[#allocation2_spill] sm:$0xff] %v2313_v3  ;;  %3995 = vst [vmem:[#allocation3_spill] sm:$0xff] %v2315_v4  ;;  %v171_v12 = vld [vmem:[%s2308_s16 + $0x30] sm:$0xff]  ;;  %v327_v13 = vrot.slane %v2313_v3, 1  ;;  %v328_v14 = vrot.slane %v2315_v4, 1  ;;  %v3889_v16 = vmax.f32 %v2327_v10, 0.0 }
  0x18   : > { %3996 = vst [vmem:[#allocation4_spill] sm:$0xff] %v2318_v6  ;;  %3997 = vst [vmem:[#allocation5_spill] sm:$0xff] %v2323_v8  ;;  %v322_v15 = vrot.slane %v2318_v6, 1  ;;  %v2336_v17 = vld [vmem:[%s2308_s16 + $0x40] sm:$0x3]  ;;  %v323_v18 = vrot.slane %v2323_v8, 1 }
  0x19   : > { %v330_v19 = vrot.slane %v3888_v9, 1  ;;  %v2341_v20 = vmax.f32 %v172_v11, 0.0  ;;  %v3887_v21 = vmax.f32 %v2336_v17, 0.0  ;;  %v175_v22 = vld [vmem:[%s2308_s16 + $0x50] sm:$0xff]  ;;  %v2346_v23 = vsel %vm321_vm0, %v327_v13, %v328_v14  ;;  %v2353_v26 = vld [vmem:[%s2308_s16 + $0x58] sm:$0x3] }
  0x1a   : > { %v325_v24 = vrot.slane %v3889_v16, 1  ;;  %v2350_v25 = vmax.f32 %v171_v12, 0.0  ;;  %406 = vrot.lane.b32.xlu1 %v2346_v23, %s2261_s17  ;;  %v324_v28 = vsel %vm321_vm0, %v322_v15, %v323_v18  ;;  %v2359_v29 = vmax.f32 %v175_v22, 0.0  ;;  %v178_v37 = vld [vmem:[%s2308_s16 + $0x68] sm:$0xff]  ;;  %v2375_v38 = vld [vmem:[%s2308_s16 + $0x70] sm:$0x3] }
  0x1b   : > { %3998 = vst [vmem:[#allocation6_spill] sm:$0xff] %v2341_v20  ;;  %402 = vrot.lane.b32.xlu0 %v324_v28, %s2261_s17  ;;  %v2363_v30 = vsel %vm321_vm0, %v328_v14, %v330_v19  ;;  %v333_v31 = vrot.slane %v2341_v20, 1  ;;  %v335_v32 = vrot.slane %v3887_v21, 1  ;;  %v3886_v33 = vmax.f32 %v2353_v26, 0.0  ;;  %v177_v39 = vld [vmem:[%s2308_s16 + $0x60] sm:$0xff]  ;;  %v180_v50 = vld [vmem:[%s2308_s16 + $0x78] sm:$0xff] }
  0x1c   : > { %3999 = vst [vmem:[#allocation7_spill] sm:$0xff] %v2350_v25  ;;  %4000 = vst [vmem:[#allocation8_spill] sm:$0xff] %v2359_v29  ;;  %v326_v34 = vsel %vm321_vm0, %v323_v18, %v325_v24  ;;  %v332_v35 = vrot.slane %v2350_v25, 1  ;;  %v2371_v36 = vmax.f32 %v174_v27, 0.0  ;;  %v338_v40 = vrot.slane %v2359_v29, 1  ;;  %v181_v45 = vld [vmem:[%s2308_s16 + $0x80] sm:$0xff] }
  0x1d   : > { %v2383_v41 = vsel %vm321_vm0, %v333_v31, %v335_v32  ;;  %v340_v42 = vrot.slane %v3886_v33, 1  ;;  %v2387_v43 = vmax.f32 %v178_v37, 0.0  ;;  %v3884_v44 = vmax.f32 %v2375_v38, 0.0  ;;  %v2398_v49 = vld [vmem:[%s2308_s16 + $0x88] sm:$0x3]  ;;  %v184_v59 = vld [vmem:[%s2308_s16 + $0x98] sm:$0xff] }
  0x1e   : > { %4001 = vst [vmem:[#allocation9_spill] sm:$0xff] %v2371_v36  ;;  %408 = vrot.lane.b32.xlu1 %v2363_v30, %s2261_s17  ;;  %4002 = vst [vmem:[#allocation10_spill] sm:$0xff] %v2383_v41  ;;  %v2392_v46 = vsel %vm321_vm0, %v332_v35, %v333_v31  ;;  %v337_v47 = vrot.slane %v2371_v36, 1  ;;  %v2395_v48 = vmax.f32 %v177_v39, 0.0  ;;  %v2403_v51 = vmax.f32 %v181_v45, 0.0  ;;  %v183_v61 = vld [vmem:[%s2308_s16 + $0x90] sm:$0xff] }
  0x1f   : > { %404 = vrot.lane.b32.xlu0 %v326_v34, %s2261_s17  ;;  %v2408_v52 = vsel %vm321_vm0, %v338_v40, %v340_v42  ;;  %v343_v53 = vrot.slane %v2387_v43, 1  ;;  %v345_v54 = vrot.slane %v3884_v44, 1  ;;  %v3883_v55 = vmax.f32 %v2398_v49, 0.0  ;;  %v2422_v60 = vld [vmem:[%s2308_s16 + $0xa0] sm:$0x3]  ;;  %v187_v5 = vld [vmem:[%s2308_s16 + $0xb0] sm:$0xff] }
  0x20   : > { %4003 = vst [vmem:[#allocation11_spill] sm:$0xff] %v2408_v52  ;;  %v2415_v56 = vsel %vm321_vm0, %v337_v47, %v338_v40  ;;  %v342_v57 = vrot.slane %v2395_v48, 1  ;;  %v2418_v58 = vmax.f32 %v180_v50, 0.0  ;;  %v348_v62 = vrot.slane %v2403_v51, 1  ;;  %v2440_v11 = vld [vmem:[%s2308_s16 + $0xb8] sm:$0x3] }
  0x21   : > { %4004 = vst [vmem:[#allocation12_spill] sm:$0xff] %v2415_v56  ;;  %v2431_v63 = vsel %vm321_vm0, %v343_v53, %v345_v54  ;;  %v350_v0 = vrot.slane %v3883_v55, 1  ;;  %v2435_v1 = vmax.f32 %v184_v59, 0.0  ;;  %v3882_v2 = vmax.f32 %v2422_v60, 0.0  ;;  %v186_v15 = vld [vmem:[%s2308_s16 + $0xa8] sm:$0xff]  ;;  %v189_v37 = vld [vmem:[%s2308_s16 + $0xc0] sm:$0xff] }
  0x22   : > { %412 = vrot.lane.b32.xlu1 %v2383_v41, %s2261_s17  ;;  %4005 = vst [vmem:[#allocation13_spill] sm:$0xff] %v2431_v63  ;;  %v2443_v12 = vsel %vm321_vm0, %v342_v57, %v343_v53  ;;  %v347_v13 = vrot.slane %v2418_v58, 1  ;;  %v2446_v14 = vmax.f32 %v183_v61, 0.0  ;;  %v2451_v18 = vmax.f32 %v187_v5, 0.0  ;;  %v190_v34 = vld [vmem:[%s2308_s16 + $0xc8] sm:$0xff]  ;;  %v193_v57 = vld [vmem:[%s2308_s16 + $0xe0] sm:$0xff] }
  0x23   : > { %410 = vrot.lane.b32.xlu0 %v2392_v46, %s2261_s17  ;;  %4006 = vst [vmem:[#allocation14_spill] sm:$0xff] %v2443_v12  ;;  %v3881_v19 = vmax.f32 %v2440_v11, 0.0  ;;  %v2457_v22 = vsel %vm321_vm0, %v348_v62, %v350_v0  ;;  %v353_v24 = vrot.slane %v2435_v1, 1  ;;  %v355_v27 = vrot.slane %v3882_v2, 1  ;;  %v2470_v35 = vld [vmem:[%s2308_s16 + $0xd0] sm:$0x3] }
  0x24   : > { %4007 = vst [vmem:[#allocation15_spill] sm:$0xff] %v2457_v22  ;;  %v2463_v28 = vsel %vm321_vm0, %v347_v13, %v348_v62  ;;  %v352_v31 = vrot.slane %v2446_v14, 1  ;;  %v2466_v32 = vmax.f32 %v186_v15, 0.0  ;;  %v358_v39 = vrot.slane %v2451_v18, 1  ;;  %v2494_v59 = vld [vmem:[%s2308_s16 + $0xe8] sm:$0x3] }
  0x25   : > { %4008 = vst [vmem:[#allocation16_spill] sm:$0xff] %v2463_v28  ;;  %v360_v40 = vrot.slane %v3881_v19, 1  ;;  %v2481_v42 = vsel %vm321_vm0, %v353_v24, %v355_v27  ;;  %v2483_v45 = vmax.f32 %v190_v34, 0.0  ;;  %v3880_v47 = vmax.f32 %v2470_v35, 0.0  ;;  %v192_v61 = vld [vmem:[%s2308_s16 + $0xd8] sm:$0xff]  ;;  %v199_v55 = vld [vmem:[%s2308_s16 + $0x110] sm:$0xff] }
  0x26   : > { %416 = vrot.lane.b32.xlu1 %v2408_v52, %s2261_s17  ;;  %4009 = vst [vmem:[#allocation17_spill] sm:$0xff] %v2481_v42  ;;  %v2487_v50 = vsel %vm321_vm0, %v352_v31, %v353_v24  ;;  %v357_v53 = vrot.slane %v2466_v32, 1  ;;  %v2490_v54 = vmax.f32 %v189_v37, 0.0  ;;  %v196_v0 = vld [vmem:[%s2308_s16 + $0xf8] sm:$0xff]  ;;  %v2508_v15 = vmax.f32 %v193_v57, 0.0  ;;  %v211_v52 = vld [vmem:[%s2308_s16 + $0x170] sm:$0xff] }
  0x27   : > { %414 = vrot.lane.b32.xlu0 %v2415_v56, %s2261_s17  ;;  %4010 = vst [vmem:[#allocation18_spill] sm:$0xff] %v2487_v50  ;;  %v2500_v62 = vsel %vm321_vm0, %v358_v39, %v360_v40  ;;  %v363_v5 = vrot.slane %v2483_v45, 1  ;;  %v365_v13 = vrot.slane %v3880_v47, 1  ;;  %v3885_v24 = vmax.f32 %v2494_v59, 0.0  ;;  %v2512_v27 = vld [vmem:[%s2308_s16 + $0x100] sm:$0x3] }
  0x28   : > { %4011 = vst [vmem:[#allocation19_spill] sm:$0xff] %v2500_v62  ;;  %v2515_v31 = vsel %vm321_vm0, %v357_v53, %v358_v39  ;;  %v362_v34 = vrot.slane %v2490_v54, 1  ;;  %v2518_v37 = vmax.f32 %v192_v61, 0.0  ;;  %v195_v40 = vld [vmem:[%s2308_s16 + $0xf0] sm:$0xff]  ;;  %v2523_v57 = vmax.f32 %v196_v0, 0.0 }
  0x29   : > { %4012 = vst [vmem:[#allocation20_spill] sm:$0xff] %v2515_v31  ;;  %v3890_v47 = vmax.f32 %v2512_v27, 0.0  ;;  %v2529_v19 = vsel %vm321_vm0, %v363_v5, %v365_v13  ;;  %v368_v39 = vrot.slane %v2508_v15, 1  ;;  %v370_v53 = vrot.slane %v3885_v24, 1  ;;  %v2542_v44 = vld [vmem:[%s2308_s16 + $0x118] sm:$0x3] }
  0x2a   : > { %420 = vrot.lane.b32.xlu1 %v2431_v63, %s2261_s17  ;;  %4013 = vst [vmem:[#allocation21_spill] sm:$0xff] %v2529_v19  ;;  %v2535_v61 = vsel %vm321_vm0, %v362_v34, %v363_v5  ;;  %v367_v0 = vrot.slane %v2518_v37, 1  ;;  %v2538_v2 = vmax.f32 %v195_v40, 0.0  ;;  %v198_v13 = vld [vmem:[%s2308_s16 + $0x108] sm:$0xff]  ;;  %v373_v24 = vrot.slane %v2523_v57, 1 }
  0x2b   : > { %418 = vrot.lane.b32.xlu0 %v2443_v12, %s2261_s17  ;;  %4014 = vst [vmem:[#allocation22_spill] sm:$0xff] %v2535_v61  ;;  %v375_v5 = vrot.slane %v3890_v47, 1  ;;  %v2553_v34 = vsel %vm321_vm0, %v368_v39, %v370_v53  ;;  %v2555_v40 = vmax.f32 %v199_v55, 0.0  ;;  %v3905_v33 = vmax.f32 %v2542_v44, 0.0  ;;  %v202_v47 = vld [vmem:[%s2308_s16 + $0x128] sm:$0xff]  ;;  %v205_v53 = vld [vmem:[%s2308_s16 + $0x140] sm:$0xff] }
  0x2c   : > { %4015 = vst [vmem:[#allocation23_spill] sm:$0xff] %v2553_v34  ;;  %v2559_v21 = vsel %vm321_vm0, %v367_v0, %v368_v39  ;;  %v372_v9 = vrot.slane %v2538_v2, 1  ;;  %v2562_v16 = vmax.f32 %v198_v13, 0.0  ;;  %v2580_v13 = vmax.f32 %v202_v47, 0.0  ;;  %v2638_v56 = vld [vmem:[%s2308_s16 + $0x178] sm:$0x3] }
  0x2d   : > { %4016 = vst [vmem:[#allocation24_spill] sm:$0xff] %v2559_v21  ;;  %v2572_v55 = vsel %vm321_vm0, %v373_v24, %v375_v5  ;;  %v378_v39 = vrot.slane %v2555_v40, 1  ;;  %v380_v0 = vrot.slane %v3905_v33, 1  ;;  %v2595_v47 = vmax.f32 %v205_v53, 0.0  ;;  %v208_v33 = vld [vmem:[%s2308_s16 + $0x158] sm:$0xff] }
  0x2e   : > { %424 = vrot.lane.b32.xlu1 %v2457_v22, %s2261_s17  ;;  %4017 = vst [vmem:[#allocation25_spill] sm:$0xff] %v2572_v55  ;;  %v2587_v5 = vsel %vm321_vm0, %v372_v9, %v373_v24  ;;  %v383_v9 = vrot.slane %v2580_v13, 1 }
  0x2f   : > { %422 = vrot.lane.b32.xlu0 %v2463_v28, %s2261_s17  ;;  %4018 = vst [vmem:[#allocation26_spill] sm:$0xff] %v2587_v5  ;;  %v388_v22 = vrot.slane %v2595_v47, 1 }
  0x32   : > { %428 = vrot.lane.b32.xlu1 %v2481_v42, %s2261_s17  ;;  %v204_v42 = vld [vmem:[%s2308_s16 + $0x138] sm:$0xff] }
  0x33   : > { %426 = vrot.lane.b32.xlu0 %v2487_v50, %s2261_s17 }
  0x36   : > { %432 = vrot.lane.b32.xlu1 %v2500_v62, %s2261_s17  ;;  %v2601_v62 = vsel %vm321_vm0, %v378_v39, %v380_v0  ;;  %v207_v0 = vld [vmem:[%s2308_s16 + $0x150] sm:$0xff] }
  0x37   : > { %430 = vrot.lane.b32.xlu0 %v2515_v31, %s2261_s17  ;;  %v2584_v31 = vld [vmem:[%s2308_s16 + $0x148] sm:$0x3]  ;;  %4019 = vst [vmem:[#allocation27_spill] sm:$0xff] %v2601_v62  ;;  %v2634_v12 = vmax.f32 %v207_v0, 0.0  ;;  %v3937_v0 = vmax.f32 %v2638_v56, 0.0 }
  0x3a   : > { %436 = vrot.lane.b32.xlu1 %v2529_v19, %s2261_s17  ;;  %v2566_v19 = vld [vmem:[%s2308_s16 + $0x130] sm:$0x3] }
  0x3b   : > { %434 = vrot.lane.b32.xlu0 %v2535_v61, %s2261_s17  ;;  %v201_v61 = vld [vmem:[%s2308_s16 + $0x120] sm:$0xff]  ;;  %v4020_v24 = vmax.f32 %v2566_v19, 0.0 }
  0x3e   : > { %440 = vrot.lane.b32.xlu1 %v2553_v34, %s2261_s17  ;;  %v377_v34 = vrot.slane %v2562_v16, 1 }
  0x3f   : > { %438 = vrot.lane.b32.xlu0 %v2559_v21, %s2261_s17  ;;  %v2590_v21 = vmax.f32 %v201_v61, 0.0  ;;  %v385_v61 = vrot.slane %v4020_v24, 1  ;;  %v4022_v24 = vmax.f32 %v2584_v31, 0.0 }
  0x40   : > { %v2607_v50 = vsel %vm321_vm0, %v377_v34, %v378_v39 }
  0x41   : > { %4021 = vst [vmem:[#allocation28_spill] sm:$0xff] %v2607_v50  ;;  %v382_v53 = vrot.slane %v2590_v21, 1  ;;  %v390_v34 = vrot.slane %v4022_v24, 1  ;;  %v2625_v39 = vsel %vm321_vm0, %v383_v9, %v385_v61  ;;  %v210_v24 = vld [vmem:[%s2308_s16 + $0x168] sm:$0xff] }
  0x42   : > { %444 = vrot.lane.b32.xlu1 %v2572_v55, %s2261_s17  ;;  %v2610_v55 = vmax.f32 %v204_v42, 0.0  ;;  %4023 = vst [vmem:[#allocation29_spill] sm:$0xff] %v2625_v39  ;;  %v2627_v42 = vmax.f32 %v208_v33, 0.0  ;;  %v2658_v41 = vmax.f32 %v210_v24, 0.0 }
  0x43   : > { %442 = vrot.lane.b32.xlu0 %v2587_v5, %s2261_s17  ;;  %v2614_v5 = vld [vmem:[%s2308_s16 + $0x160] sm:$0x3]  ;;  %v2631_v63 = vsel %vm321_vm0, %v382_v53, %v383_v9  ;;  %v2644_v61 = vsel %vm321_vm0, %v388_v22, %v390_v34  ;;  %v2651_v53 = vmax.f32 %v211_v52, 0.0 }
  0x44   : > { %v3932_v28 = vmax.f32 %v2614_v5, 0.0  ;;  %4024 = vst [vmem:[#allocation30_spill] sm:$0xff] %v2631_v63  ;;  %4025 = vst [vmem:[#allocation31_spill] sm:$0xff] %v2644_v61  ;;  %v393_v33 = vrot.slane %v2627_v42, 1 }
  0x45   : > { %v398_v52 = vrot.slane %v2651_v53, 1 }
  0x46   : > { %448 = vrot.lane.b32.xlu1 %v2601_v62, %s2261_s17  ;;  %v387_v62 = vrot.slane %v2610_v55, 1  ;;  %v395_v9 = vrot.slane %v3932_v28, 1  ;;  %v400_v28 = vrot.slane %v3937_v0, 1 }
  0x47   : > { %446 = vrot.lane.b32.xlu0 %v2607_v50, %s2261_s17 }
  0x48   : > { %v2655_v50 = vsel %vm321_vm0, %v387_v62, %v388_v22  ;;  %v2665_v34 = vsel %vm321_vm0, %v393_v33, %v395_v9  ;;  %v397_v62 = vrot.slane %v2658_v41, 1  ;;  %v2679_v24 = vsel %vm321_vm0, %v398_v52, %v400_v28 }
  0x49   : > { %4026 = vst [vmem:[#allocation32_spill] sm:$0xff] %v2655_v50  ;;  %4027 = vst [vmem:[#allocation33_spill] sm:$0xff] %v2665_v34  ;;  %v500_v9 = vrot.slane %v2323_v8, 2  ;;  %v4041_v8 = vmax.f32 %v2470_v35, 0.0 }
  0x4a   : > { %452 = vrot.lane.b32.xlu1 %v2625_v39, %s2261_s17  ;;  %v392_v39 = vrot.slane %v2634_v12, 1  ;;  %4029 = vst [vmem:[#allocation35_spill] sm:$0xff] %v2679_v24  ;;  %v2685_v0 = vsel %vm321_vm0, %v397_v62, %v398_v52  ;;  %v504_v52 = vrot.slane %v2313_v3, 2 }
  0x4b   : > { %450 = vrot.lane.b32.xlu0 %v2631_v63, %s2261_s17  ;;  %4031 = vst [vmem:[#allocation36_spill] sm:$0xff] %v2685_v0  ;;  %v4039_v63 = vmax.f32 %v2440_v11, 0.0  ;;  %v542_v11 = vrot.slane %v4041_v8, 2 }
  0x4c   : > { %v2671_v22 = vsel %vm321_vm0, %v392_v39, %v393_v33  ;;  %v499_v39 = vrot.slane %v2318_v6, 2  ;;  %v505_v33 = vrot.slane %v2315_v4, 2  ;;  %v4044_v6 = vmax.f32 %v2494_v59, 0.0 }
  0x4d   : > { %4028 = vst [vmem:[#allocation34_spill] sm:$0xff] %v2671_v22 }
  0x4e   : > { %456 = vrot.lane.b32.xlu1 %v2644_v61, %s2261_s17  ;;  %v4030_v61 = vmax.f32 %v2327_v10, 0.0  ;;  %v547_v35 = vrot.slane %v4044_v6, 2 }
  0x4f   : > { %454 = vrot.lane.b32.xlu0 %v2655_v50, %s2261_s17 }
  0x50   : > { %v502_v50 = vrot.slane %v4030_v61, 2  ;;  %v501_v61 = vsel %vm498_vm1, %v499_v39, %v500_v9  ;;  %v515_v39 = vrot.slane %v2359_v29, 2 }
  0x52   : > { %460 = vrot.lane.b32.xlu1 %v2665_v34, %s2261_s17  ;;  %v503_v28 = vsel %vm498_vm1, %v500_v9, %v502_v50  ;;  %v4032_v34 = vmax.f32 %v2321_v7, 0.0  ;;  %v4033_v50 = vmax.f32 %v2336_v17, 0.0  ;;  %v2707_v7 = vsel %vm498_vm1, %v504_v52, %v505_v33 }
  0x53   : > { %458 = vrot.lane.b32.xlu0 %v2671_v22, %s2261_s17  ;;  %v4035_v52 = vmax.f32 %v2375_v38, 0.0  ;;  %v4037_v22 = vmax.f32 %v2422_v60, 0.0  ;;  %v537_v60 = vrot.slane %v4039_v63, 2 }
  0x54   : > { %v507_v10 = vrot.slane %v4032_v34, 2  ;;  %v509_v34 = vrot.slane %v2350_v25, 2 }
  0x56   : > { %464 = vrot.lane.b32.xlu1 %v2679_v24, %s2261_s17  ;;  %v2701_v62 = vsel %vm498_vm1, %v505_v33, %v507_v10  ;;  %v510_v24 = vrot.slane %v2341_v20, 2  ;;  %v514_v33 = vrot.slane %v2371_v36, 2 }
  0x57   : > { %462 = vrot.lane.b32.xlu0 %v2685_v0, %s2261_s17  ;;  %v512_v0 = vrot.slane %v4033_v50, 2 }
  0x58   : > { %v2721_v10 = vsel %vm498_vm1, %v509_v34, %v510_v24  ;;  %v2735_v50 = vsel %vm498_vm1, %v514_v33, %v515_v39 }
  0x59   : > { %v2715_v9 = vsel %vm498_vm1, %v510_v24, %v512_v0  ;;  %v520_v0 = vrot.slane %v2387_v43, 2  ;;  %v519_v24 = vrot.slane %v2395_v48, 2 }
  0x5a   : > { %581 = vrot.lane.b32.xlu1 %v503_v28, %s2262_s18  ;;  %v4034_v28 = vmax.f32 %v2353_v26, 0.0  ;;  %v522_v26 = vrot.slane %v4035_v52, 2 }
  0x5b   : > { %579 = vrot.lane.b32.xlu0 %v501_v61, %s2262_s18  ;;  %v2749_v52 = vsel %vm498_vm1, %v519_v24, %v520_v0 }
  0x5c   : > { %v517_v17 = vrot.slane %v4034_v28, 2  ;;  %v2743_v34 = vsel %vm498_vm1, %v520_v0, %v522_v26  ;;  %v525_v28 = vrot.slane %v2403_v51, 2  ;;  %v530_v26 = vrot.slane %v2435_v1, 2 }
  0x5d   : > { %v529_v0 = vrot.slane %v2446_v14, 2 }
  0x5e   : > { %585 = vrot.lane.b32.xlu1 %v2701_v62, %s2262_s18  ;;  %v2729_v61 = vsel %vm498_vm1, %v515_v39, %v517_v17  ;;  %v4036_v17 = vmax.f32 %v2398_v49, 0.0  ;;  %v524_v39 = vrot.slane %v2418_v58, 2  ;;  %v532_v49 = vrot.slane %v4037_v22, 2 }
  0x5f   : > { %583 = vrot.lane.b32.xlu0 %v2707_v7, %s2262_s18  ;;  %v2777_v22 = vsel %vm498_vm1, %v529_v0, %v530_v26 }
  0x60   : > { %v527_v38 = vrot.slane %v4036_v17, 2  ;;  %v2763_v17 = vsel %vm498_vm1, %v524_v39, %v525_v28  ;;  %v2771_v24 = vsel %vm498_vm1, %v530_v26, %v532_v49  ;;  %v540_v49 = vrot.slane %v2483_v45, 2 }
  0x61   : > { %4038 = vst [vmem:[#allocation37_spill] sm:$0xff] %v2771_v24  ;;  %v539_v26 = vrot.slane %v2490_v54, 2 }
  0x62   : > { %589 = vrot.lane.b32.xlu1 %v2715_v9, %s2262_s18  ;;  %v2757_v33 = vsel %vm498_vm1, %v525_v28, %v527_v38  ;;  %v535_v38 = vrot.slane %v2451_v18, 2  ;;  %v534_v28 = vrot.slane %v2466_v32, 2  ;;  %v2799_v0 = vsel %vm498_vm1, %v540_v49, %v542_v11 }
  0x63   : > { %587 = vrot.lane.b32.xlu0 %v2721_v10, %s2262_s18  ;;  %4043 = vst [vmem:[#allocation40_spill] sm:$0xff] %v2799_v0  ;;  %v2805_v8 = vsel %vm498_vm1, %v539_v26, %v540_v49  ;;  %v550_v11 = vrot.slane %v2523_v57, 2  ;;  %v549_v49 = vrot.slane %v2538_v2, 2 }
  0x64   : > { %v2785_v39 = vsel %vm498_vm1, %v535_v38, %v537_v60  ;;  %v2791_v63 = vsel %vm498_vm1, %v534_v28, %v535_v38  ;;  %v545_v60 = vrot.slane %v2508_v15, 2  ;;  %4045 = vst [vmem:[#allocation41_spill] sm:$0xff] %v2805_v8  ;;  %v544_v38 = vrot.slane %v2518_v37, 2 }
  0x65   : > { %4040 = vst [vmem:[#allocation38_spill] sm:$0xff] %v2785_v39  ;;  %4042 = vst [vmem:[#allocation39_spill] sm:$0xff] %v2791_v63 }
  0x66   : > { %593 = vrot.lane.b32.xlu1 %v2729_v61, %s2262_s18  ;;  %v2813_v28 = vsel %vm498_vm1, %v545_v60, %v547_v35  ;;  %v2819_v6 = vsel %vm498_vm1, %v544_v38, %v545_v60  ;;  %v555_v35 = vrot.slane %v2555_v40, 2  ;;  %v554_v60 = vrot.slane %v2562_v16, 2 }
  0x67   : > { %591 = vrot.lane.b32.xlu0 %v2735_v50, %s2262_s18  ;;  %4046 = vst [vmem:[#allocation42_spill] sm:$0xff] %v2813_v28  ;;  %4048 = vst [vmem:[#allocation43_spill] sm:$0xff] %v2819_v6 }
  0x6a   : > { %597 = vrot.lane.b32.xlu1 %v2743_v34, %s2262_s18 }
  0x6b   : > { %595 = vrot.lane.b32.xlu0 %v2749_v52, %s2262_s18 }
  0x6e   : > { %601 = vrot.lane.b32.xlu1 %v2757_v33, %s2262_s18 }
  0x6f   : > { %599 = vrot.lane.b32.xlu0 %v2763_v17, %s2262_s18 }
  0x72   : > { %605 = vrot.lane.b32.xlu1 %v2771_v24, %s2262_s18 }
  0x73   : > { %603 = vrot.lane.b32.xlu0 %v2777_v22, %s2262_s18 }
  0x76   : > { %609 = vrot.lane.b32.xlu1 %v2785_v39, %s2262_s18  ;;  %v4047_v39 = vmax.f32 %v2512_v27, 0.0 }
  0x77   : > { %607 = vrot.lane.b32.xlu0 %v2791_v63, %s2262_s18 }
  0x78   : > { %v552_v59 = vrot.slane %v4047_v39, 2  ;;  %v2833_v39 = vsel %vm498_vm1, %v549_v49, %v550_v11 }
  0x79   : > { %4051 = vst [vmem:[#allocation45_spill] sm:$0xff] %v2833_v39 }
  0x7a   : > { %613 = vrot.lane.b32.xlu1 %v2799_v0, %s2262_s18  ;;  %v2827_v26 = vsel %vm498_vm1, %v550_v11, %v552_v59  ;;  %v4050_v0 = vmax.f32 %v2542_v44, 0.0  ;;  %v560_v59 = vrot.slane %v2580_v13, 2  ;;  %v559_v11 = vrot.slane %v2590_v21, 2 }
  0x7b   : > { %611 = vrot.lane.b32.xlu0 %v2805_v8, %s2262_s18  ;;  %4049 = vst [vmem:[#allocation44_spill] sm:$0xff] %v2827_v26 }
  0x7c   : > { %v557_v27 = vrot.slane %v4050_v0, 2  ;;  %v2847_v0 = vsel %vm498_vm1, %v554_v60, %v555_v35 }
  0x7d   : > { %4054 = vst [vmem:[#allocation47_spill] sm:$0xff] %v2847_v0 }
  0x7e   : > { %617 = vrot.lane.b32.xlu1 %v2813_v28, %s2262_s18  ;;  %v2841_v38 = vsel %vm498_vm1, %v555_v35, %v557_v27  ;;  %v4053_v28 = vmax.f32 %v2566_v19, 0.0  ;;  %v565_v27 = vrot.slane %v2595_v47, 2  ;;  %v564_v35 = vrot.slane %v2610_v55, 2 }
  0x7f   : > { %615 = vrot.lane.b32.xlu0 %v2819_v6, %s2262_s18  ;;  %4052 = vst [vmem:[#allocation46_spill] sm:$0xff] %v2841_v38 }
  0x80   : > { %v562_v44 = vrot.slane %v4053_v28, 2  ;;  %v2861_v28 = vsel %vm498_vm1, %v559_v11, %v560_v59  ;;  %v569_v11 = vrot.slane %v2634_v12, 2 }
  0x81   : > { %4057 = vst [vmem:[#allocation49_spill] sm:$0xff] %v2861_v28 }
  0x82   : > { %621 = vrot.lane.b32.xlu1 %v2827_v26, %s2262_s18  ;;  %v2855_v49 = vsel %vm498_vm1, %v560_v59, %v562_v44  ;;  %v4056_v26 = vmax.f32 %v2584_v31, 0.0  ;;  %v570_v44 = vrot.slane %v2627_v42, 2  ;;  %v2877_v59 = vsel %vm498_vm1, %v564_v35, %v565_v27 }
  0x83   : > { %619 = vrot.lane.b32.xlu0 %v2833_v39, %s2262_s18  ;;  %4055 = vst [vmem:[#allocation48_spill] sm:$0xff] %v2855_v49  ;;  %4061 = vst [vmem:[#allocation52_spill] sm:$0xff] %v2877_v59 }
  0x84   : > { %v567_v19 = vrot.slane %v4056_v26, 2  ;;  %v2895_v35 = vsel %vm498_vm1, %v569_v11, %v570_v44 }
  0x85   : > { %4066 = vst [vmem:[#allocation56_spill] sm:$0xff] %v2895_v35 }
  0x86   : > { %625 = vrot.lane.b32.xlu1 %v2841_v38, %s2262_s18  ;;  %v2869_v60 = vsel %vm498_vm1, %v565_v27, %v567_v19  ;;  %v4059_v38 = vmax.f32 %v2614_v5, 0.0  ;;  %v575_v5 = vrot.slane %v2651_v53, 2 }
  0x87   : > { %623 = vrot.lane.b32.xlu0 %v2847_v0, %s2262_s18  ;;  %4058 = vst [vmem:[#allocation50_spill] sm:$0xff] %v2869_v60 }
  0x88   : > { %v572_v31 = vrot.slane %v4059_v38, 2  ;;  %v4064_v38 = vmax.f32 %v2638_v56, 0.0 }
  0x8a   : > { %629 = vrot.lane.b32.xlu1 %v2855_v49, %s2262_s18  ;;  %v2887_v19 = vsel %vm498_vm1, %v570_v44, %v572_v31  ;;  %v577_v49 = vrot.slane %v4064_v38, 2 }
  0x8b   : > { %627 = vrot.lane.b32.xlu0 %v2861_v28, %s2262_s18  ;;  %4063 = vst [vmem:[#allocation54_spill] sm:$0xff] %v2887_v19  ;;  %v574_v28 = vrot.slane %v2658_v41, 2 }
  0x8c   : > { %v2874_v26 = vpop.permute.xlu1 %406  ;;  %v2905_v31 = vsel %vm498_vm1, %v575_v5, %v577_v49 }
  0x8d   : > { %4060 = vst [vmem:[#allocation51_spill] sm:$0xff] %v2874_v26  ;;  %v2880_v0 = vpop.permute.xlu0 %402  ;;  %4068 = vst [vmem:[#allocation58_spill] sm:$0xff] %v2905_v31  ;;  %v2910_v38 = vsel %vm498_vm1, %v574_v28, %v575_v5 }
  0x8e   : > { %4062 = vst [vmem:[#allocation53_spill] sm:$0xff] %v2880_v0  ;;  %633 = vrot.lane.b32.xlu1 %v2869_v60, %s2262_s18  ;;  %4070 = vst [vmem:[#allocation60_spill] sm:$0xff] %v2910_v38  ;;  %v1544_v0 = vld [vmem:[%s3878_s1 + $0x18] sm:$0xff] }
  0x8f   : > { %631 = vrot.lane.b32.xlu0 %v2877_v59, %s2262_s18 }
  0x90   : > { %v2892_v27 = vpop.permute.xlu1 %408 }
  0x91   : > { %4065 = vst [vmem:[#allocation55_spill] sm:$0xff] %v2892_v27  ;;  %v2898_v39 = vpop.permute.xlu0 %404  ;;  %v1541_v27 = vld [vmem:[%s3878_s1] sm:$0xff] }
  0x92   : > { %4067 = vst [vmem:[#allocation57_spill] sm:$0xff] %v2898_v39  ;;  %637 = vrot.lane.b32.xlu1 %v2887_v19, %s2262_s18 }
  0x93   : > { %635 = vrot.lane.b32.xlu0 %v2895_v35, %s2262_s18 }
  0x94   : > { %v2907_v56 = vpop.permute.xlu1 %412 }
  0x95   : > { %4069 = vst [vmem:[#allocation59_spill] sm:$0xff] %v2907_v56  ;;  %v2912_v44 = vpop.permute.xlu0 %410 }
  0x96   : > { %4071 = vst [vmem:[#allocation61_spill] sm:$0xff] %v2912_v44  ;;  %641 = vrot.lane.b32.xlu1 %v2905_v31, %s2262_s18 }
  0x97   : > { %639 = vrot.lane.b32.xlu0 %v2910_v38, %s2262_s18 }
  0x98   : > { %v2918_v11 = vpop.permute.xlu1 %416 }
  0x99   : > { %4072 = vst [vmem:[#allocation62_spill] sm:$0xff] %v2918_v11  ;;  %v2920_v19 = vpop.permute.xlu0 %414 }
  0x9a   : > { %4073 = vst [vmem:[#allocation63_spill] sm:$0xff] %v2920_v19  ;;  %679 = vrot.lane.b32.xlu1 %v2315_v4, %s2263_s19 }
  0x9b   : > { %677 = vrot.lane.b32.xlu0 %v2313_v3, %s2263_s19  ;;  %v1542_v3 = vld [vmem:[%s3878_s1 + $0x8] sm:$0xff] }
  0x9c   : > { %v2926_v49 = vpop.permute.xlu1 %420  ;;  %v2190_v26 = vpack.c.bf16 %v1542_v3, %v1541_v27 }
  0x9d   : > { %v2928_v28 = vpop.permute.xlu0 %418 }
  0x9e   : > { %683 = vrot.lane.b32.xlu1 %v2341_v20, %s2263_s19  ;;  %2191 = vmatprep.subr.bf16.mxu0 %v2190_v26 }
  0x9f   : > { %681 = vrot.lane.b32.xlu0 %v2350_v25, %s2263_s19  ;;  %2198 = vmatprep.subr.bf16.mxu1 %v2190_v26 }
  0xa0   : > { %v2934_v5 = vpop.permute.xlu1 %424  ;;  %2193 = vmatpush3.bf16.msra.mxu0 %v2190_v26  ;;  %2201 = vmatpush3.bf16.msra.mxu1 %v2190_v26 }
  0xa1   : > { %v2936_v31 = vpop.permute.xlu0 %422 }
  0xa2   : > { %687 = vrot.lane.b32.xlu1 %v2359_v29, %s2263_s19 }
  0xa3   : > { %685 = vrot.lane.b32.xlu0 %v2371_v36, %s2263_s19 }
  0xa4   : > { %v2942_v38 = vpop.permute.xlu1 %428 }
  0xa5   : > { %v2944_v35 = vpop.permute.xlu0 %426 }
  0xa6   : > { %691 = vrot.lane.b32.xlu1 %v2387_v43, %s2263_s19 }
  0xa7   : > { %689 = vrot.lane.b32.xlu0 %v2395_v48, %s2263_s19 }
  0xa8   : > { %v2950_v60 = vpop.permute.xlu1 %432 }
  0xa9   : > { %v2952_v59 = vpop.permute.xlu0 %430 }
  0xaa   : > { %695 = vrot.lane.b32.xlu1 %v2403_v51, %s2263_s19 }
  0xab   : > { %693 = vrot.lane.b32.xlu0 %v2418_v58, %s2263_s19 }
  0xac   : > { %v2958_v11 = vpop.permute.xlu1 %436 }
  0xad   : > { %v2960_v19 = vpop.permute.xlu0 %434 }
  0xae   : > { %699 = vrot.lane.b32.xlu1 %v2435_v1, %s2263_s19 }
  0xaf   : > { %697 = vrot.lane.b32.xlu0 %v2446_v14, %s2263_s19 }
  0xb0   : > { %v2966_v56 = vpop.permute.xlu1 %440 }
  0xb1   : > { %v2968_v44 = vpop.permute.xlu0 %438 }
  0xb2   : > { %703 = vrot.lane.b32.xlu1 %v2451_v18, %s2263_s19 }
  0xb3   : > { %701 = vrot.lane.b32.xlu0 %v2466_v32, %s2263_s19 }
  0xb4   : > { %v2974_v6 = vpop.permute.xlu1 %444 }
  0xb5   : > { %v2976_v4 = vpop.permute.xlu0 %442 }
  0xb6   : > { %779 = vrot.lane.b32.xlu1 %v2346_v23, %s2264_s20  ;;  %v1543_v23 = vld [vmem:[%s3878_s1 + $0x10] sm:$0xff] }
  0xb7   : > { %705 = vrot.lane.b32.xlu0 %v2490_v54, %s2263_s19  ;;  %v2194_v3 = vpack.c.bf16 %v1544_v0, %v1543_v23  ;;  %v4074_v23 = vld [vmem:[#allocation10_spill] sm:$0xff] }
  0xb8   : > { %v2988_v8 = vpop.permute.xlu1 %448 }
  0xb9   : > { %v2990_v39 = vpop.permute.xlu0 %446  ;;  %2195 = vmatprep.subr.bf16.mxu0 %v2194_v3  ;;  %2199 = vmatprep.subr.bf16.mxu1 %v2194_v3 }
  0xba   : > { %880 = vrot.lane.b32.xlu1 %v2707_v7, %s2265_s25  ;;  %2197 = vmatpush3.bf16.msra.mxu0 %v2194_v3 }
  0xbb   : > { %781 = vrot.lane.b32.xlu0 %v2363_v30, %s2264_s20  ;;  %v1545_v30 = vld [vmem:[%s3878_s1 + $0x20] sm:$0xf]  ;;  %2202 = vmatpush3.bf16.msra.mxu1 %v2194_v3 }
  0xbc   : > { %v3002_v27 = vpop.permute.xlu1 %452  ;;  %2140 = vmatprep.subr.msk.mxu0 %vm1643_vm2, %v1545_v30  ;;  %2200 = vmatprep.subr.msk.mxu1 %vm1643_vm2, %v1545_v30 }
  0xbd   : > { %v3004_v63 = vpop.permute.xlu0 %450 }
  0xbe   : > { %978 = vrot.lane.b32.xlu1 %v2350_v25, %s2266_s30  ;;  %2141 = vmatpush3.msk.msra.mxu0 %vm1643_vm2, %v1545_v30 }
  0xbf   : > { %882 = vrot.lane.b32.xlu0 %v2701_v62, %s2265_s25  ;;  %2203 = vmatpush3.msk.msra.mxu1 %vm1643_vm2, %v1545_v30 }
  0xc0   : > { %v3013_v7 = vpop.permute.xlu1 %456 }
  0xc1   : > { %v3015_v0 = vpop.permute.xlu0 %454 }
  0xc2   : > { %1080 = vrot.lane.b32.xlu1 %v2392_v46, %s2267_s5 }
  0xc3   : > { %980 = vrot.lane.b32.xlu0 %v2341_v20, %s2266_s30 }
  0xc4   : > { %v3021_v62 = vpop.permute.xlu1 %460 }
  0xc5   : > { %v3023_v26 = vpop.permute.xlu0 %458 }
  0xc6   : > { %1082 = vrot.lane.b32.xlu1 %v4074_v23, %s2267_s5 }
  0xc7   : > { %783 = vrot.lane.b32.xlu0 %v2392_v46, %s2264_s20 }
  0xc8   : > { %v3029_v3 = vpop.permute.xlu1 %464 }
  0xc9   : > { %v3031_v25 = vpop.permute.xlu0 %462 }
  0xca   : > { %785 = vrot.lane.b32.xlu1 %v4074_v23, %s2264_s20 }
  0xcb   : > { %1181 = vrot.lane.b32.xlu0 %v2721_v10, %s2268_s6 }
  0xcc   : > { %v3037_v30 = vpop.permute.xlu1 %581 }
  0xcd   : > { %4075 = vst [vmem:[#allocation10_spill] sm:$0xff] %v3037_v30  ;;  %v3039_v20 = vpop.permute.xlu0 %579 }
  0xce   : > { %4076 = vst [vmem:[#allocation64_spill] sm:$0xff] %v3039_v20  ;;  %1183 = vrot.lane.b32.xlu1 %v2715_v9, %s2268_s6  ;;  %v4080_v20 = vld [vmem:[#allocation12_spill] sm:$0xff] }
  0xcf   : > { %884 = vrot.lane.b32.xlu0 %v2721_v10, %s2265_s25 }
  0xd0   : > { %v3045_v46 = vpop.permute.xlu1 %585 }
  0xd1   : > { %4077 = vst [vmem:[#allocation65_spill] sm:$0xff] %v3045_v46  ;;  %v3047_v24 = vpop.permute.xlu0 %583 }
  0xd2   : > { %4078 = vst [vmem:[#allocation66_spill] sm:$0xff] %v3047_v24  ;;  %982 = vrot.lane.b32.xlu1 %v2371_v36, %s2266_s30  ;;  %v4083_v24 = vld [vmem:[#allocation11_spill] sm:$0xff] }
  0xd3   : > { %886 = vrot.lane.b32.xlu0 %v2715_v9, %s2265_s25  ;;  %v1287_v9 = vsel %vm1277_vm3, %v2387_v43, %v2926_v49 }
  0xd4   : > { %v3053_v23 = vpop.permute.xlu1 %589 }
  0xd5   : > { %4079 = vst [vmem:[#allocation67_spill] sm:$0xff] %v3053_v23  ;;  %v3055_v30 = vpop.permute.xlu0 %587 }
  0xd6   : > { %1084 = vrot.lane.b32.xlu1 %v4080_v20, %s2267_s5 }
  0xd7   : > { %984 = vrot.lane.b32.xlu0 %v2359_v29, %s2266_s30  ;;  %v1286_v29 = vsel %vm1277_vm3, %v2395_v48, %v2928_v28 }
  0xd8   : > { %v3061_v10 = vpop.permute.xlu1 %593 }
  0xd9   : > { %4081 = vst [vmem:[#allocation12_spill] sm:$0xff] %v3061_v10  ;;  %v3063_v46 = vpop.permute.xlu0 %591 }
  0xda   : > { %4082 = vst [vmem:[#allocation68_spill] sm:$0xff] %v3063_v46  ;;  %1086 = vrot.lane.b32.xlu1 %v4083_v24, %s2267_s5 }
  0xdb   : > { %787 = vrot.lane.b32.xlu0 %v4080_v20, %s2264_s20  ;;  %v1289_v20 = vsel %vm1277_vm3, %v2403_v51, %v2934_v5 }
  0xdc   : > { %v598_v36 = vpop.permute.xlu1 %597 }
  0xdd   : > { %v3076_v10 = vsel %vm1310_vm4, %v1287_v9, %v598_v36  ;;  %v596_v46 = vpop.permute.xlu0 %595  ;;  %v1288_v36 = vsel %vm1277_vm3, %v2418_v58, %v2936_v31  ;;  %v1290_v31 = vsel %vm1277_vm3, %v2446_v14, %v2944_v35  ;;  %v1292_v35 = vsel %vm1277_vm3, %v2466_v32, %v2952_v59 }
  0xde   : > { %v3079_v23 = vsel %vm1310_vm4, %v1286_v29, %v596_v46  ;;  %789 = vrot.lane.b32.xlu1 %v4083_v24, %s2264_s20  ;;  %v1291_v24 = vsel %vm1277_vm3, %v2435_v1, %v2942_v38  ;;  %v1294_v59 = vsel %vm1277_vm3, %v2490_v54, %v2960_v19  ;;  %v1296_v19 = vsel %vm1277_vm3, %v2518_v37, %v2968_v44 }
  0xdf   : > { %1185 = vrot.lane.b32.xlu0 %v2735_v50, %s2268_s6  ;;  %v1298_v44 = vsel %vm1277_vm3, %v2538_v2, %v2976_v4  ;;  %v1300_v4 = vsel %vm1277_vm3, %v2562_v16, %v2990_v39  ;;  %v1302_v39 = vsel %vm1277_vm3, %v2590_v21, %v3004_v63  ;;  %v1304_v63 = vsel %vm1277_vm3, %v2610_v55, %v3015_v0 }
  0xe0   : > { %v602_v49 = vpop.permute.xlu1 %601  ;;  %v1306_v0 = vsel %vm1277_vm3, %v2634_v12, %v3023_v26  ;;  %v1308_v26 = vsel %vm1277_vm3, %v2658_v41, %v3031_v25 }
  0xe1   : > { %v3092_v28 = vsel %vm1310_vm4, %v1289_v20, %v602_v49  ;;  %v600_v29 = vpop.permute.xlu0 %599 }
  0xe2   : > { %v3095_v46 = vsel %vm1310_vm4, %v1288_v36, %v600_v29  ;;  %1187 = vrot.lane.b32.xlu1 %v2729_v61, %s2268_s6 }
  0xe3   : > { %888 = vrot.lane.b32.xlu0 %v2735_v50, %s2265_s25  ;;  %v1293_v50 = vsel %vm1277_vm3, %v2451_v18, %v2950_v60 }
  0xe4   : > { %v606_v5 = vpop.permute.xlu1 %605 }
  0xe5   : > { %v3108_v9 = vsel %vm1310_vm4, %v1291_v24, %v606_v5  ;;  %v604_v20 = vpop.permute.xlu0 %603 }
  0xe6   : > { %v3111_v49 = vsel %vm1310_vm4, %v1290_v31, %v604_v20  ;;  %986 = vrot.lane.b32.xlu1 %v2395_v48, %s2266_s30  ;;  %v4084_v48 = vld [vmem:[#allocation14_spill] sm:$0xff] }
  0xe7   : > { %890 = vrot.lane.b32.xlu0 %v2729_v61, %s2265_s25  ;;  %v1295_v61 = vsel %vm1277_vm3, %v2483_v45, %v2958_v11 }
  0xe8   : > { %v610_v38 = vpop.permute.xlu1 %609 }
  0xe9   : > { %v3124_v36 = vsel %vm1310_vm4, %v1293_v50, %v610_v38  ;;  %v608_v29 = vpop.permute.xlu0 %607  ;;  %v4085_v50 = vld [vmem:[#allocation13_spill] sm:$0xff] }
  0xea   : > { %v3127_v24 = vsel %vm1310_vm4, %v1292_v35, %v608_v29  ;;  %1088 = vrot.lane.b32.xlu1 %v4084_v48, %s2267_s5 }
  0xeb   : > { %988 = vrot.lane.b32.xlu0 %v2387_v43, %s2266_s30  ;;  %v1297_v43 = vsel %vm1277_vm3, %v2508_v15, %v2966_v56  ;;  %v1299_v56 = vsel %vm1277_vm3, %v2523_v57, %v2974_v6  ;;  %v1301_v6 = vsel %vm1277_vm3, %v2555_v40, %v2988_v8 }
  0xec   : > { %v614_v60 = vpop.permute.xlu1 %613 }
  0xed   : > { %v3140_v5 = vsel %vm1310_vm4, %v1295_v61, %v614_v60  ;;  %v612_v31 = vpop.permute.xlu0 %611 }
  0xee   : > { %v3143_v20 = vsel %vm1310_vm4, %v1294_v59, %v612_v31  ;;  %1090 = vrot.lane.b32.xlu1 %v4085_v50, %s2267_s5 }
  0xef   : > { %791 = vrot.lane.b32.xlu0 %v4084_v48, %s2264_s20 }
  0xf0   : > { %v618_v11 = vpop.permute.xlu1 %617 }
  0xf1   : > { %v3156_v38 = vsel %vm1310_vm4, %v1297_v43, %v618_v11  ;;  %v616_v35 = vpop.permute.xlu0 %615 }
  0xf2   : > { %v3159_v29 = vsel %vm1310_vm4, %v1296_v19, %v616_v35  ;;  %793 = vrot.lane.b32.xlu1 %v4085_v50, %s2264_s20 }
  0xf3   : > { %1189 = vrot.lane.b32.xlu0 %v2749_v52, %s2268_s6 }
  0xf4   : > { %v622_v48 = vpop.permute.xlu1 %621 }
  0xf5   : > { %v3172_v61 = vsel %vm1310_vm4, %v1299_v56, %v622_v48  ;;  %v620_v60 = vpop.permute.xlu0 %619 }
  0xf6   : > { %4086 = vst [vmem:[#allocation11_spill] sm:$0xff] %v3172_v61  ;;  %v3175_v59 = vsel %vm1310_vm4, %v1298_v44, %v620_v60  ;;  %1191 = vrot.lane.b32.xlu1 %v2743_v34, %s2268_s6 }
  0xf7   : > { %892 = vrot.lane.b32.xlu0 %v2749_v52, %s2265_s25  ;;  %v1303_v52 = vsel %vm1277_vm3, %v2580_v13, %v3002_v27 }
  0xf8   : > { %v626_v31 = vpop.permute.xlu1 %625 }
  0xf9   : > { %v3188_v50 = vsel %vm1310_vm4, %v1301_v6, %v626_v31  ;;  %v624_v43 = vpop.permute.xlu0 %623  ;;  %v4094_v6 = vld [vmem:[#allocation15_spill] sm:$0xff] }
  0xfa   : > { %4087 = vst [vmem:[#allocation14_spill] sm:$0xff] %v3188_v50  ;;  %v3191_v11 = vsel %vm1310_vm4, %v1300_v4, %v624_v43  ;;  %990 = vrot.lane.b32.xlu1 %v2418_v58, %s2266_s30  ;;  %v4091_v58 = vld [vmem:[#allocation16_spill] sm:$0xff]  ;;  %v4109_v50 = vld [vmem:[#allocation57_spill] sm:$0xff] }
  0xfb   : > { %4088 = vst [vmem:[#allocation13_spill] sm:$0xff] %v3191_v11  ;;  %894 = vrot.lane.b32.xlu0 %v2743_v34, %s2265_s25  ;;  %v1305_v34 = vsel %vm1277_vm3, %v2595_v47, %v3013_v7  ;;  %v4110_v11 = vld [vmem:[#allocation5_spill] sm:$0xff] }
  0xfc   : > { %v630_v8 = vpop.permute.xlu1 %629 }
  0xfd   : > { %v3204_v19 = vsel %vm1310_vm4, %v1303_v52, %v630_v8  ;;  %v628_v35 = vpop.permute.xlu0 %627 }
  0xfe   : > { %4089 = vst [vmem:[#allocation69_spill] sm:$0xff] %v3204_v19  ;;  %v3207_v56 = vsel %vm1310_vm4, %v1302_v39, %v628_v35  ;;  %1092 = vrot.lane.b32.xlu1 %v4091_v58, %s2267_s5 }
  0xff   : > { %4090 = vst [vmem:[#allocation70_spill] sm:$0xff] %v3207_v56  ;;  %992 = vrot.lane.b32.xlu0 %v2403_v51, %s2266_s30  ;;  %v1307_v51 = vsel %vm1277_vm3, %v2627_v42, %v3021_v62  ;;  %v1309_v62 = vsel %vm1277_vm3, %v2651_v53, %v3029_v3 }
 0x100   : > { %v634_v27 = vpop.permute.xlu1 %633 }
 0x101   : > { %v3220_v48 = vsel %vm1310_vm4, %v1305_v34, %v634_v27  ;;  %v632_v44 = vpop.permute.xlu0 %631  ;;  %v4099_v27 = vld [vmem:[#allocation18_spill] sm:$0xff] }
 0x102   : > { %4092 = vst [vmem:[#allocation16_spill] sm:$0xff] %v3220_v48  ;;  %v3223_v60 = vsel %vm1310_vm4, %v1304_v63, %v632_v44  ;;  %1094 = vrot.lane.b32.xlu1 %v4094_v6, %s2267_s5  ;;  %v4100_v44 = vld [vmem:[#allocation17_spill] sm:$0xff]  ;;  %v4108_v48 = vld [vmem:[#allocation64_spill] sm:$0xff] }
 0x103   : > { %4093 = vst [vmem:[#allocation71_spill] sm:$0xff] %v3223_v60  ;;  %795 = vrot.lane.b32.xlu0 %v4091_v58, %s2264_s20 }
 0x104   : > { %v638_v7 = vpop.permute.xlu1 %637 }
 0x105   : > { %v3236_v31 = vsel %vm1310_vm4, %v1307_v51, %v638_v7  ;;  %v636_v4 = vpop.permute.xlu0 %635  ;;  %v4101_v51 = vld [vmem:[#allocation37_spill] sm:$0xff] }
 0x106   : > { %4095 = vst [vmem:[#allocation15_spill] sm:$0xff] %v3236_v31  ;;  %v3239_v43 = vsel %vm1310_vm4, %v1306_v0, %v636_v4  ;;  %797 = vrot.lane.b32.xlu1 %v4094_v6, %s2264_s20 }
 0x107   : > { %4096 = vst [vmem:[#allocation72_spill] sm:$0xff] %v3239_v43  ;;  %1193 = vrot.lane.b32.xlu0 %v2763_v17, %s2268_s6  ;;  %v4107_v43 = vld [vmem:[#allocation4_spill] sm:$0xff] }
 0x108   : > { %v642_v52 = vpop.permute.xlu1 %641 }
 0x109   : > { %v3252_v8 = vsel %vm1310_vm4, %v1309_v62, %v642_v52  ;;  %v640_v39 = vpop.permute.xlu0 %639  ;;  %v4102_v52 = vld [vmem:[#allocation20_spill] sm:$0xff] }
 0x10a   : > { %4097 = vst [vmem:[#allocation73_spill] sm:$0xff] %v3252_v8  ;;  %v3255_v35 = vsel %vm1310_vm4, %v1308_v26, %v640_v39  ;;  %1195 = vrot.lane.b32.xlu1 %v2757_v33, %s2268_s6  ;;  %v4103_v39 = vld [vmem:[#allocation19_spill] sm:$0xff] }
 0x10b   : > { %4098 = vst [vmem:[#allocation74_spill] sm:$0xff] %v3255_v35  ;;  %896 = vrot.lane.b32.xlu0 %v2763_v17, %s2265_s25 }
 0x10c   : > { %v680_v58 = vpop.permute.xlu1 %679 }
 0x10d   : > { %v678_v3 = vpop.permute.xlu0 %677 }
 0x10e   : > { %994 = vrot.lane.b32.xlu1 %v2446_v14, %s2266_s30 }
 0x10f   : > { %898 = vrot.lane.b32.xlu0 %v2757_v33, %s2265_s25 }
 0x110   : > { %v3265_v25 = vpop.permute.xlu1 %683 }
 0x111   : > { %v3267_v34 = vpop.permute.xlu0 %681 }
 0x112   : > { %1096 = vrot.lane.b32.xlu1 %v4099_v27, %s2267_s5 }
 0x113   : > { %996 = vrot.lane.b32.xlu0 %v2435_v1, %s2266_s30 }
 0x114   : > { %v3273_v63 = vpop.permute.xlu1 %687 }
 0x115   : > { %v3275_v17 = vpop.permute.xlu0 %685 }
 0x116   : > { %1098 = vrot.lane.b32.xlu1 %v4100_v44, %s2267_s5 }
 0x117   : > { %799 = vrot.lane.b32.xlu0 %v4099_v27, %s2264_s20 }
 0x118   : > { %v3281_v14 = vpop.permute.xlu1 %691 }
 0x119   : > { %v3283_v33 = vpop.permute.xlu0 %689 }
 0x11a   : > { %801 = vrot.lane.b32.xlu1 %v4100_v44, %s2264_s20  ;;  %v4104_v44 = vld [vmem:[#allocation39_spill] sm:$0xff] }
 0x11b   : > { %1197 = vrot.lane.b32.xlu0 %v2777_v22, %s2268_s6 }
 0x11c   : > { %v3289_v1 = vpop.permute.xlu1 %695 }
 0x11d   : > { %v3291_v6 = vpop.permute.xlu0 %693 }
 0x11e   : > { %1199 = vrot.lane.b32.xlu1 %v4101_v51, %s2268_s6 }
 0x11f   : > { %900 = vrot.lane.b32.xlu0 %v2777_v22, %s2265_s25 }
 0x120   : > { %v3297_v7 = vpop.permute.xlu1 %699 }
 0x121   : > { %v3299_v0 = vpop.permute.xlu0 %697 }
 0x122   : > { %998 = vrot.lane.b32.xlu1 %v2466_v32, %s2266_s30 }
 0x123   : > { %902 = vrot.lane.b32.xlu0 %v4101_v51, %s2265_s25 }
 0x124   : > { %v3305_v4 = vpop.permute.xlu1 %703 }
 0x125   : > { %v3307_v62 = vpop.permute.xlu0 %701 }
 0x126   : > { %1100 = vrot.lane.b32.xlu1 %v4102_v52, %s2267_s5 }
 0x127   : > { %1000 = vrot.lane.b32.xlu0 %v2451_v18, %s2266_s30  ;;  %v4105_v18 = vld [vmem:[#allocation38_spill] sm:$0xff] }
 0x128   : > { %v780_v22 = vpop.permute.xlu1 %779 }
 0x129   : > { %v3313_v26 = vpop.permute.xlu0 %705 }
 0x12a   : > { %1102 = vrot.lane.b32.xlu1 %v4103_v39, %s2267_s5 }
 0x12b   : > { %803 = vrot.lane.b32.xlu0 %v4102_v52, %s2264_s20  ;;  %v4106_v52 = vld [vmem:[#allocation53_spill] sm:$0xff] }
 0x12c   : > { %v881_v32 = vpop.permute.xlu1 %880 }
 0x12d   : > { %v782_v27 = vpop.permute.xlu0 %781 }
 0x12e   : > { %805 = vrot.lane.b32.xlu1 %v4103_v39, %s2264_s20  ;;  %v1278_v39 = vsel %vm1277_vm3, %v4107_v43, %v4106_v52  ;;  %v4111_v43 = vld [vmem:[#allocation22_spill] sm:$0xff] }
 0x12f   : > { %1201 = vrot.lane.b32.xlu0 %v4104_v44, %s2268_s6  ;;  %v1311_v60 = vsel %vm1310_vm4, %v1278_v39, %v4108_v48 }
 0x130   : > { %v979_v51 = vpop.permute.xlu1 %978 }
 0x131   : > { %v883_v35 = vpop.permute.xlu0 %882 }
 0x132   : > { %1203 = vrot.lane.b32.xlu1 %v4105_v18, %s2268_s6 }
 0x133   : > { %904 = vrot.lane.b32.xlu0 %v4104_v44, %s2265_s25  ;;  %v1344_v44 = vsel %vm1343_vm5, %v1311_v60, %v678_v3 }
 0x134   : > { %v1081_v8 = vpop.permute.xlu1 %1080  ;;  %v1377_v61 = vsel %vm1376_vm6, %v1344_v44, %v780_v22 }
 0x135   : > { %v981_v31 = vpop.permute.xlu0 %980  ;;  %v1410_v48 = vsel %vm1409_vm7, %v1377_v61, %v881_v32 }
 0x136   : > { %1002 = vrot.lane.b32.xlu1 %v2490_v54, %s2266_s30  ;;  %v1279_v54 = vsel %vm1277_vm3, %v4110_v11, %v4109_v50  ;;  %v1443_v3 = vsel %vm1442_vm8, %v1410_v48, %v979_v51  ;;  %v4117_v48 = vld [vmem:[#allocation2_spill] sm:$0xff] }
 0x137   : > { %906 = vrot.lane.b32.xlu0 %v4105_v18, %s2265_s25  ;;  %v4112_v18 = vld [vmem:[#allocation10_spill] sm:$0xff]  ;;  %v1476_v22 = vsel %vm1475_vm9, %v1443_v3, %v1081_v8 }
 0x138   : > { %v1083_v19 = vpop.permute.xlu1 %1082  ;;  %v1312_v52 = vsel %vm1310_vm4, %v1279_v54, %v4112_v18  ;;  %v4114_v54 = vld [vmem:[#allocation21_spill] sm:$0xff]  ;;  %v4115_v18 = vld [vmem:[#allocation40_spill] sm:$0xff]  ;;  %v4118_v3 = vld [vmem:[#allocation66_spill] sm:$0xff] }
 0x139   : > { %v784_v56 = vpop.permute.xlu0 %783  ;;  %v1345_v60 = vsel %vm1343_vm5, %v1312_v52, %v680_v58  ;;  %v4116_v52 = vld [vmem:[#allocation51_spill] sm:$0xff] }
 0x13a   : > { %1104 = vrot.lane.b32.xlu1 %v4111_v43, %s2267_s5  ;;  %v1378_v11 = vsel %vm1376_vm6, %v1345_v60, %v782_v27  ;;  %v1280_v60 = vsel %vm1277_vm3, %v4117_v48, %v4116_v52 }
 0x13b   : > { %1004 = vrot.lane.b32.xlu0 %v2483_v45, %s2266_s30  ;;  %v1411_v44 = vsel %vm1409_vm7, %v1378_v11, %v883_v35  ;;  %v4113_v35 = vld [vmem:[#allocation41_spill] sm:$0xff]  ;;  %v1313_v11 = vsel %vm1310_vm4, %v1280_v60, %v4118_v3 }
 0x13c   : > { %v786_v50 = vpop.permute.xlu1 %785  ;;  %v1444_v32 = vsel %vm1442_vm8, %v1411_v44, %v981_v31 }
 0x13d   : > { %v1182_v39 = vpop.permute.xlu0 %1181  ;;  %v1477_v58 = vsel %vm1475_vm9, %v1444_v32, %v1083_v19  ;;  %v4120_v32 = vld [vmem:[#allocation3_spill] sm:$0xff] }
 0x13e   : > { %807 = vrot.lane.b32.xlu1 %v4111_v43, %s2264_s20  ;;  %v1509_v61 = vsel %vm1508_vm10, %v1476_v22, %v1182_v39  ;;  %v1346_v39 = vsel %vm1343_vm5, %v1313_v11, %v3267_v34 }
 0x13f   : > { %707 = vrot.lane.b32.xlu0 %v2483_v45, %s2263_s19  ;;  %2142 = vmatprep.mubr.msk.f32.mxu0 %vm1546_vm11, %v1509_v61  ;;  %v4119_v61 = vld [vmem:[#allocation55_spill] sm:$0xff] }
 0x140   : > { %v1184_v27 = vpop.permute.xlu1 %1183 }
 0x141   : > { %v1510_v8 = vsel %vm1508_vm10, %v1477_v58, %v1184_v27  ;;  %v885_v51 = vpop.permute.xlu0 %884  ;;  %v1281_v58 = vsel %vm1277_vm3, %v4120_v32, %v4119_v61  ;;  %v1379_v27 = vsel %vm1376_vm6, %v1346_v39, %v784_v56  ;;  %v4123_v39 = vld [vmem:[#allocation43_spill] sm:$0xff] }
 0x142   : > { %1205 = vrot.lane.b32.xlu1 %v4113_v35, %s2268_s6  ;;  %2143 = vmatmul.mubr.msk.f32.vlgmr.msra.gmra.mrb[0].mxu0 %vm1546_vm11, %v1510_v8  ;;  %v4121_v8 = vld [vmem:[#allocation65_spill] sm:$0xff]  ;;  %v4124_v61 = vld [vmem:[#allocation23_spill] sm:$0xff] }
 0x143   : > { %1106 = vrot.lane.b32.xlu0 %v4114_v54, %s2267_s5 }
 0x144   : > { %v983_v31 = vpop.permute.xlu1 %982 }
 0x145   : > { %v887_v43 = vpop.permute.xlu0 %886 }
 0x146   : > { %908 = vrot.lane.b32.xlu1 %v4113_v35, %s2265_s25  ;;  %v1314_v35 = vsel %vm1310_vm4, %v1281_v58, %v4121_v8  ;;  %v4125_v58 = vld [vmem:[#allocation61_spill] sm:$0xff] }
 0x147   : > { %809 = vrot.lane.b32.xlu0 %v4114_v54, %s2264_s20  ;;  %v1412_v54 = vsel %vm1409_vm7, %v1379_v27, %v885_v51  ;;  %v1347_v34 = vsel %vm1343_vm5, %v1314_v35, %v3265_v25  ;;  %v4122_v51 = vld [vmem:[#allocation24_spill] sm:$0xff]  ;;  %v4126_v27 = vld [vmem:[#allocation7_spill] sm:$0xff] }
 0x148   : > { %v1085_v45 = vpop.permute.xlu1 %1084  ;;  %v1380_v48 = vsel %vm1376_vm6, %v1347_v34, %v786_v50  ;;  %v1282_v8 = vsel %vm1277_vm3, %v4126_v27, %v4125_v58 }
 0x149   : > { %v985_v19 = vpop.permute.xlu0 %984  ;;  %v1413_v3 = vsel %vm1409_vm7, %v1380_v48, %v887_v43  ;;  %v4128_v48 = vld [vmem:[#allocation6_spill] sm:$0xff] }
 0x14a   : > { %910 = vrot.lane.b32.xlu1 %v4115_v18, %s2265_s25 }
 0x14b   : > { %1207 = vrot.lane.b32.xlu0 %v4115_v18, %s2268_s6  ;;  %v1445_v18 = vsel %vm1442_vm8, %v1412_v54, %v983_v31 }
 0x14c   : > { %v1087_v22 = vpop.permute.xlu1 %1086  ;;  %v1478_v56 = vsel %vm1475_vm9, %v1445_v18, %v1085_v45  ;;  %v4127_v18 = vld [vmem:[#allocation59_spill] sm:$0xff] }
 0x14d   : > { %v788_v44 = vpop.permute.xlu0 %787 }
 0x14e   : > { %709 = vrot.lane.b32.xlu1 %v2518_v37, %s2263_s19 }
 0x14f   : > { %1006 = vrot.lane.b32.xlu0 %v2518_v37, %s2266_s30  ;;  %v1446_v37 = vsel %vm1442_vm8, %v1413_v3, %v985_v19  ;;  %v4129_v3 = vld [vmem:[#allocation42_spill] sm:$0xff] }
 0x150   : > { %v790_v52 = vpop.permute.xlu1 %789  ;;  %v1479_v25 = vsel %vm1475_vm9, %v1446_v37, %v1087_v22 }
 0x151   : > { %v1186_v60 = vpop.permute.xlu0 %1185 }
 0x152   : > { %v1511_v11 = vsel %vm1508_vm10, %v1478_v56, %v1186_v60  ;;  %1108 = vrot.lane.b32.xlu1 %v4122_v51, %s2267_s5  ;;  %v1283_v56 = vsel %vm1277_vm3, %v4128_v48, %v4127_v18  ;;  %v4135_v18 = vld [vmem:[#allocation25_spill] sm:$0xff]  ;;  %v4136_v48 = vld [vmem:[#allocation68_spill] sm:$0xff] }
 0x153   : > { %1008 = vrot.lane.b32.xlu0 %v2508_v15, %s2266_s30  ;;  %2145 = vmatprep.mubr.msk.f32.mxu0 %vm1546_vm11, %v1511_v11  ;;  %v4130_v11 = vld [vmem:[#allocation67_spill] sm:$0xff] }
 0x154   : > { %v1188_v50 = vpop.permute.xlu1 %1187 }
 0x155   : > { %v1512_v31 = vsel %vm1508_vm10, %v1479_v25, %v1188_v50  ;;  %v889_v45 = vpop.permute.xlu0 %888 }
 0x156   : > { %811 = vrot.lane.b32.xlu1 %v4122_v51, %s2264_s20  ;;  %2146 = vmatmul.mubr.msk.f32.gmra.mrb[2].mxu0 %vm1546_vm11, %v1512_v31  ;;  %v1316_v51 = vsel %vm1310_vm4, %v1283_v56, %v4130_v11  ;;  %v4137_v11 = vld [vmem:[#allocation62_spill] sm:$0xff] }
 0x157   : > { %711 = vrot.lane.b32.xlu0 %v2508_v15, %s2263_s19  ;;  %v1315_v15 = vsel %vm1310_vm4, %v1282_v8, %v3055_v30  ;;  %v1349_v30 = vsel %vm1343_vm5, %v1316_v51, %v3273_v63  ;;  %v4132_v8 = vld [vmem:[#allocation45_spill] sm:$0xff]  ;;  %v4138_v51 = vld [vmem:[#allocation8_spill] sm:$0xff] }
 0x158   : > { %v987_v43 = vpop.permute.xlu1 %986  ;;  %v1348_v54 = vsel %vm1343_vm5, %v1315_v15, %v3275_v17  ;;  %v1382_v50 = vsel %vm1376_vm6, %v1349_v30, %v790_v52  ;;  %v4133_v15 = vld [vmem:[#allocation63_spill] sm:$0xff] }
 0x159   : > { %v891_v19 = vpop.permute.xlu0 %890  ;;  %v1381_v60 = vsel %vm1376_vm6, %v1348_v54, %v788_v44 }
 0x15a   : > { %1209 = vrot.lane.b32.xlu1 %v4123_v39, %s2268_s6  ;;  %v1414_v37 = vsel %vm1409_vm7, %v1381_v60, %v889_v45 }
 0x15b   : > { %1110 = vrot.lane.b32.xlu0 %v4124_v61, %s2267_s5  ;;  %v1447_v17 = vsel %vm1442_vm8, %v1414_v37, %v987_v43  ;;  %v1285_v37 = vsel %vm1277_vm3, %v4138_v51, %v4137_v11 }
 0x15c   : > { %v1089_v22 = vpop.permute.xlu1 %1088 }
 0x15d   : > { %v989_v32 = vpop.permute.xlu0 %988  ;;  %v1480_v44 = vsel %vm1475_vm9, %v1447_v17, %v1089_v22  ;;  %v4139_v17 = vld [vmem:[#allocation12_spill] sm:$0xff] }
 0x15e   : > { %912 = vrot.lane.b32.xlu1 %v4123_v39, %s2265_s25  ;;  %v1415_v39 = vsel %vm1409_vm7, %v1382_v50, %v891_v19  ;;  %v4131_v19 = vld [vmem:[#allocation26_spill] sm:$0xff]  ;;  %v1318_v50 = vsel %vm1310_vm4, %v1285_v37, %v4139_v17 }
 0x15f   : > { %813 = vrot.lane.b32.xlu0 %v4124_v61, %s2264_s20  ;;  %v1448_v45 = vsel %vm1442_vm8, %v1415_v39, %v989_v32 }
 0x160   : > { %v1091_v35 = vpop.permute.xlu1 %1090 }
 0x161   : > { %v792_v34 = vpop.permute.xlu0 %791  ;;  %v1481_v63 = vsel %vm1475_vm9, %v1448_v45, %v1091_v35  ;;  %v4134_v35 = vld [vmem:[#allocation9_spill] sm:$0xff] }
 0x162   : > { %914 = vrot.lane.b32.xlu1 %v4129_v3, %s2265_s25  ;;  %v1284_v54 = vsel %vm1277_vm3, %v4134_v35, %v4133_v15 }
 0x163   : > { %1211 = vrot.lane.b32.xlu0 %v4129_v3, %s2268_s6  ;;  %v1317_v56 = vsel %vm1310_vm4, %v1284_v54, %v4136_v48  ;;  %v4142_v48 = vld [vmem:[#allocation47_spill] sm:$0xff] }
 0x164   : > { %v794_v25 = vpop.permute.xlu1 %793  ;;  %v1350_v3 = vsel %vm1343_vm5, %v1317_v56, %v3283_v33  ;;  %v1351_v33 = vsel %vm1343_vm5, %v1318_v50, %v3281_v14 }
 0x165   : > { %v1190_v31 = vpop.permute.xlu0 %1189  ;;  %v1383_v30 = vsel %vm1376_vm6, %v1350_v3, %v792_v34 }
 0x166   : > { %v1513_v61 = vsel %vm1508_vm10, %v1480_v44, %v1190_v31  ;;  %713 = vrot.lane.b32.xlu1 %v2538_v2, %s2263_s19 }
 0x167   : > { %1010 = vrot.lane.b32.xlu0 %v2538_v2, %s2266_s30  ;;  %2148 = vmatprep.mubr.msk.f32.mxu0 %vm1546_vm11, %v1513_v61  ;;  %v1384_v61 = vsel %vm1376_vm6, %v1351_v33, %v794_v25 }
 0x168   : > { %v1192_v52 = vpop.permute.xlu1 %1191 }
 0x169   : > { %v1514_v43 = vsel %vm1508_vm10, %v1481_v63, %v1192_v52  ;;  %v893_v22 = vpop.permute.xlu0 %892 }
 0x16a   : > { %1112 = vrot.lane.b32.xlu1 %v4131_v19, %s2267_s5  ;;  %2149 = vmatmul.mubr.msk.f32.gmra.mrb[4].mxu0 %vm1546_vm11, %v1514_v43  ;;  %v1416_v44 = vsel %vm1409_vm7, %v1383_v30, %v893_v22  ;;  %v4140_v43 = vld [vmem:[#allocation44_spill] sm:$0xff] }
 0x16b   : > { %1012 = vrot.lane.b32.xlu0 %v2523_v57, %s2266_s30 }
 0x16c   : > { %v991_v32 = vpop.permute.xlu1 %990 }
 0x16d   : > { %v895_v58 = vpop.permute.xlu0 %894  ;;  %v1449_v31 = vsel %vm1442_vm8, %v1416_v44, %v991_v32  ;;  %v4144_v44 = vld [vmem:[#allocation46_spill] sm:$0xff] }
 0x16e   : > { %815 = vrot.lane.b32.xlu1 %v4131_v19, %s2264_s20  ;;  %v1417_v63 = vsel %vm1409_vm7, %v1384_v61, %v895_v58 }
 0x16f   : > { %715 = vrot.lane.b32.xlu0 %v2523_v57, %s2263_s19 }
 0x170   : > { %v1093_v2 = vpop.permute.xlu1 %1092 }
 0x171   : > { %v993_v27 = vpop.permute.xlu0 %992  ;;  %v1482_v34 = vsel %vm1475_vm9, %v1449_v31, %v1093_v2 }
 0x172   : > { %1213 = vrot.lane.b32.xlu1 %v4132_v8, %s2268_s6  ;;  %v1450_v22 = vsel %vm1442_vm8, %v1417_v63, %v993_v27  ;;  %v4141_v27 = vld [vmem:[#allocation28_spill] sm:$0xff]  ;;  %v1354_v63 = vsel %vm1343_vm5, %v3095_v46, %v3299_v0 }
 0x173   : > { %1114 = vrot.lane.b32.xlu0 %v4135_v18, %s2267_s5 }
 0x174   : > { %v1095_v60 = vpop.permute.xlu1 %1094 }
 0x175   : > { %v796_v57 = vpop.permute.xlu0 %795  ;;  %v1483_v14 = vsel %vm1475_vm9, %v1450_v22, %v1095_v60  ;;  %v4143_v60 = vld [vmem:[#allocation27_spill] sm:$0xff]  ;;  %v1355_v22 = vsel %vm1343_vm5, %v3092_v28, %v3297_v7 }
 0x176   : > { %916 = vrot.lane.b32.xlu1 %v4132_v8, %s2265_s25 }
 0x177   : > { %817 = vrot.lane.b32.xlu0 %v4135_v18, %s2264_s20 }
 0x178   : > { %v798_v39 = vpop.permute.xlu1 %797 }
 0x179   : > { %v1194_v45 = vpop.permute.xlu0 %1193 }
 0x17a   : > { %v1515_v52 = vsel %vm1508_vm10, %v1482_v34, %v1194_v45  ;;  %918 = vrot.lane.b32.xlu1 %v4140_v43, %s2265_s25  ;;  %v4145_v34 = vld [vmem:[#allocation30_spill] sm:$0xff] }
 0x17b   : > { %1215 = vrot.lane.b32.xlu0 %v4140_v43, %s2268_s6  ;;  %2151 = vmatprep.mubr.msk.f32.mxu0 %vm1546_vm11, %v1515_v52 }
 0x17c   : > { %v1196_v25 = vpop.permute.xlu1 %1195 }
 0x17d   : > { %v1516_v19 = vsel %vm1508_vm10, %v1483_v14, %v1196_v25  ;;  %v897_v32 = vpop.permute.xlu0 %896 }
 0x17e   : > { %717 = vrot.lane.b32.xlu1 %v2562_v16, %s2263_s19  ;;  %2152 = vmatmul.mubr.msk.f32.gmra.mrb[6].mxu0 %vm1546_vm11, %v1516_v19 }
 0x17f   : > { %1014 = vrot.lane.b32.xlu0 %v2562_v16, %s2266_s30  ;;  %v1352_v16 = vsel %vm1343_vm5, %v3079_v23, %v3291_v6 }
 0x180   : > { %v995_v58 = vpop.permute.xlu1 %994  ;;  %v1385_v18 = vsel %vm1376_vm6, %v1352_v16, %v796_v57 }
 0x181   : > { %v899_v2 = vpop.permute.xlu0 %898  ;;  %v1418_v56 = vsel %vm1409_vm7, %v1385_v18, %v897_v32 }
 0x182   : > { %1116 = vrot.lane.b32.xlu1 %v4141_v27, %s2267_s5  ;;  %v1451_v3 = vsel %vm1442_vm8, %v1418_v56, %v995_v58  ;;  %v1356_v56 = vsel %vm1343_vm5, %v3111_v49, %v3307_v62 }
 0x183   : > { %1016 = vrot.lane.b32.xlu0 %v2555_v40, %s2266_s30 }
 0x184   : > { %v1097_v8 = vpop.permute.xlu1 %1096 }
 0x185   : > { %v997_v15 = vpop.permute.xlu0 %996  ;;  %v1484_v6 = vsel %vm1475_vm9, %v1451_v3, %v1097_v8 }
 0x186   : > { %819 = vrot.lane.b32.xlu1 %v4141_v27, %s2264_s20  ;;  %v4147_v27 = vld [vmem:[#allocation29_spill] sm:$0xff] }
 0x187   : > { %719 = vrot.lane.b32.xlu0 %v2555_v40, %s2263_s19  ;;  %v1353_v40 = vsel %vm1343_vm5, %v3076_v10, %v3289_v1 }
 0x188   : > { %v1099_v35 = vpop.permute.xlu1 %1098  ;;  %v1386_v23 = vsel %vm1376_vm6, %v1353_v40, %v798_v39 }
 0x189   : > { %v800_v54 = vpop.permute.xlu0 %799  ;;  %v1419_v51 = vsel %vm1409_vm7, %v1386_v23, %v899_v2  ;;  %v4146_v2 = vld [vmem:[#allocation49_spill] sm:$0xff]  ;;  %v4149_v23 = vld [vmem:[#allocation32_spill] sm:$0xff] }
 0x18a   : > { %1217 = vrot.lane.b32.xlu1 %v4142_v48, %s2268_s6  ;;  %v1452_v30 = vsel %vm1442_vm8, %v1419_v51, %v997_v15  ;;  %v1387_v43 = vsel %vm1376_vm6, %v1354_v63, %v800_v54  ;;  %v4148_v54 = vld [vmem:[#allocation48_spill] sm:$0xff]  ;;  %v1358_v63 = vsel %vm1343_vm5, %v3127_v24, %v3313_v26 }
 0x18b   : > { %1118 = vrot.lane.b32.xlu0 %v4143_v60, %s2267_s5  ;;  %v1485_v10 = vsel %vm1475_vm9, %v1452_v30, %v1099_v35 }
 0x18c   : > { %v802_v11 = vpop.permute.xlu1 %801 }
 0x18d   : > { %v1198_v57 = vpop.permute.xlu0 %1197  ;;  %v1388_v46 = vsel %vm1376_vm6, %v1355_v22, %v802_v11 }
 0x18e   : > { %v1517_v37 = vsel %vm1508_vm10, %v1484_v6, %v1198_v57  ;;  %920 = vrot.lane.b32.xlu1 %v4142_v48, %s2265_s25 }
 0x18f   : > { %821 = vrot.lane.b32.xlu0 %v4143_v60, %s2264_s20  ;;  %2154 = vmatprep.mubr.msk.f32.mxu0 %vm1546_vm11, %v1517_v37  ;;  %v1357_v37 = vsel %vm1343_vm5, %v3108_v9, %v3305_v4 }
 0x190   : > { %v1200_v1 = vpop.permute.xlu1 %1199 }
 0x191   : > { %v1518_v17 = vsel %vm1508_vm10, %v1485_v10, %v1200_v1  ;;  %v901_v50 = vpop.permute.xlu0 %900  ;;  %v4150_v1 = vld [vmem:[#allocation52_spill] sm:$0xff] }
 0x192   : > { %922 = vrot.lane.b32.xlu1 %v4144_v44, %s2265_s25  ;;  %2155 = vmatmul.mubr.msk.f32.gmra.mrb[8].mxu0 %vm1546_vm11, %v1518_v17 }
 0x193   : > { %1219 = vrot.lane.b32.xlu0 %v4144_v44, %s2268_s6 }
 0x194   : > { %v999_v33 = vpop.permute.xlu1 %998 }
 0x195   : > { %v903_v31 = vpop.permute.xlu0 %902 }
 0x196   : > { %721 = vrot.lane.b32.xlu1 %v2590_v21, %s2263_s19  ;;  %v1421_v32 = vsel %vm1409_vm7, %v1388_v46, %v903_v31 }
 0x197   : > { %1018 = vrot.lane.b32.xlu0 %v2590_v21, %s2266_s30  ;;  %v1420_v21 = vsel %vm1409_vm7, %v1387_v43, %v901_v50  ;;  %v4151_v50 = vld [vmem:[#allocation31_spill] sm:$0xff] }
 0x198   : > { %v1101_v39 = vpop.permute.xlu1 %1100  ;;  %v1453_v14 = vsel %vm1442_vm8, %v1420_v21, %v999_v33 }
 0x199   : > { %v1001_v61 = vpop.permute.xlu0 %1000  ;;  %v1486_v0 = vsel %vm1475_vm9, %v1453_v14, %v1101_v39  ;;  %v4153_v14 = vld [vmem:[#allocation34_spill] sm:$0xff] }
 0x19a   : > { %1120 = vrot.lane.b32.xlu1 %v4145_v34, %s2267_s5 }
 0x19b   : > { %1020 = vrot.lane.b32.xlu0 %v2580_v13, %s2266_s30 }
 0x19c   : > { %v1103_v45 = vpop.permute.xlu1 %1102 }
 0x19d   : > { %v804_v52 = vpop.permute.xlu0 %803 }
 0x19e   : > { %823 = vrot.lane.b32.xlu1 %v4145_v34, %s2264_s20  ;;  %v1389_v40 = vsel %vm1376_vm6, %v1356_v56, %v804_v52 }
 0x19f   : > { %723 = vrot.lane.b32.xlu0 %v2580_v13, %s2263_s19  ;;  %v1454_v13 = vsel %vm1442_vm8, %v1421_v32, %v1001_v61  ;;  %v4152_v61 = vld [vmem:[#allocation50_spill] sm:$0xff] }
 0x1a0   : > { %v806_v25 = vpop.permute.xlu1 %805  ;;  %v1487_v28 = vsel %vm1475_vm9, %v1454_v13, %v1103_v45 }
 0x1a1   : > { %v1202_v19 = vpop.permute.xlu0 %1201  ;;  %v1390_v10 = vsel %vm1376_vm6, %v1357_v37, %v806_v25  ;;  %v4158_v37 = vld [vmem:[#allocation60_spill] sm:$0xff] }
 0x1a2   : > { %v1519_v58 = vsel %vm1508_vm10, %v1486_v0, %v1202_v19  ;;  %1221 = vrot.lane.b32.xlu1 %v4146_v2, %s2268_s6 }
 0x1a3   : > { %1122 = vrot.lane.b32.xlu0 %v4147_v27, %s2267_s5  ;;  %2157 = vmatprep.mubr.msk.f32.mxu0 %vm1546_vm11, %v1519_v58 }
 0x1a4   : > { %v1204_v7 = vpop.permute.xlu1 %1203 }
 0x1a5   : > { %v1520_v8 = vsel %vm1508_vm10, %v1487_v28, %v1204_v7  ;;  %v905_v15 = vpop.permute.xlu0 %904 }
 0x1a6   : > { %924 = vrot.lane.b32.xlu1 %v4146_v2, %s2265_s25  ;;  %2158 = vmatmul.mubr.msk.f32.gmra.mrb[10].mxu0 %vm1546_vm11, %v1520_v8  ;;  %v1422_v11 = vsel %vm1409_vm7, %v1389_v40, %v905_v15  ;;  %v4154_v2 = vld [vmem:[#allocation56_spill] sm:$0xff] }
 0x1a7   : > { %825 = vrot.lane.b32.xlu0 %v4147_v27, %s2264_s20  ;;  %v4155_v27 = vld [vmem:[#allocation33_spill] sm:$0xff] }
 0x1a8   : > { %v1003_v35 = vpop.permute.xlu1 %1002 }
 0x1a9   : > { %v907_v16 = vpop.permute.xlu0 %906  ;;  %v1455_v6 = vsel %vm1442_vm8, %v1422_v11, %v1003_v35  ;;  %v4157_v11 = vld [vmem:[#allocation36_spill] sm:$0xff] }
 0x1aa   : > { %926 = vrot.lane.b32.xlu1 %v4148_v54, %s2265_s25  ;;  %v1423_v17 = vsel %vm1409_vm7, %v1390_v10, %v907_v16  ;;  %v4156_v16 = vld [vmem:[#allocation54_spill] sm:$0xff]  ;;  %v4159_v10 = vld [vmem:[#allocation35_spill] sm:$0xff] }
 0x1ab   : > { %1223 = vrot.lane.b32.xlu0 %v4148_v54, %s2268_s6 }
 0x1ac   : > { %v1105_v18 = vpop.permute.xlu1 %1104 }
 0x1ad   : > { %v1005_v48 = vpop.permute.xlu0 %1004 }
 0x1ae   : > { %725 = vrot.lane.b32.xlu1 %v2610_v55, %s2263_s19  ;;  %v1456_v44 = vsel %vm1442_vm8, %v1423_v17, %v1005_v48 }
 0x1af   : > { %1022 = vrot.lane.b32.xlu0 %v2610_v55, %s2266_s30  ;;  %v1488_v55 = vsel %vm1475_vm9, %v1455_v6, %v1105_v18 }
 0x1b0   : > { %v808_v60 = vpop.permute.xlu1 %807 }
 0x1b1   : > { %v708_v3 = vpop.permute.xlu0 %707  ;;  %v1391_v43 = vsel %vm1376_vm6, %v1358_v63, %v808_v60 }
 0x1b2   : > { %1124 = vrot.lane.b32.xlu1 %v4149_v23, %s2267_s5  ;;  %v1359_v19 = vsel %vm1343_vm5, %v3124_v36, %v708_v3 }
 0x1b3   : > { %1024 = vrot.lane.b32.xlu0 %v2595_v47, %s2266_s30 }
 0x1b4   : > { %v1206_v57 = vpop.permute.xlu1 %1205 }
 0x1b5   : > { %v1521_v51 = vsel %vm1508_vm10, %v1488_v55, %v1206_v57  ;;  %v1107_v49 = vpop.permute.xlu0 %1106 }
 0x1b6   : > { %827 = vrot.lane.b32.xlu1 %v4149_v23, %s2264_s20  ;;  %2160 = vmatprep.mubr.msk.f32.mxu0 %vm1546_vm11, %v1521_v51 }
 0x1b7   : > { %727 = vrot.lane.b32.xlu0 %v2595_v47, %s2263_s19  ;;  %v1489_v47 = vsel %vm1475_vm9, %v1456_v44, %v1107_v49 }
 0x1b8   : > { %v909_v62 = vpop.permute.xlu1 %908 }
 0x1b9   : > { %v810_v30 = vpop.permute.xlu0 %809  ;;  %v1424_v22 = vsel %vm1409_vm7, %v1391_v43, %v909_v62 }
 0x1ba   : > { %1225 = vrot.lane.b32.xlu1 %v4150_v1, %s2268_s6  ;;  %v1392_v58 = vsel %vm1376_vm6, %v1359_v19, %v810_v30 }
 0x1bb   : > { %1126 = vrot.lane.b32.xlu0 %v4151_v50, %s2267_s5 }
 0x1bc   : > { %v911_v33 = vpop.permute.xlu1 %910 }
 0x1bd   : > { %v1208_v31 = vpop.permute.xlu0 %1207  ;;  %v1425_v13 = vsel %vm1409_vm7, %v1392_v58, %v911_v33 }
 0x1be   : > { %v1522_v39 = vsel %vm1508_vm10, %v1489_v47, %v1208_v31  ;;  %928 = vrot.lane.b32.xlu1 %v4150_v1, %s2265_s25 }
 0x1bf   : > { %829 = vrot.lane.b32.xlu0 %v4151_v50, %s2264_s20  ;;  %2161 = vmatmul.mubr.msk.f32.gmra.mrb[12].mxu0 %vm1546_vm11, %v1522_v39  ;;  %v213_v50 = vld [vmem:[%s2308_s16 + $0x180] sm:$0xff] }
 0x1c0   : > { %v710_v9 = vpop.permute.xlu1 %709  ;;  %v267_v47 = vmax.f32 %v213_v50, 0.0 }
 0x1c1   : > { %v1007_v4 = vpop.permute.xlu0 %1006  ;;  %v1360_v48 = vsel %vm1343_vm5, %v3143_v20, %v710_v9 }
 0x1c2   : > { %930 = vrot.lane.b32.xlu1 %v4152_v61, %s2265_s25  ;;  %v1457_v25 = vsel %vm1442_vm8, %v1424_v22, %v1007_v4  ;;  %v4160_v4 = vld [vmem:[#allocation58_spill] sm:$0xff] }
 0x1c3   : > { %1227 = vrot.lane.b32.xlu0 %v4152_v61, %s2268_s6  ;;  %v774_v61 = vrot.slane %v267_v47, 1 }
 0x1c4   : > { %v1109_v34 = vpop.permute.xlu1 %1108 }
 0x1c5   : > { %v1009_v45 = vpop.permute.xlu0 %1008 }
 0x1c6   : > { %729 = vrot.lane.b32.xlu1 %v2634_v12, %s2263_s19  ;;  %v1458_v28 = vsel %vm1442_vm8, %v1425_v13, %v1009_v45 }
 0x1c7   : > { %1026 = vrot.lane.b32.xlu0 %v2634_v12, %s2266_s30  ;;  %v1490_v12 = vsel %vm1475_vm9, %v1457_v25, %v1109_v34 }
 0x1c8   : > { %v812_v52 = vpop.permute.xlu1 %811 }
 0x1c9   : > { %v712_v21 = vpop.permute.xlu0 %711  ;;  %v1393_v60 = vsel %vm1376_vm6, %v1360_v48, %v812_v52  ;;  %v215_v52 = vld [vmem:[%s2308_s16 + $0x190] sm:$0x3] }
 0x1ca   : > { %1128 = vrot.lane.b32.xlu1 %v4153_v14, %s2267_s5  ;;  %v1361_v51 = vsel %vm1343_vm5, %v3140_v5, %v712_v21 }
 0x1cb   : > { %1028 = vrot.lane.b32.xlu0 %v2627_v42, %s2266_s30 }
 0x1cc   : > { %v1210_v46 = vpop.permute.xlu1 %1209 }
 0x1cd   : > { %v1523_v0 = vsel %vm1508_vm10, %v1490_v12, %v1210_v46  ;;  %v1111_v24 = vpop.permute.xlu0 %1110 }
 0x1ce   : > { %831 = vrot.lane.b32.xlu1 %v4153_v14, %s2264_s20  ;;  %2163 = vmatprep.mubr.msk.f32.mxu0 %vm1546_vm11, %v1523_v0  ;;  %v269_v14 = vmax.f32 %v215_v52, 0.0 }
 0x1cf   : > { %731 = vrot.lane.b32.xlu0 %v2627_v42, %s2263_s19  ;;  %v1491_v42 = vsel %vm1475_vm9, %v1458_v28, %v1111_v24  ;;  %v875_v24 = vrot.slane %v267_v47, 2 }
 0x1d0   : > { %v913_v26 = vpop.permute.xlu1 %912 }
 0x1d1   : > { %v814_v32 = vpop.permute.xlu0 %813  ;;  %v1426_v3 = vsel %vm1409_vm7, %v1393_v60, %v913_v26 }
 0x1d2   : > { %1229 = vrot.lane.b32.xlu1 %v4154_v2, %s2268_s6  ;;  %v1394_v62 = vsel %vm1376_vm6, %v1361_v51, %v814_v32 }
 0x1d3   : > { %1130 = vrot.lane.b32.xlu0 %v4155_v27, %s2267_s5 }
 0x1d4   : > { %v915_v7 = vpop.permute.xlu1 %914 }
 0x1d5   : > { %v1212_v8 = vpop.permute.xlu0 %1211  ;;  %v1427_v30 = vsel %vm1409_vm7, %v1394_v62, %v915_v7 }
 0x1d6   : > { %v1524_v15 = vsel %vm1508_vm10, %v1491_v42, %v1212_v8  ;;  %932 = vrot.lane.b32.xlu1 %v4154_v2, %s2265_s25 }
 0x1d7   : > { %833 = vrot.lane.b32.xlu0 %v4155_v27, %s2264_s20  ;;  %2164 = vmatmul.mubr.msk.f32.gmra.mrb[14].mxu0 %vm1546_vm11, %v1524_v15 }
 0x1d8   : > { %v714_v36 = vpop.permute.xlu1 %713 }
 0x1d9   : > { %v1011_v35 = vpop.permute.xlu0 %1010  ;;  %v1362_v21 = vsel %vm1343_vm5, %v3159_v29, %v714_v36  ;;  %v777_v29 = vrot.slane %v269_v14, 1  ;;  %v878_v36 = vrot.slane %v269_v14, 2 }
 0x1da   : > { %934 = vrot.lane.b32.xlu1 %v4156_v16, %s2265_s25  ;;  %v1459_v23 = vsel %vm1442_vm8, %v1426_v3, %v1011_v35 }
 0x1db   : > { %1231 = vrot.lane.b32.xlu0 %v4156_v16, %s2268_s6 }
 0x1dc   : > { %v1113_v54 = vpop.permute.xlu1 %1112 }
 0x1dd   : > { %v1013_v18 = vpop.permute.xlu0 %1012 }
 0x1de   : > { %733 = vrot.lane.b32.xlu1 %v2658_v41, %s2263_s19  ;;  %v1460_v1 = vsel %vm1442_vm8, %v1427_v30, %v1013_v18  ;;  %v218_v18 = vld [vmem:[%s2308_s16 + $0x1a8] sm:$0x3] }
 0x1df   : > { %1030 = vrot.lane.b32.xlu0 %v2658_v41, %s2266_s30  ;;  %v1492_v41 = vsel %vm1475_vm9, %v1459_v23, %v1113_v54  ;;  %v217_v54 = vld [vmem:[%s2308_s16 + $0x1a0] sm:$0xff] }
 0x1e0   : > { %v816_v56 = vpop.permute.xlu1 %815  ;;  %v271_v3 = vmax.f32 %v217_v54, 0.0 }
 0x1e1   : > { %v3675_v40 = vpop.permute.xlu0 %715  ;;  %v1395_v25 = vsel %vm1376_vm6, %v1362_v21, %v816_v56  ;;  %v4161_v21 = vld [vmem:[#allocation11_spill] sm:$0xff] }
 0x1e2   : > { %1132 = vrot.lane.b32.xlu1 %v4157_v11, %s2267_s5  ;;  %v1363_v7 = vsel %vm1343_vm5, %v3156_v38, %v3675_v40  ;;  %v216_v38 = vld [vmem:[%s2308_s16 + $0x198] sm:$0xff] }
 0x1e3   : > { %1032 = vrot.lane.b32.xlu0 %v2651_v53, %s2266_s30 }
 0x1e4   : > { %v1214_v6 = vpop.permute.xlu1 %1213 }
 0x1e5   : > { %v1115_v20 = vpop.permute.xlu0 %1114  ;;  %v1525_v55 = vsel %vm1508_vm10, %v1492_v41, %v1214_v6  ;;  %v270_v41 = vmax.f32 %v216_v38, 0.0 }
 0x1e6   : > { %835 = vrot.lane.b32.xlu1 %v4157_v11, %s2264_s20  ;;  %2166 = vmatprep.mubr.msk.f32.mxu1 %vm1546_vm11, %v1525_v55  ;;  %v1493_v44 = vsel %vm1475_vm9, %v1460_v1, %v1115_v20  ;;  %v272_v11 = vmax.f32 %v218_v18, 0.0  ;;  %v1076_v20 = vrot.slane %v271_v3, 1 }
 0x1e7   : > { %735 = vrot.lane.b32.xlu0 %v2651_v53, %s2263_s19  ;;  %v214_v53 = vld [vmem:[%s2308_s16 + $0x188] sm:$0xff]  ;;  %v1075_v51 = vrot.slane %v270_v41, 1  ;;  %v1176_v50 = vrot.slane %v270_v41, 2 }
 0x1e8   : > { %v917_v57 = vpop.permute.xlu1 %916  ;;  %v268_v31 = vmax.f32 %v214_v53, 0.0  ;;  %v1078_v55 = vrot.slane %v272_v11, 1  ;;  %v1179_v30 = vrot.slane %v272_v11, 2 }
 0x1e9   : > { %v818_v49 = vpop.permute.xlu0 %817  ;;  %v1428_v46 = vsel %vm1409_vm7, %v1395_v25, %v917_v57 }
 0x1ea   : > { %1233 = vrot.lane.b32.xlu1 %v4158_v37, %s2268_s6  ;;  %v775_v34 = vrot.slane %v268_v31, 1  ;;  %v876_v26 = vrot.slane %v268_v31, 2  ;;  %v1396_v8 = vsel %vm1376_vm6, %v1363_v7, %v818_v49  ;;  %v1079_v62 = vsel %vm321_vm0, %v1076_v20, %v1078_v55 }
 0x1eb   : > { %1134 = vrot.lane.b32.xlu0 %v4159_v10, %s2267_s5 }
 0x1ec   : > { %v919_v17 = vpop.permute.xlu1 %918  ;;  %v776_v43 = vsel %vm321_vm0, %v774_v61, %v775_v34  ;;  %v877_v13 = vsel %vm498_vm1, %v875_v24, %v876_v26  ;;  %v778_v28 = vsel %vm321_vm0, %v775_v34, %v777_v29  ;;  %v879_v40 = vsel %vm498_vm1, %v876_v26, %v878_v36 }
 0x1ed   : > { %v1216_v5 = vpop.permute.xlu0 %1215  ;;  %v1429_v15 = vsel %vm1409_vm7, %v1396_v8, %v919_v17  ;;  %v1077_v17 = vsel %vm321_vm0, %v1075_v51, %v1076_v20 }
 0x1ee   : > { %v1526_v33 = vsel %vm1508_vm10, %v1493_v44, %v1216_v5  ;;  %936 = vrot.lane.b32.xlu1 %v4158_v37, %s2265_s25  ;;  %v1177_v37 = vrot.slane %v271_v3, 2 }
 0x1ef   : > { %837 = vrot.lane.b32.xlu0 %v4159_v10, %s2264_s20  ;;  %2167 = vmatmul.mubr.msk.f32.vlgmr.msra.gmra.mrb[0].mxu1 %vm1546_vm11, %v1526_v33 }
 0x1f0   : > { %v3708_v39 = vpop.permute.xlu1 %717 }
 0x1f1   : > { %v1015_v9 = vpop.permute.xlu0 %1014  ;;  %v1364_v10 = vsel %vm1343_vm5, %v3175_v59, %v3708_v39  ;;  %v1178_v39 = vsel %vm498_vm1, %v1176_v50, %v1177_v37 }
 0x1f2   : > { %938 = vrot.lane.b32.xlu1 %v4160_v4, %s2265_s25  ;;  %v1461_v0 = vsel %vm1442_vm8, %v1428_v46, %v1015_v9 }
 0x1f3   : > { %1235 = vrot.lane.b32.xlu0 %v4160_v4, %s2268_s6 }
 0x1f4   : > { %v1117_v45 = vpop.permute.xlu1 %1116 }
 0x1f5   : > { %v1017_v63 = vpop.permute.xlu0 %1016  ;;  %v1494_v19 = vsel %vm1475_vm9, %v1461_v0, %v1117_v45 }
 0x1f6   : > { %737 = vrot.lane.b32.xlu1 %v267_v47, %s2263_s19  ;;  %v1462_v35 = vsel %vm1442_vm8, %v1429_v15, %v1017_v63 }
 0x1f7   : > { %1034 = vrot.lane.b32.xlu0 %v267_v47, %s2266_s30  ;;  %v1180_v47 = vsel %vm498_vm1, %v1177_v37, %v1179_v30 }
 0x1f8   : > { %v820_v22 = vpop.permute.xlu1 %819 }
 0x1f9   : > { %v3721_v12 = vpop.permute.xlu0 %719  ;;  %v1397_v53 = vsel %vm1376_vm6, %v1364_v10, %v820_v22 }
 0x1fa   : > { %1136 = vrot.lane.b32.xlu1 %v776_v43, %s2267_s5  ;;  %v1365_v22 = vsel %vm1343_vm5, %v4161_v21, %v3721_v12 }
 0x1fb   : > { %1036 = vrot.lane.b32.xlu0 %v268_v31, %s2266_s30 }
 0x1fc   : > { %v1218_v32 = vpop.permute.xlu1 %1217 }
 0x1fd   : > { %v1527_v58 = vsel %vm1508_vm10, %v1494_v19, %v1218_v32  ;;  %v1119_v2 = vpop.permute.xlu0 %1118 }
 0x1fe   : > { %839 = vrot.lane.b32.xlu1 %v776_v43, %s2264_s20  ;;  %2169 = vmatprep.mubr.msk.f32.mxu1 %vm1546_vm11, %v1527_v58  ;;  %v1495_v48 = vsel %vm1475_vm9, %v1462_v35, %v1119_v2 }
 0x1ff   : > { %739 = vrot.lane.b32.xlu0 %v268_v31, %s2263_s19 }
 0x200   : > { %v921_v27 = vpop.permute.xlu1 %920 }
 0x201   : > { %v3737_v42 = vpop.permute.xlu0 %821  ;;  %v1430_v5 = vsel %vm1409_vm7, %v1397_v53, %v921_v27  ;;  %v4162_v27 = vld [vmem:[#allocation13_spill] sm:$0xff] }
 0x202   : > { %1237 = vrot.lane.b32.xlu1 %v877_v13, %s2268_s6  ;;  %v1398_v46 = vsel %vm1376_vm6, %v1365_v22, %v3737_v42 }
 0x203   : > { %1138 = vrot.lane.b32.xlu0 %v778_v28, %s2267_s5 }
 0x204   : > { %v923_v16 = vpop.permute.xlu1 %922 }
 0x205   : > { %v1220_v56 = vpop.permute.xlu0 %1219  ;;  %v1431_v0 = vsel %vm1409_vm7, %v1398_v46, %v923_v16 }
 0x206   : > { %v1528_v60 = vsel %vm1508_vm10, %v1495_v48, %v1220_v56  ;;  %940 = vrot.lane.b32.xlu1 %v877_v13, %s2265_s25 }
 0x207   : > { %841 = vrot.lane.b32.xlu0 %v778_v28, %s2264_s20  ;;  %2170 = vmatmul.mubr.msk.f32.gmra.mrb[2].mxu1 %vm1546_vm11, %v1528_v60 }
 0x208   : > { %v722_v23 = vpop.permute.xlu1 %721 }
 0x209   : > { %v1019_v6 = vpop.permute.xlu0 %1018  ;;  %v1366_v28 = vsel %vm1343_vm5, %v4162_v27, %v722_v23 }
 0x20a   : > { %942 = vrot.lane.b32.xlu1 %v879_v40, %s2265_s25  ;;  %v1463_v33 = vsel %vm1442_vm8, %v1430_v5, %v1019_v6  ;;  %v4163_v6 = vld [vmem:[#allocation14_spill] sm:$0xff] }
 0x20b   : > { %1239 = vrot.lane.b32.xlu0 %v879_v40, %s2268_s6 }
 0x20c   : > { %v1121_v57 = vpop.permute.xlu1 %1120 }
 0x20d   : > { %v1021_v49 = vpop.permute.xlu0 %1020  ;;  %v1496_v31 = vsel %vm1475_vm9, %v1463_v33, %v1121_v57 }
 0x20e   : > { %1040 = vrot.lane.b32.xlu1 %v271_v3, %s2266_s30  ;;  %v1464_v24 = vsel %vm1442_vm8, %v1431_v0, %v1021_v49  ;;  %v4165_v0 = vld [vmem:[#allocation69_spill] sm:$0xff] }
 0x20f   : > { %1038 = vrot.lane.b32.xlu0 %v270_v41, %s2266_s30 }
 0x210   : > { %v824_v1 = vpop.permute.xlu1 %823 }
 0x211   : > { %v724_v44 = vpop.permute.xlu0 %723  ;;  %v1399_v42 = vsel %vm1376_vm6, %v1366_v28, %v824_v1 }
 0x212   : > { %1142 = vrot.lane.b32.xlu1 %v1079_v62, %s2267_s5  ;;  %v1367_v20 = vsel %vm1343_vm5, %v4163_v6, %v724_v44 }
 0x213   : > { %1140 = vrot.lane.b32.xlu0 %v1077_v17, %s2267_s5 }
 0x214   : > { %v1222_v59 = vpop.permute.xlu1 %1221 }
 0x215   : > { %v1529_v9 = vsel %vm1508_vm10, %v1496_v31, %v1222_v59  ;;  %v1123_v4 = vpop.permute.xlu0 %1122  ;;  %v2144_v61 = vpop.f32.mrb[0].mxu0  ;;  %v4164_v31 = vld [vmem:[#allocation70_spill] sm:$0xff] }
 0x216   : > { %v1911_v34 = vmul.f32 %v2144_v61, %v2144_v61  ;;  %1243 = vrot.lane.b32.xlu1 %v1180_v47, %s2268_s6  ;;  %v1713_v45 = vpop.f32.mrb[1].mxu0  ;;  %2172 = vmatprep.mubr.msk.f32.mxu1 %vm1546_vm11, %v1529_v9  ;;  %v1497_v19 = vsel %vm1475_vm9, %v1464_v24, %v1123_v4 }
 0x217   : > { %v1872_v63 = vadd.f32 %v2144_v61, %v1713_v45  ;;  %v1910_v52 = vmul.f32 %v1713_v45, %v1713_v45  ;;  %1241 = vrot.lane.b32.xlu0 %v1178_v39, %s2268_s6 }
 0x218   : > { %v925_v43 = vpop.permute.xlu1 %924 }
 0x219   : > { %v1942_v14 = vadd.f32 %v1911_v34, %v1910_v52  ;;  %v826_v25 = vpop.permute.xlu0 %825  ;;  %v1432_v36 = vsel %vm1409_vm7, %v1399_v42, %v925_v43 }
 0x21a   : > { %v1400_v57 = vsel %vm1376_vm6, %v1367_v20, %v826_v25 }
 0x21c   : > { %v927_v26 = vpop.permute.xlu1 %926 }
 0x21d   : > { %v1224_v32 = vpop.permute.xlu0 %1223  ;;  %v1433_v51 = vsel %vm1409_vm7, %v1400_v57, %v927_v26 }
 0x21e   : > { %v1530_v29 = vsel %vm1508_vm10, %v1497_v19, %v1224_v32 }
 0x21f   : > { %2173 = vmatmul.mubr.msk.f32.gmra.mrb[4].mxu1 %vm1546_vm11, %v1530_v29 }
 0x220   : > { %v726_v58 = vpop.permute.xlu1 %725 }
 0x221   : > { %v1023_v2 = vpop.permute.xlu0 %1022  ;;  %v1368_v59 = vsel %vm1343_vm5, %v4164_v31, %v726_v58 }
 0x222   : > { %v1465_v16 = vsel %vm1442_vm8, %v1432_v36, %v1023_v2 }
 0x224   : > { %v1125_v12 = vpop.permute.xlu1 %1124 }
 0x225   : > { %v1025_v13 = vpop.permute.xlu0 %1024  ;;  %v1498_v48 = vsel %vm1475_vm9, %v1465_v16, %v1125_v12 }
 0x226   : > { %v1466_v49 = vsel %vm1442_vm8, %v1433_v51, %v1025_v13  ;;  %v4167_v51 = vld [vmem:[#allocation16_spill] sm:$0xff] }
 0x228   : > { %v828_v7 = vpop.permute.xlu1 %827 }
 0x229   : > { %v728_v8 = vpop.permute.xlu0 %727  ;;  %v2147_v15 = vpop.f32.mrb[2].mxu0  ;;  %v1401_v9 = vsel %vm1376_vm6, %v1368_v59, %v828_v7 }
 0x22a   : > { %v1723_v35 = vpop.f32.mrb[3].mxu0  ;;  %v1913_v38 = vmul.f32 %v2147_v15, %v2147_v15  ;;  %v1369_v24 = vsel %vm1343_vm5, %v4165_v0, %v728_v8 }
 0x22b   : > { %v1873_v54 = vadd.f32 %v1872_v63, %v1723_v35  ;;  %v1912_v18 = vmul.f32 %v1723_v35, %v1723_v35 }
 0x22c   : > { %v1226_v56 = vpop.permute.xlu1 %1225 }
 0x22d   : > { %v1943_v60 = vadd.f32 %v1942_v14, %v1912_v18  ;;  %v1531_v40 = vsel %vm1508_vm10, %v1498_v48, %v1226_v56  ;;  %v1127_v3 = vpop.permute.xlu0 %1126  ;;  %v1874_v11 = vadd.f32 %v2147_v15, %v1873_v54  ;;  %v4166_v56 = vld [vmem:[#allocation71_spill] sm:$0xff] }
 0x22e   : > { %2175 = vmatprep.mubr.msk.f32.mxu1 %vm1546_vm11, %v1531_v40  ;;  %v1499_v37 = vsel %vm1475_vm9, %v1466_v49, %v1127_v3 }
 0x22f   : > { %v1944_v23 = vadd.f32 %v1943_v60, %v1913_v38 }
 0x230   : > { %v929_v41 = vpop.permute.xlu1 %928 }
 0x231   : > { %v830_v55 = vpop.permute.xlu0 %829  ;;  %v1434_v63 = vsel %vm1409_vm7, %v1401_v9, %v929_v41 }
 0x232   : > { %v1402_v19 = vsel %vm1376_vm6, %v1369_v24, %v830_v55 }
 0x234   : > { %v931_v62 = vpop.permute.xlu1 %930 }
 0x235   : > { %v1228_v30 = vpop.permute.xlu0 %1227  ;;  %v1435_v32 = vsel %vm1409_vm7, %v1402_v19, %v931_v62 }
 0x236   : > { %v1532_v10 = vsel %vm1508_vm10, %v1499_v37, %v1228_v30 }
 0x237   : > { %2176 = vmatmul.mubr.msk.f32.gmra.mrb[6].mxu1 %vm1546_vm11, %v1532_v10 }
 0x238   : > { %v730_v1 = vpop.permute.xlu1 %729 }
 0x239   : > { %v1027_v17 = vpop.permute.xlu0 %1026  ;;  %v1370_v38 = vsel %vm1343_vm5, %v4166_v56, %v730_v1 }
 0x23a   : > { %v1467_v52 = vsel %vm1442_vm8, %v1434_v63, %v1027_v17  ;;  %v4168_v63 = vld [vmem:[#allocation72_spill] sm:$0xff] }
 0x23c   : > { %v1129_v50 = vpop.permute.xlu1 %1128 }
 0x23d   : > { %v1029_v53 = vpop.permute.xlu0 %1028  ;;  %v2150_v44 = vpop.f32.mrb[4].mxu0  ;;  %v1500_v21 = vsel %vm1475_vm9, %v1467_v52, %v1129_v50 }
 0x23e   : > { %v1733_v5 = vpop.f32.mrb[5].mxu0  ;;  %v1915_v4 = vmul.f32 %v2150_v44, %v2150_v44  ;;  %v1468_v29 = vsel %vm1442_vm8, %v1435_v32, %v1029_v53  ;;  %v4169_v32 = vld [vmem:[#allocation15_spill] sm:$0xff] }
 0x23f   : > { %v1875_v33 = vadd.f32 %v1874_v11, %v1733_v5  ;;  %v1914_v47 = vmul.f32 %v1733_v5, %v1733_v5 }
 0x240   : > { %v832_v39 = vpop.permute.xlu1 %831 }
 0x241   : > { %v1945_v61 = vadd.f32 %v1944_v23, %v1914_v47  ;;  %v732_v34 = vpop.permute.xlu0 %731  ;;  %v1876_v45 = vadd.f32 %v2150_v44, %v1875_v33  ;;  %v1403_v40 = vsel %vm1376_vm6, %v1370_v38, %v832_v39 }
 0x242   : > { %v1371_v49 = vsel %vm1343_vm5, %v4167_v51, %v732_v34 }
 0x243   : > { %v1946_v43 = vadd.f32 %v1945_v61, %v1915_v4 }
 0x244   : > { %v1230_v22 = vpop.permute.xlu1 %1229 }
 0x245   : > { %v1533_v14 = vsel %vm1508_vm10, %v1500_v21, %v1230_v22  ;;  %v1131_v25 = vpop.permute.xlu0 %1130 }
 0x246   : > { %2178 = vmatprep.mubr.msk.f32.mxu1 %vm1546_vm11, %v1533_v14  ;;  %v1501_v2 = vsel %vm1475_vm9, %v1468_v29, %v1131_v25 }
 0x248   : > { %v933_v46 = vpop.permute.xlu1 %932 }
 0x249   : > { %v834_v26 = vpop.permute.xlu0 %833  ;;  %v1436_v11 = vsel %vm1409_vm7, %v1403_v40, %v933_v46 }
 0x24a   : > { %v1404_v37 = vsel %vm1376_vm6, %v1371_v49, %v834_v26 }
 0x24c   : > { %v935_v58 = vpop.permute.xlu1 %934 }
 0x24d   : > { %v1232_v12 = vpop.permute.xlu0 %1231  ;;  %v1437_v30 = vsel %vm1409_vm7, %v1404_v37, %v935_v58 }
 0x24e   : > { %v1534_v13 = vsel %vm1508_vm10, %v1501_v2, %v1232_v12 }
 0x24f   : > { %2179 = vmatmul.mubr.msk.f32.gmra.mrb[8].mxu1 %vm1546_vm11, %v1534_v13 }
 0x250   : > { %v734_v27 = vpop.permute.xlu1 %733 }
 0x251   : > { %v1031_v28 = vpop.permute.xlu0 %1030  ;;  %v2153_v7 = vpop.f32.mrb[6].mxu0  ;;  %v1372_v52 = vsel %vm1343_vm5, %v4168_v63, %v734_v27 }
 0x252   : > { %v1743_v42 = vpop.f32.mrb[7].mxu0  ;;  %v1917_v35 = vmul.f32 %v2153_v7, %v2153_v7  ;;  %v1469_v23 = vsel %vm1442_vm8, %v1436_v11, %v1031_v28  ;;  %v4171_v11 = vld [vmem:[#allocation74_spill] sm:$0xff] }
 0x253   : > { %v1877_v8 = vadd.f32 %v1876_v45, %v1743_v42  ;;  %v1916_v15 = vmul.f32 %v1743_v42, %v1743_v42 }
 0x254   : > { %v1133_v36 = vpop.permute.xlu1 %1132 }
 0x255   : > { %v1947_v16 = vadd.f32 %v1946_v43, %v1916_v15  ;;  %v1033_v54 = vpop.permute.xlu0 %1032  ;;  %v1878_v18 = vadd.f32 %v2153_v7, %v1877_v8  ;;  %v1502_v41 = vsel %vm1475_vm9, %v1469_v23, %v1133_v36 }
 0x256   : > { %v1470_v10 = vsel %vm1442_vm8, %v1437_v30, %v1033_v54 }
 0x257   : > { %v1948_v48 = vadd.f32 %v1947_v16, %v1917_v35 }
 0x258   : > { %v836_v60 = vpop.permute.xlu1 %835 }
 0x259   : > { %v736_v3 = vpop.permute.xlu0 %735  ;;  %v1405_v21 = vsel %vm1376_vm6, %v1372_v52, %v836_v60  ;;  %v4170_v60 = vld [vmem:[#allocation73_spill] sm:$0xff] }
 0x25a   : > { %v1373_v29 = vsel %vm1343_vm5, %v4169_v32, %v736_v3 }
 0x25c   : > { %v1234_v6 = vpop.permute.xlu1 %1233 }
 0x25d   : > { %v1535_v20 = vsel %vm1508_vm10, %v1502_v41, %v1234_v6  ;;  %v1135_v55 = vpop.permute.xlu0 %1134 }
 0x25e   : > { %2181 = vmatprep.mubr.msk.f32.mxu1 %vm1546_vm11, %v1535_v20  ;;  %v1503_v17 = vsel %vm1475_vm9, %v1470_v10, %v1135_v55 }
 0x260   : > { %v937_v57 = vpop.permute.xlu1 %936 }
 0x261   : > { %v838_v62 = vpop.permute.xlu0 %837  ;;  %v1438_v14 = vsel %vm1409_vm7, %v1405_v21, %v937_v57 }
 0x262   : > { %v1406_v12 = vsel %vm1376_vm6, %v1373_v29, %v838_v62 }
 0x264   : > { %v939_v1 = vpop.permute.xlu1 %938 }
 0x265   : > { %v1236_v50 = vpop.permute.xlu0 %1235  ;;  %v2156_v53 = vpop.f32.mrb[8].mxu0  ;;  %v1439_v27 = vsel %vm1409_vm7, %v1406_v12, %v939_v1 }
 0x266   : > { %v1536_v44 = vsel %vm1508_vm10, %v1503_v17, %v1236_v50  ;;  %v1753_v5 = vpop.f32.mrb[9].mxu0  ;;  %v1919_v59 = vmul.f32 %v2156_v53, %v2156_v53 }
 0x267   : > { %v1879_v33 = vadd.f32 %v1878_v18, %v1753_v5  ;;  %v1918_v47 = vmul.f32 %v1753_v5, %v1753_v5  ;;  %2182 = vmatmul.mubr.msk.f32.gmra.mrb[10].mxu1 %vm1546_vm11, %v1536_v44 }
 0x268   : > { %v738_v31 = vpop.permute.xlu1 %737 }
 0x269   : > { %v1949_v39 = vadd.f32 %v1948_v48, %v1918_v47  ;;  %v1035_v9 = vpop.permute.xlu0 %1034  ;;  %v1880_v4 = vadd.f32 %v2156_v53, %v1879_v33  ;;  %v1374_v23 = vsel %vm1343_vm5, %v4171_v11, %v738_v31 }
 0x26a   : > { %v1471_v25 = vsel %vm1442_vm8, %v1438_v14, %v1035_v9 }
 0x26b   : > { %v1950_v61 = vadd.f32 %v1949_v39, %v1919_v59 }
 0x26c   : > { %v1137_v34 = vpop.permute.xlu1 %1136 }
 0x26d   : > { %v1037_v45 = vpop.permute.xlu0 %1036  ;;  %v1504_v46 = vsel %vm1475_vm9, %v1471_v25, %v1137_v34 }
 0x26e   : > { %v1472_v42 = vsel %vm1442_vm8, %v1439_v27, %v1037_v45 }
 0x270   : > { %v840_v43 = vpop.permute.xlu1 %839 }
 0x271   : > { %v740_v22 = vpop.permute.xlu0 %739  ;;  %v1407_v20 = vsel %vm1376_vm6, %v1374_v23, %v840_v43 }
 0x272   : > { %v1375_v40 = vsel %vm1343_vm5, %v4170_v60, %v740_v22 }
 0x274   : > { %v1238_v0 = vpop.permute.xlu1 %1237 }
 0x275   : > { %v1537_v24 = vsel %vm1508_vm10, %v1504_v46, %v1238_v0  ;;  %v1139_v26 = vpop.permute.xlu0 %1138 }
 0x276   : > { %2184 = vmatprep.mubr.msk.f32.mxu1 %vm1546_vm11, %v1537_v24  ;;  %v1505_v15 = vsel %vm1475_vm9, %v1472_v42, %v1139_v26 }
 0x278   : > { %v941_v19 = vpop.permute.xlu1 %940 }
 0x279   : > { %v842_v58 = vpop.permute.xlu0 %841  ;;  %v2159_v2 = vpop.f32.mrb[10].mxu0  ;;  %v1440_v57 = vsel %vm1409_vm7, %v1407_v20, %v941_v19 }
 0x27a   : > { %v1763_v13 = vpop.f32.mrb[11].mxu0  ;;  %v1921_v36 = vmul.f32 %v2159_v2, %v2159_v2  ;;  %v1408_v41 = vsel %vm1376_vm6, %v1375_v40, %v842_v58 }
 0x27b   : > { %v1881_v28 = vadd.f32 %v1880_v4, %v1763_v13  ;;  %v1920_v7 = vmul.f32 %v1763_v13, %v1763_v13 }
 0x27c   : > { %v943_v8 = vpop.permute.xlu1 %942 }
 0x27d   : > { %v1951_v35 = vadd.f32 %v1950_v61, %v1920_v7  ;;  %v1240_v16 = vpop.permute.xlu0 %1239  ;;  %v1882_v54 = vadd.f32 %v2159_v2, %v1881_v28  ;;  %v1441_v55 = vsel %vm1409_vm7, %v1408_v41, %v943_v8 }
 0x27e   : > { %v1538_v18 = vsel %vm1508_vm10, %v1505_v15, %v1240_v16 }
 0x27f   : > { %2185 = vmatmul.mubr.msk.f32.gmra.mrb[12].mxu1 %vm1546_vm11, %v1538_v18  ;;  %v1952_v48 = vadd.f32 %v1951_v35, %v1921_v36 }
 0x280   : > { %v1041_v56 = vpop.permute.xlu1 %1040 }
 0x281   : > { %v1039_v38 = vpop.permute.xlu0 %1038  ;;  %v1474_v51 = vsel %vm1442_vm8, %v1441_v55, %v1041_v56 }
 0x282   : > { %v1473_v49 = vsel %vm1442_vm8, %v1440_v57, %v1039_v38 }
 0x284   : > { %v1143_v3 = vpop.permute.xlu1 %1142 }
 0x285   : > { %v1141_v6 = vpop.permute.xlu0 %1140  ;;  %v1507_v62 = vsel %vm1475_vm9, %v1474_v51, %v1143_v3 }
 0x286   : > { %v1506_v30 = vsel %vm1475_vm9, %v1473_v49, %v1141_v6 }
 0x288   : > { %v1244_v37 = vpop.permute.xlu1 %1243 }
 0x289   : > { %v1540_v10 = vsel %vm1508_vm10, %v1507_v62, %v1244_v37  ;;  %v1242_v1 = vpop.permute.xlu0 %1241 }
 0x28a   : > { %v1539_v17 = vsel %vm1508_vm10, %v1506_v30, %v1242_v1 }
 0x28b   : > { %2187 = vmatprep.mubr.msk.f32.mxu1 %vm1546_vm11, %v1539_v17 }
 0x28c   : > { %2188 = vmatmul.mubr.msk.f32.gmra.mrb[14].mxu1 %vm1546_vm11, %v1540_v10 }
 0x292   : > { %v2162_v50 = vpop.f32.mrb[12].mxu0 }
 0x293   : > { %v1773_v53 = vpop.f32.mrb[13].mxu0  ;;  %v1923_v33 = vmul.f32 %v2162_v50, %v2162_v50 }
 0x294   : > { %v1883_v44 = vadd.f32 %v1882_v54, %v1773_v53  ;;  %v1922_v5 = vmul.f32 %v1773_v53, %v1773_v53 }
 0x296   : > { %v1953_v47 = vadd.f32 %v1952_v48, %v1922_v5  ;;  %v1884_v31 = vadd.f32 %v2162_v50, %v1883_v44 }
 0x298   : > { %v1954_v59 = vadd.f32 %v1953_v47, %v1923_v33 }
 0x2aa   : > { %v2165_v39 = vpop.f32.mrb[14].mxu0 }
 0x2ab   : > { %v1783_v9 = vpop.f32.mrb[15].mxu0  ;;  %v1925_v34 = vmul.f32 %v2165_v39, %v2165_v39 }
 0x2ac   : > { %v1885_v4 = vadd.f32 %v1884_v31, %v1783_v9  ;;  %v1924_v61 = vmul.f32 %v1783_v9, %v1783_v9 }
 0x2ae   : > { %v1886_v45 = vadd.f32 %v2165_v39, %v1885_v4  ;;  %v1955_v63 = vadd.f32 %v1954_v59, %v1924_v61 }
 0x2b0   : > { %v1956_v52 = vadd.f32 %v1955_v63, %v1925_v34 }
 0x2c2   : > { %v2168_v43 = vpop.f32.mrb[0].mxu1 }
 0x2c3   : > { %v1793_v21 = vpop.f32.mrb[1].mxu1  ;;  %v1927_v25 = vmul.f32 %v2168_v43, %v2168_v43 }
 0x2c4   : > { %v1887_v22 = vadd.f32 %v1886_v45, %v1793_v21  ;;  %v1926_v14 = vmul.f32 %v1793_v21, %v1793_v21 }
 0x2c6   : > { %v1957_v46 = vadd.f32 %v1956_v52, %v1926_v14  ;;  %v1888_v0 = vadd.f32 %v2168_v43, %v1887_v22 }
 0x2c8   : > { %v1958_v24 = vadd.f32 %v1957_v46, %v1927_v25 }
 0x2da   : > { %v2171_v26 = vpop.f32.mrb[2].mxu1 }
 0x2db   : > { %v1803_v19 = vpop.f32.mrb[3].mxu1  ;;  %v1929_v58 = vmul.f32 %v2171_v26, %v2171_v26 }
 0x2dc   : > { %v1889_v32 = vadd.f32 %v1888_v0, %v1803_v19  ;;  %v1928_v29 = vmul.f32 %v1803_v19, %v1803_v19 }
 0x2de   : > { %v1959_v2 = vadd.f32 %v1958_v24, %v1928_v29  ;;  %v1890_v12 = vadd.f32 %v2171_v26, %v1889_v32 }
 0x2e0   : > { %v1960_v13 = vadd.f32 %v1959_v2, %v1929_v58 }
 0x2f2   : > { %v2174_v27 = vpop.f32.mrb[4].mxu1 }
 0x2f3   : > { %v1813_v28 = vpop.f32.mrb[5].mxu1  ;;  %v1931_v8 = vmul.f32 %v2174_v27, %v2174_v27 }
 0x2f4   : > { %v1891_v7 = vadd.f32 %v1890_v12, %v1813_v28  ;;  %v1930_v42 = vmul.f32 %v1813_v28, %v1813_v28 }
 0x2f6   : > { %v1961_v15 = vadd.f32 %v1960_v13, %v1930_v42  ;;  %v1892_v36 = vadd.f32 %v2174_v27, %v1891_v7 }
 0x2f8   : > { %v1962_v35 = vadd.f32 %v1961_v15, %v1931_v8 }
 0x30a   : > { %v2177_v16 = vpop.f32.mrb[6].mxu1 }
 0x30b   : > { %v1823_v54 = vpop.f32.mrb[7].mxu1  ;;  %v1933_v56 = vmul.f32 %v2177_v16, %v2177_v16 }
 0x30c   : > { %v1893_v18 = vadd.f32 %v1892_v36, %v1823_v54  ;;  %v1932_v48 = vmul.f32 %v1823_v54, %v1823_v54 }
 0x30e   : > { %v1963_v38 = vadd.f32 %v1962_v35, %v1932_v48  ;;  %v1894_v60 = vadd.f32 %v2177_v16, %v1893_v18 }
 0x310   : > { %v1964_v40 = vadd.f32 %v1963_v38, %v1933_v56 }
 0x322   : > { %v2180_v3 = vpop.f32.mrb[8].mxu1 }
 0x323   : > { %v1833_v11 = vpop.f32.mrb[9].mxu1  ;;  %v1935_v6 = vmul.f32 %v2180_v3, %v2180_v3 }
 0x324   : > { %v1895_v23 = vadd.f32 %v1894_v60, %v1833_v11  ;;  %v1934_v41 = vmul.f32 %v1833_v11, %v1833_v11 }
 0x326   : > { %v1965_v20 = vadd.f32 %v1964_v40, %v1934_v41  ;;  %v1896_v55 = vadd.f32 %v2180_v3, %v1895_v23 }
 0x328   : > { %v1966_v57 = vadd.f32 %v1965_v20, %v1935_v6 }
 0x33a   : > { %v2183_v51 = vpop.f32.mrb[10].mxu1 }
 0x33b   : > { %v1843_v49 = vpop.f32.mrb[11].mxu1  ;;  %v1937_v30 = vmul.f32 %v2183_v51, %v2183_v51 }
 0x33c   : > { %v1897_v62 = vadd.f32 %v1896_v55, %v1843_v49  ;;  %v1936_v37 = vmul.f32 %v1843_v49, %v1843_v49 }
 0x33e   : > { %v1967_v10 = vadd.f32 %v1966_v57, %v1936_v37  ;;  %v1898_v1 = vadd.f32 %v2183_v51, %v1897_v62 }
 0x340   : > { %v1968_v17 = vadd.f32 %v1967_v10, %v1937_v30 }
 0x352   : > { %v2186_v50 = vpop.f32.mrb[12].mxu1 }
 0x353   : > { %v1853_v53 = vpop.f32.mrb[13].mxu1  ;;  %v1939_v33 = vmul.f32 %v2186_v50, %v2186_v50 }
 0x354   : > { %v1899_v44 = vadd.f32 %v1898_v1, %v1853_v53  ;;  %v1938_v5 = vmul.f32 %v1853_v53, %v1853_v53 }
 0x356   : > { %v1969_v47 = vadd.f32 %v1968_v17, %v1938_v5  ;;  %v1900_v31 = vadd.f32 %v2186_v50, %v1899_v44 }
 0x358   : > { %v1970_v59 = vadd.f32 %v1969_v47, %v1939_v33 }
 0x35f   : > { %v2189_v39 = vpop.f32.mrb[14].mxu1 }
 0x360   : > { %v1863_v9 = vpop.f32.mrb[15].mxu1  ;;  %v1941_v34 = vmul.f32 %v2189_v39, %v2189_v39 }
 0x361   : > { %v1901_v4 = vadd.f32 %v1900_v31, %v1863_v9  ;;  %v1940_v61 = vmul.f32 %v1863_v9, %v1863_v9 }
 0x363   : > { %v1902_v45 = vadd.f32 %v2189_v39, %v1901_v4  ;;  %v1971_v63 = vadd.f32 %v1970_v59, %v1940_v61 }
 0x365   : > { %v1903_v52 = vrot.slane %v1902_v45, 4  ;;  %v1972_v43 = vadd.f32 %v1971_v63, %v1941_v34 }
 0x367   : > { %v1904_v21 = vadd.f32 %v1903_v52, %v1902_v45  ;;  %v1973_v22 = vrot.slane %v1972_v43, 4 }
 0x369   : > { %v1905_v14 = vrot.slane %v1904_v21, 2  ;;  %v1974_v25 = vadd.f32 %v1973_v22, %v1972_v43 }
 0x36b   : > { %v1906_v46 = vadd.f32 %v1905_v14, %v1904_v21  ;;  %v1975_v0 = vrot.slane %v1974_v25, 2 }
 0x36d   : > { %v1907_v24 = vrot.slane %v1906_v46, 1  ;;  %v1976_v26 = vadd.f32 %v1975_v0, %v1974_v25 }
 0x36f   : > { %v1908_v19 = vadd.f32 %v1907_v24, %v1906_v46  ;;  %v1977_v32 = vrot.slane %v1976_v26, 1 }
 0x371   : > { %1909 = vst [vmem:[%s161_s14] sm:$0x1] %v1908_v19  ;;  %v1978_v29 = vadd.f32 %v1977_v32, %v1976_v26 }
 0x373   : > { %1979 = vst [vmem:[%s161_s14 + $0x1] sm:$0x1] %v1978_v29 }
 0x374 PF: > { %s12_s11 = sadd.s32 1, %s2259_s11   ;;  %s4172_s9 = smov %s2255_s10 }
 0x375   : > { %p9_p5 = scmp.ge.s32.totalorder %s12_s11, 4   ;;  %s4173_s10 = smov %s4175_s12 }
 0x377   :  { %11 = sbr.rel (!%p9_p5) target bundleno = 2 (0x2), region = 59 }

// kernel: upsample_forward.3
= control target key start
LH: loop header
LB: loop body
LE: loop exit
PB: predicated region body
PF: predicated region fallthrough
CT: control target
= control target key end

     0   :  { %s2369_s15 = smov 0   ;;  %s2371_s16 = smov 0   ;;  %s4214_s0 = inlined_call_operand.vmem [shape: f32[2,18,18,4], index: 0, kind: input, shape index: {}]   ;;  %s4215_s1 = inlined_call_operand.vmem [shape: f32[36,128], index: 1, kind: input, shape index: {}]   ;;  %s4216_s2 = inlined_call_operand.vmem [shape: f32[1,128], index: 2, kind: input, shape index: {}]   ;;  %s4217_s3 = inlined_call_operand.vmem [shape: f32[1,128], index: 3, kind: input, shape index: {}]   ;;  %s4218_s4 = inlined_call_operand.vmem [shape: f32[2,256,128], index: 4, kind: output, shape index: {}]  }
   0x1   :  { %s2373_s17 = smov 0  }
   0x2 LB: > { %s26_s18 = sadd.s32 1, %s2330_s16  ;;  %p2128_p0 = scmp.ge.s32.totalorder %s2334_s17, 1  ;;  %s2334_s17 = sphi %s2373_s17, %s14_s17   ;;  %s2330_s16 = sphi %s2371_s16, %s4553_s16   ;;  %s2326_s15 = sphi %s2369_s15, %s4552_s15  }
   0x3   : > { %p28_p1 = scmp.ge.s32.totalorder %s26_s18, 2  ;;  %p176_p2 = scmp.lt.s32.totalorder %s2334_s17, 3 }
   0x5   : > { %s4555_s18 = smov (%p28_p1, %s26_s18), 0  ;;  %p177_p3 = pnand %p2128_p0, %p176_p2 }
   0x7   : > { %180 = sbr.rel (%p177_p3) target bundleno = 869 (0x365), region = 36 }
   0xe   : > { %p206_p4 = scmp.lt.s32.totalorder %s2326_s15, 1  ;;  %vm380_vm0 = vcmask 1046528   ;;  %s2336_s23 = smov 4   ;;  %vm557_vm1 = vcmask 1045504   ;;  %vm1336_vm2 = vcmask 31744   ;;  %vm1369_vm3 = vcmask 64512  }
   0xf   : > { %s2337_s24 = smov 8   ;;  %s2338_s25 = smov 12   ;;  %vm1702_vm4 = vcmask 1043456   ;;  %vm1402_vm5 = vcmask 97280   ;;  %vm1435_vm6 = vcmask 130048   ;;  %vm1468_vm7 = vcmask 162816  }
  0x10   : > { %s4557_s15 = smov (!%p206_p4, %s2326_s15), 1  ;;  %s2339_s26 = smov 16   ;;  %vm1501_vm8 = vcmask 195584   ;;  %vm1534_vm9 = vcmask 228352   ;;  %vm1567_vm10 = vcmask 261120   ;;  %vm1605_vm11 = vcmask 293888  }
  0x11   : > { %s2279_s19 = smul.u32 432, %s4557_s15  ;;  %s2340_s27 = smov 20  }
  0x12   : > { %s2341_s28 = smov 24   ;;  %s2342_s7 = smov 28  }
  0x13   : > { %s2393_s22 = scalar_lea.vmem %s4214_s0, %s2279_s19  ;;  %s2343_s14 = smov 32  }
  0x14   : > { %v227_v0 = vld [vmem:[%s2393_s22 + $0x18] sm:$0xff]  ;;  %v228_v1 = vld [vmem:[%s2393_s22 + $0x20] sm:$0xff]  ;;  %v225_v5 = vld [vmem:[%s2393_s22 + $0x8] sm:$0xff]  ;;  %s2169_s21 = sshll.u32 %s4557_s15, 8 }
  0x15   : > { %v224_v2 = vld [vmem:[%s2393_s22] sm:$0xff]  ;;  %v2398_v3 = vmax.f32 %v227_v0, 0.0  ;;  %v2400_v4 = vmax.f32 %v228_v1, 0.0  ;;  %v2406_v7 = vld [vmem:[%s2393_s22 + $0x28] sm:$0x3]  ;;  %v2408_v8 = vmax.f32 %v225_v5, 0.0 }
  0x16   : > { %v2403_v6 = vmax.f32 %v224_v2, 0.0  ;;  %v4227_v9 = vmax.f32 %v2406_v7, 0.0  ;;  %v2412_v10 = vld [vmem:[%s2393_s22 + $0x10] sm:$0x3]  ;;  %v231_v11 = vld [vmem:[%s2393_s22 + $0x38] sm:$0xff]  ;;  %v233_v27 = vld [vmem:[%s2393_s22 + $0x48] sm:$0xff] }
  0x17   : > { %4356 = vst [vmem:[#allocation2_spill] sm:$0xff] %v2398_v3  ;;  %4357 = vst [vmem:[#allocation3_spill] sm:$0xff] %v2400_v4  ;;  %v230_v12 = vld [vmem:[%s2393_s22 + $0x30] sm:$0xff]  ;;  %v386_v13 = vrot.slane %v2398_v3, 1  ;;  %v387_v14 = vrot.slane %v2400_v4, 1  ;;  %v4228_v16 = vmax.f32 %v2412_v10, 0.0 }
  0x18   : > { %4358 = vst [vmem:[#allocation4_spill] sm:$0xff] %v2403_v6  ;;  %4359 = vst [vmem:[#allocation5_spill] sm:$0xff] %v2408_v8  ;;  %v381_v15 = vrot.slane %v2403_v6, 1  ;;  %v2421_v17 = vld [vmem:[%s2393_s22 + $0x40] sm:$0x3]  ;;  %v382_v18 = vrot.slane %v2408_v8, 1 }
  0x19   : > { %v389_v19 = vrot.slane %v4227_v9, 1  ;;  %v2426_v20 = vmax.f32 %v231_v11, 0.0  ;;  %v4226_v21 = vmax.f32 %v2421_v17, 0.0  ;;  %v234_v22 = vld [vmem:[%s2393_s22 + $0x50] sm:$0xff]  ;;  %v2431_v23 = vsel %vm380_vm0, %v386_v13, %v387_v14  ;;  %v2438_v26 = vld [vmem:[%s2393_s22 + $0x58] sm:$0x3] }
  0x1a   : > { %v384_v24 = vrot.slane %v4228_v16, 1  ;;  %v2435_v25 = vmax.f32 %v230_v12, 0.0  ;;  %465 = vrot.lane.b32.xlu1 %v2431_v23, %s2336_s23  ;;  %v383_v28 = vsel %vm380_vm0, %v381_v15, %v382_v18  ;;  %v2444_v29 = vmax.f32 %v234_v22, 0.0  ;;  %v237_v37 = vld [vmem:[%s2393_s22 + $0x68] sm:$0xff]  ;;  %v2460_v38 = vld [vmem:[%s2393_s22 + $0x70] sm:$0x3] }
  0x1b   : > { %461 = vrot.lane.b32.xlu0 %v383_v28, %s2336_s23  ;;  %v2448_v30 = vsel %vm380_vm0, %v387_v14, %v389_v19  ;;  %v392_v31 = vrot.slane %v2426_v20, 1  ;;  %v394_v32 = vrot.slane %v4226_v21, 1  ;;  %v4225_v33 = vmax.f32 %v2438_v26, 0.0  ;;  %v236_v39 = vld [vmem:[%s2393_s22 + $0x60] sm:$0xff]  ;;  %v2483_v49 = vld [vmem:[%s2393_s22 + $0x88] sm:$0x3] }
  0x1c   : > { %v385_v34 = vsel %vm380_vm0, %v382_v18, %v384_v24  ;;  %v391_v35 = vrot.slane %v2435_v25, 1  ;;  %v2456_v36 = vmax.f32 %v233_v27, 0.0  ;;  %v397_v40 = vrot.slane %v2444_v29, 1  ;;  %v240_v45 = vld [vmem:[%s2393_s22 + $0x80] sm:$0xff]  ;;  %v239_v50 = vld [vmem:[%s2393_s22 + $0x78] sm:$0xff]  ;;  %v242_v61 = vld [vmem:[%s2393_s22 + $0x90] sm:$0xff] }
  0x1d   : > { %v2468_v41 = vsel %vm380_vm0, %v392_v31, %v394_v32  ;;  %v399_v42 = vrot.slane %v4225_v33, 1  ;;  %v2472_v43 = vmax.f32 %v237_v37, 0.0  ;;  %v4223_v44 = vmax.f32 %v2460_v38, 0.0  ;;  %v243_v59 = vld [vmem:[%s2393_s22 + $0x98] sm:$0xff]  ;;  %v2507_v60 = vld [vmem:[%s2393_s22 + $0xa0] sm:$0x3] }
  0x1e   : > { %467 = vrot.lane.b32.xlu1 %v2448_v30, %s2336_s23  ;;  %v2477_v46 = vsel %vm380_vm0, %v391_v35, %v392_v31  ;;  %v396_v47 = vrot.slane %v2456_v36, 1  ;;  %v2480_v48 = vmax.f32 %v236_v39, 0.0  ;;  %v2488_v51 = vmax.f32 %v240_v45, 0.0  ;;  %v246_v5 = vld [vmem:[%s2393_s22 + $0xb0] sm:$0xff]  ;;  %v2525_v11 = vld [vmem:[%s2393_s22 + $0xb8] sm:$0x3] }
  0x1f   : > { %463 = vrot.lane.b32.xlu0 %v385_v34, %s2336_s23  ;;  %4360 = vst [vmem:[#allocation6_spill] sm:$0xff] %v2477_v46  ;;  %v2493_v52 = vsel %vm380_vm0, %v397_v40, %v399_v42  ;;  %v402_v53 = vrot.slane %v2472_v43, 1  ;;  %v404_v54 = vrot.slane %v4223_v44, 1  ;;  %v4222_v55 = vmax.f32 %v2483_v49, 0.0  ;;  %v245_v15 = vld [vmem:[%s2393_s22 + $0xa8] sm:$0xff]  ;;  %v248_v37 = vld [vmem:[%s2393_s22 + $0xc0] sm:$0xff] }
  0x20   : > { %4361 = vst [vmem:[#allocation7_spill] sm:$0xff] %v2493_v52  ;;  %v2500_v56 = vsel %vm380_vm0, %v396_v47, %v397_v40  ;;  %v401_v57 = vrot.slane %v2480_v48, 1  ;;  %v2503_v58 = vmax.f32 %v239_v50, 0.0  ;;  %v407_v62 = vrot.slane %v2488_v51, 1  ;;  %v249_v34 = vld [vmem:[%s2393_s22 + $0xc8] sm:$0xff] }
  0x21   : > { %4362 = vst [vmem:[#allocation8_spill] sm:$0xff] %v2500_v56  ;;  %v2516_v63 = vsel %vm380_vm0, %v402_v53, %v404_v54  ;;  %v409_v0 = vrot.slane %v4222_v55, 1  ;;  %v2520_v1 = vmax.f32 %v243_v59, 0.0  ;;  %v4221_v2 = vmax.f32 %v2507_v60, 0.0  ;;  %v2555_v35 = vld [vmem:[%s2393_s22 + $0xd0] sm:$0x3] }
  0x22   : > { %471 = vrot.lane.b32.xlu1 %v2468_v41, %s2336_s23  ;;  %4363 = vst [vmem:[#allocation9_spill] sm:$0xff] %v2516_v63  ;;  %v2528_v12 = vsel %vm380_vm0, %v401_v57, %v402_v53  ;;  %v406_v13 = vrot.slane %v2503_v58, 1  ;;  %v2531_v14 = vmax.f32 %v242_v61, 0.0  ;;  %v2536_v18 = vmax.f32 %v246_v5, 0.0  ;;  %v252_v57 = vld [vmem:[%s2393_s22 + $0xe0] sm:$0xff]  ;;  %v251_v61 = vld [vmem:[%s2393_s22 + $0xd8] sm:$0xff] }
  0x23   : > { %469 = vrot.lane.b32.xlu0 %v2477_v46, %s2336_s23  ;;  %4364 = vst [vmem:[#allocation10_spill] sm:$0xff] %v2520_v1  ;;  %4365 = vst [vmem:[#allocation11_spill] sm:$0xff] %v2528_v12  ;;  %v4220_v19 = vmax.f32 %v2525_v11, 0.0  ;;  %v2542_v22 = vsel %vm380_vm0, %v407_v62, %v409_v0  ;;  %v412_v24 = vrot.slane %v2520_v1, 1  ;;  %v414_v27 = vrot.slane %v4221_v2, 1  ;;  %v255_v0 = vld [vmem:[%s2393_s22 + $0xf8] sm:$0xff] }
  0x24   : > { %4366 = vst [vmem:[#allocation12_spill] sm:$0xff] %v2542_v22  ;;  %v2548_v28 = vsel %vm380_vm0, %v406_v13, %v407_v62  ;;  %v411_v31 = vrot.slane %v2531_v14, 1  ;;  %v2551_v32 = vmax.f32 %v245_v15, 0.0  ;;  %v417_v39 = vrot.slane %v2536_v18, 1  ;;  %v2579_v59 = vld [vmem:[%s2393_s22 + $0xe8] sm:$0x3] }
  0x25   : > { %4367 = vst [vmem:[#allocation13_spill] sm:$0xff] %v2548_v28  ;;  %v419_v40 = vrot.slane %v4220_v19, 1  ;;  %v2566_v42 = vsel %vm380_vm0, %v412_v24, %v414_v27  ;;  %v2568_v45 = vmax.f32 %v249_v34, 0.0  ;;  %v4219_v47 = vmax.f32 %v2555_v35, 0.0  ;;  %v2597_v27 = vld [vmem:[%s2393_s22 + $0x100] sm:$0x3] }
  0x26   : > { %475 = vrot.lane.b32.xlu1 %v2493_v52, %s2336_s23  ;;  %4368 = vst [vmem:[#allocation14_spill] sm:$0xff] %v2566_v42  ;;  %v2572_v50 = vsel %vm380_vm0, %v411_v31, %v412_v24  ;;  %v416_v53 = vrot.slane %v2551_v32, 1  ;;  %v2575_v54 = vmax.f32 %v248_v37, 0.0  ;;  %v2593_v15 = vmax.f32 %v252_v57, 0.0  ;;  %v258_v55 = vld [vmem:[%s2393_s22 + $0x110] sm:$0xff] }
  0x27   : > { %473 = vrot.lane.b32.xlu0 %v2500_v56, %s2336_s23  ;;  %4369 = vst [vmem:[#allocation15_spill] sm:$0xff] %v2568_v45  ;;  %4370 = vst [vmem:[#allocation16_spill] sm:$0xff] %v2572_v50  ;;  %v2585_v62 = vsel %vm380_vm0, %v417_v39, %v419_v40  ;;  %v422_v5 = vrot.slane %v2568_v45, 1  ;;  %v424_v13 = vrot.slane %v4219_v47, 1  ;;  %v4224_v24 = vmax.f32 %v2579_v59, 0.0  ;;  %v254_v40 = vld [vmem:[%s2393_s22 + $0xf0] sm:$0xff] }
  0x28   : > { %4371 = vst [vmem:[#allocation17_spill] sm:$0xff] %v2575_v54  ;;  %4372 = vst [vmem:[#allocation18_spill] sm:$0xff] %v2585_v62  ;;  %v2600_v31 = vsel %vm380_vm0, %v416_v53, %v417_v39  ;;  %v421_v34 = vrot.slane %v2575_v54, 1  ;;  %v2603_v37 = vmax.f32 %v251_v61, 0.0  ;;  %v2608_v57 = vmax.f32 %v255_v0, 0.0  ;;  %v270_v56 = vld [vmem:[%s2393_s22 + $0x170] sm:$0xff] }
  0x29   : > { %4373 = vst [vmem:[#allocation19_spill] sm:$0xff] %v2593_v15  ;;  %4374 = vst [vmem:[#allocation20_spill] sm:$0xff] %v2600_v31  ;;  %v4229_v47 = vmax.f32 %v2597_v27, 0.0  ;;  %v2614_v19 = vsel %vm380_vm0, %v422_v5, %v424_v13  ;;  %v427_v39 = vrot.slane %v2593_v15, 1  ;;  %v429_v53 = vrot.slane %v4224_v24, 1  ;;  %v257_v13 = vld [vmem:[%s2393_s22 + $0x108] sm:$0xff] }
  0x2a   : > { %479 = vrot.lane.b32.xlu1 %v2516_v63, %s2336_s23  ;;  %4375 = vst [vmem:[#allocation21_spill] sm:$0xff] %v2603_v37  ;;  %4376 = vst [vmem:[#allocation22_spill] sm:$0xff] %v2614_v19  ;;  %v2620_v61 = vsel %vm380_vm0, %v421_v34, %v422_v5  ;;  %v426_v0 = vrot.slane %v2603_v37, 1  ;;  %v2623_v2 = vmax.f32 %v254_v40, 0.0  ;;  %v2627_v44 = vld [vmem:[%s2393_s22 + $0x118] sm:$0x3] }
  0x2b   : > { %477 = vrot.lane.b32.xlu0 %v2528_v12, %s2336_s23  ;;  %4377 = vst [vmem:[#allocation23_spill] sm:$0xff] %v2620_v61  ;;  %v432_v24 = vrot.slane %v2608_v57, 1  ;;  %v434_v5 = vrot.slane %v4229_v47, 1  ;;  %v2638_v34 = vsel %vm380_vm0, %v427_v39, %v429_v53  ;;  %v2640_v40 = vmax.f32 %v258_v55, 0.0  ;;  %v261_v47 = vld [vmem:[%s2393_s22 + $0x128] sm:$0xff]  ;;  %v264_v53 = vld [vmem:[%s2393_s22 + $0x140] sm:$0xff] }
  0x2c   : > { %4378 = vst [vmem:[#allocation24_spill] sm:$0xff] %v2638_v34  ;;  %v4244_v33 = vmax.f32 %v2627_v44, 0.0  ;;  %v2644_v21 = vsel %vm380_vm0, %v426_v0, %v427_v39  ;;  %v431_v9 = vrot.slane %v2623_v2, 1  ;;  %v2647_v16 = vmax.f32 %v257_v13, 0.0  ;;  %v2699_v12 = vld [vmem:[%s2393_s22 + $0x160] sm:$0x3] }
  0x2d   : > { %4379 = vst [vmem:[#allocation25_spill] sm:$0xff] %v2644_v21  ;;  %v2657_v55 = vsel %vm380_vm0, %v432_v24, %v434_v5  ;;  %v437_v39 = vrot.slane %v2640_v40, 1  ;;  %v2665_v13 = vmax.f32 %v261_v47, 0.0  ;;  %v2680_v47 = vmax.f32 %v264_v53, 0.0  ;;  %v2723_v52 = vld [vmem:[%s2393_s22 + $0x178] sm:$0x3] }
  0x2e   : > { %483 = vrot.lane.b32.xlu1 %v2542_v22, %s2336_s23  ;;  %4380 = vst [vmem:[#allocation26_spill] sm:$0xff] %v2657_v55  ;;  %v439_v0 = vrot.slane %v4244_v33, 1  ;;  %v2672_v5 = vsel %vm380_vm0, %v431_v9, %v432_v24  ;;  %v263_v22 = vld [vmem:[%s2393_s22 + $0x138] sm:$0xff] }
  0x2f   : > { %481 = vrot.lane.b32.xlu0 %v2548_v28, %s2336_s23  ;;  %4381 = vst [vmem:[#allocation27_spill] sm:$0xff] %v2672_v5  ;;  %v442_v9 = vrot.slane %v2665_v13, 1  ;;  %v2695_v63 = vmax.f32 %v263_v22, 0.0  ;;  %v267_v33 = vld [vmem:[%s2393_s22 + $0x158] sm:$0xff] }
  0x30   : > { %v2712_v22 = vmax.f32 %v267_v33, 0.0 }
  0x32   : > { %487 = vrot.lane.b32.xlu1 %v2566_v42, %s2336_s23  ;;  %v436_v42 = vrot.slane %v2647_v16, 1  ;;  %v452_v33 = vrot.slane %v2712_v22, 1 }
  0x33   : > { %485 = vrot.lane.b32.xlu0 %v2572_v50, %s2336_s23 }
  0x34   : > { %v2692_v28 = vsel %vm380_vm0, %v436_v42, %v437_v39 }
  0x35   : > { %4384 = vst [vmem:[#allocation29_spill] sm:$0xff] %v2692_v28 }
  0x36   : > { %491 = vrot.lane.b32.xlu1 %v2585_v62, %s2336_s23  ;;  %v2686_v62 = vsel %vm380_vm0, %v437_v39, %v439_v0  ;;  %v266_v0 = vld [vmem:[%s2393_s22 + $0x150] sm:$0xff] }
  0x37   : > { %489 = vrot.lane.b32.xlu0 %v2600_v31, %s2336_s23  ;;  %v2669_v31 = vld [vmem:[%s2393_s22 + $0x148] sm:$0x3]  ;;  %4382 = vst [vmem:[#allocation28_spill] sm:$0xff] %v2686_v62 }
  0x3a   : > { %495 = vrot.lane.b32.xlu1 %v2614_v19, %s2336_s23  ;;  %v2651_v19 = vld [vmem:[%s2393_s22 + $0x130] sm:$0x3] }
  0x3b   : > { %493 = vrot.lane.b32.xlu0 %v2620_v61, %s2336_s23  ;;  %v260_v61 = vld [vmem:[%s2393_s22 + $0x120] sm:$0xff]  ;;  %v4383_v24 = vmax.f32 %v2651_v19, 0.0 }
  0x3c   : > { %v2675_v50 = vmax.f32 %v260_v61, 0.0 }
  0x3d   : > { %v444_v61 = vrot.slane %v4383_v24, 1  ;;  %v4385_v24 = vmax.f32 %v2669_v31, 0.0 }
  0x3e   : > { %499 = vrot.lane.b32.xlu1 %v2638_v34, %s2336_s23  ;;  %v441_v53 = vrot.slane %v2675_v50, 1  ;;  %v2719_v34 = vmax.f32 %v266_v0, 0.0  ;;  %v4276_v0 = vmax.f32 %v2723_v52, 0.0 }
  0x3f   : > { %497 = vrot.lane.b32.xlu0 %v2644_v21, %s2336_s23  ;;  %v449_v42 = vrot.slane %v4385_v24, 1  ;;  %v2710_v39 = vsel %vm380_vm0, %v442_v9, %v444_v61  ;;  %v269_v24 = vld [vmem:[%s2393_s22 + $0x168] sm:$0xff] }
  0x40   : > { %4386 = vst [vmem:[#allocation30_spill] sm:$0xff] %v2710_v39  ;;  %v2716_v21 = vsel %vm380_vm0, %v441_v53, %v442_v9  ;;  %v2736_v53 = vmax.f32 %v270_v56, 0.0  ;;  %v2743_v46 = vmax.f32 %v269_v24, 0.0 }
  0x41   : > { %4387 = vst [vmem:[#allocation31_spill] sm:$0xff] %v2716_v21 }
  0x42   : > { %503 = vrot.lane.b32.xlu1 %v2657_v55, %s2336_s23  ;;  %v447_v55 = vrot.slane %v2680_v47, 1  ;;  %4389 = vst [vmem:[#allocation33_spill] sm:$0xff] %v2736_v53  ;;  %v457_v56 = vrot.slane %v2736_v53, 1 }
  0x43   : > { %501 = vrot.lane.b32.xlu0 %v2672_v5, %s2336_s23  ;;  %v4271_v5 = vmax.f32 %v2699_v12, 0.0 }
  0x44   : > { %v2729_v61 = vsel %vm380_vm0, %v447_v55, %v449_v42 }
  0x45   : > { %4388 = vst [vmem:[#allocation32_spill] sm:$0xff] %v2729_v61  ;;  %v454_v9 = vrot.slane %v4271_v5, 1  ;;  %v459_v5 = vrot.slane %v4276_v0, 1 }
  0x46   : > { %507 = vrot.lane.b32.xlu1 %v2686_v62, %s2336_s23  ;;  %v446_v62 = vrot.slane %v2695_v63, 1 }
  0x47   : > { %505 = vrot.lane.b32.xlu0 %v2692_v28, %s2336_s23  ;;  %v2750_v42 = vsel %vm380_vm0, %v452_v33, %v454_v9  ;;  %v2764_v24 = vsel %vm380_vm0, %v457_v56, %v459_v5  ;;  %v559_v9 = vrot.slane %v2408_v8, 2  ;;  %v4410_v8 = vmax.f32 %v2525_v11, 0.0 }
  0x48   : > { %v2740_v28 = vsel %vm380_vm0, %v446_v62, %v447_v55  ;;  %4391 = vst [vmem:[#allocation35_spill] sm:$0xff] %v2750_v42  ;;  %v456_v55 = vrot.slane %v2743_v46, 1  ;;  %4393 = vst [vmem:[#allocation37_spill] sm:$0xff] %v2764_v24 }
  0x49   : > { %4390 = vst [vmem:[#allocation34_spill] sm:$0xff] %v2740_v28 }
  0x4a   : > { %511 = vrot.lane.b32.xlu1 %v2710_v39, %s2336_s23  ;;  %v451_v39 = vrot.slane %v2719_v34, 1  ;;  %v2770_v0 = vsel %vm380_vm0, %v456_v55, %v457_v56  ;;  %v563_v56 = vrot.slane %v2398_v3, 2 }
  0x4b   : > { %509 = vrot.lane.b32.xlu0 %v2716_v21, %s2336_s23  ;;  %4395 = vst [vmem:[#allocation38_spill] sm:$0xff] %v2770_v0 }
  0x4c   : > { %v2756_v62 = vsel %vm380_vm0, %v451_v39, %v452_v33  ;;  %v558_v39 = vrot.slane %v2403_v6, 2  ;;  %v564_v33 = vrot.slane %v2400_v4, 2  ;;  %v633_v6 = vrot.slane %v2743_v46, 2 }
  0x4d   : > { %4392 = vst [vmem:[#allocation36_spill] sm:$0xff] %v2756_v62 }
  0x4e   : > { %515 = vrot.lane.b32.xlu1 %v2729_v61, %s2336_s23  ;;  %v4394_v61 = vmax.f32 %v2412_v10, 0.0 }
  0x4f   : > { %513 = vrot.lane.b32.xlu0 %v2740_v28, %s2336_s23 }
  0x50   : > { %v561_v28 = vrot.slane %v4394_v61, 2  ;;  %v560_v61 = vsel %vm557_vm1, %v558_v39, %v559_v9  ;;  %v574_v39 = vrot.slane %v2444_v29, 2 }
  0x52   : > { %519 = vrot.lane.b32.xlu1 %v2750_v42, %s2336_s23  ;;  %v562_v5 = vsel %vm557_vm1, %v559_v9, %v561_v28  ;;  %v4396_v42 = vmax.f32 %v2406_v7, 0.0  ;;  %v4397_v28 = vmax.f32 %v2421_v17, 0.0  ;;  %v2792_v7 = vsel %vm557_vm1, %v563_v56, %v564_v33 }
  0x53   : > { %517 = vrot.lane.b32.xlu0 %v2756_v62, %s2336_s23  ;;  %v4401_v56 = vmax.f32 %v2460_v38, 0.0  ;;  %v4407_v62 = vmax.f32 %v2507_v60, 0.0  ;;  %v596_v60 = vrot.slane %v4410_v8, 2 }
  0x54   : > { %v566_v10 = vrot.slane %v4396_v42, 2  ;;  %v568_v42 = vrot.slane %v2435_v25, 2 }
  0x56   : > { %523 = vrot.lane.b32.xlu1 %v2764_v24, %s2336_s23  ;;  %v2786_v55 = vsel %vm557_vm1, %v564_v33, %v566_v10  ;;  %v569_v24 = vrot.slane %v2426_v20, 2  ;;  %v573_v33 = vrot.slane %v2456_v36, 2 }
  0x57   : > { %521 = vrot.lane.b32.xlu0 %v2770_v0, %s2336_s23  ;;  %v571_v0 = vrot.slane %v4397_v28, 2 }
  0x58   : > { %v2806_v10 = vsel %vm557_vm1, %v568_v42, %v569_v24  ;;  %v2820_v28 = vsel %vm557_vm1, %v573_v33, %v574_v39 }
  0x59   : > { %v2800_v9 = vsel %vm557_vm1, %v569_v24, %v571_v0  ;;  %v579_v0 = vrot.slane %v2472_v43, 2  ;;  %4402 = vst [vmem:[#allocation41_spill] sm:$0xff] %v2820_v28  ;;  %v578_v24 = vrot.slane %v2480_v48, 2 }
  0x5a   : > { %640 = vrot.lane.b32.xlu1 %v562_v5, %s2337_s24  ;;  %4398 = vst [vmem:[#allocation39_spill] sm:$0xff] %v2800_v9  ;;  %v4399_v5 = vmax.f32 %v2438_v26, 0.0  ;;  %v581_v26 = vrot.slane %v4401_v56, 2 }
  0x5b   : > { %638 = vrot.lane.b32.xlu0 %v560_v61, %s2337_s24  ;;  %v2834_v56 = vsel %vm557_vm1, %v578_v24, %v579_v0 }
  0x5c   : > { %v576_v17 = vrot.slane %v4399_v5, 2  ;;  %v2828_v42 = vsel %vm557_vm1, %v579_v0, %v581_v26  ;;  %v584_v5 = vrot.slane %v2488_v51, 2  ;;  %4405 = vst [vmem:[#allocation43_spill] sm:$0xff] %v2834_v56  ;;  %v589_v26 = vrot.slane %v2520_v1, 2 }
  0x5d   : > { %4403 = vst [vmem:[#allocation42_spill] sm:$0xff] %v2828_v42  ;;  %v588_v0 = vrot.slane %v2531_v14, 2 }
  0x5e   : > { %644 = vrot.lane.b32.xlu1 %v2786_v55, %s2337_s24  ;;  %v2814_v61 = vsel %vm557_vm1, %v574_v39, %v576_v17  ;;  %v4404_v17 = vmax.f32 %v2483_v49, 0.0  ;;  %v583_v39 = vrot.slane %v2503_v58, 2  ;;  %v591_v49 = vrot.slane %v4407_v62, 2 }
  0x5f   : > { %642 = vrot.lane.b32.xlu0 %v2792_v7, %s2337_s24  ;;  %4400 = vst [vmem:[#allocation40_spill] sm:$0xff] %v2814_v61  ;;  %v2862_v62 = vsel %vm557_vm1, %v588_v0, %v589_v26 }
  0x60   : > { %v586_v38 = vrot.slane %v4404_v17, 2  ;;  %v2848_v17 = vsel %vm557_vm1, %v583_v39, %v584_v5  ;;  %v2856_v24 = vsel %vm557_vm1, %v589_v26, %v591_v49  ;;  %4411 = vst [vmem:[#allocation47_spill] sm:$0xff] %v2862_v62  ;;  %v599_v49 = vrot.slane %v2568_v45, 2 }
  0x61   : > { %4408 = vst [vmem:[#allocation45_spill] sm:$0xff] %v2848_v17  ;;  %4409 = vst [vmem:[#allocation46_spill] sm:$0xff] %v2856_v24  ;;  %v598_v26 = vrot.slane %v2575_v54, 2 }
  0x62   : > { %648 = vrot.lane.b32.xlu1 %v2800_v9, %s2337_s24  ;;  %v2842_v33 = vsel %vm557_vm1, %v584_v5, %v586_v38  ;;  %v594_v38 = vrot.slane %v2536_v18, 2  ;;  %v593_v5 = vrot.slane %v2551_v32, 2 }
  0x63   : > { %646 = vrot.lane.b32.xlu0 %v2806_v10, %s2337_s24  ;;  %4406 = vst [vmem:[#allocation44_spill] sm:$0xff] %v2842_v33 }
  0x64   : > { %v2870_v39 = vsel %vm557_vm1, %v594_v38, %v596_v60  ;;  %v2876_v8 = vsel %vm557_vm1, %v593_v5, %v594_v38  ;;  %v604_v60 = vrot.slane %v2593_v15, 2  ;;  %v603_v38 = vrot.slane %v2603_v37, 2 }
  0x65   : > { %4412 = vst [vmem:[#allocation48_spill] sm:$0xff] %v2870_v39  ;;  %4414 = vst [vmem:[#allocation49_spill] sm:$0xff] %v2876_v8 }
  0x66   : > { %652 = vrot.lane.b32.xlu1 %v2814_v61, %s2337_s24 }
  0x67   : > { %650 = vrot.lane.b32.xlu0 %v2820_v28, %s2337_s24  ;;  %v272_v28 = vld [vmem:[%s2393_s22 + $0x180] sm:$0xff] }
  0x6a   : > { %656 = vrot.lane.b32.xlu1 %v2828_v42, %s2337_s24 }
  0x6b   : > { %654 = vrot.lane.b32.xlu0 %v2834_v56, %s2337_s24 }
  0x6e   : > { %660 = vrot.lane.b32.xlu1 %v2842_v33, %s2337_s24  ;;  %v4413_v33 = vmax.f32 %v2555_v35, 0.0 }
  0x6f   : > { %658 = vrot.lane.b32.xlu0 %v2848_v17, %s2337_s24 }
  0x70   : > { %v601_v11 = vrot.slane %v4413_v33, 2  ;;  %v2890_v33 = vsel %vm557_vm1, %v598_v26, %v599_v49 }
  0x71   : > { %4417 = vst [vmem:[#allocation51_spill] sm:$0xff] %v2890_v33 }
  0x72   : > { %664 = vrot.lane.b32.xlu1 %v2856_v24, %s2337_s24  ;;  %v2884_v0 = vsel %vm557_vm1, %v599_v49, %v601_v11  ;;  %v4416_v24 = vmax.f32 %v2579_v59, 0.0  ;;  %v609_v11 = vrot.slane %v2608_v57, 2  ;;  %v608_v49 = vrot.slane %v2623_v2, 2 }
  0x73   : > { %662 = vrot.lane.b32.xlu0 %v2862_v62, %s2337_s24  ;;  %4415 = vst [vmem:[#allocation50_spill] sm:$0xff] %v2884_v0  ;;  %v4430_v62 = vmax.f32 %v2699_v12, 0.0  ;;  %v634_v12 = vrot.slane %v2736_v53, 2 }
  0x74   : > { %v606_v35 = vrot.slane %v4416_v24, 2  ;;  %v2904_v24 = vsel %vm557_vm1, %v603_v38, %v604_v60 }
  0x75   : > { %4420 = vst [vmem:[#allocation53_spill] sm:$0xff] %v2904_v24 }
  0x76   : > { %668 = vrot.lane.b32.xlu1 %v2870_v39, %s2337_s24  ;;  %v2898_v5 = vsel %vm557_vm1, %v604_v60, %v606_v35  ;;  %v4419_v39 = vmax.f32 %v2597_v27, 0.0  ;;  %v614_v35 = vrot.slane %v2640_v40, 2  ;;  %v613_v60 = vrot.slane %v2647_v16, 2 }
  0x77   : > { %666 = vrot.lane.b32.xlu0 %v2876_v8, %s2337_s24  ;;  %4418 = vst [vmem:[#allocation52_spill] sm:$0xff] %v2898_v5  ;;  %v4427_v8 = vmax.f32 %v2669_v31, 0.0  ;;  %v631_v31 = vrot.slane %v4430_v62, 2  ;;  %v4435_v62 = vmax.f32 %v2723_v52, 0.0 }
  0x78   : > { %v611_v59 = vrot.slane %v4419_v39, 2  ;;  %v2918_v39 = vsel %vm557_vm1, %v608_v49, %v609_v11 }
  0x7a   : > { %672 = vrot.lane.b32.xlu1 %v2884_v0, %s2337_s24  ;;  %v2912_v26 = vsel %vm557_vm1, %v609_v11, %v611_v59  ;;  %v4422_v0 = vmax.f32 %v2627_v44, 0.0  ;;  %v619_v59 = vrot.slane %v2665_v13, 2  ;;  %v618_v11 = vrot.slane %v2675_v50, 2 }
  0x7b   : > { %670 = vrot.lane.b32.xlu0 %v2890_v33, %s2337_s24  ;;  %4421 = vst [vmem:[#allocation54_spill] sm:$0xff] %v2912_v26  ;;  %v4424_v33 = vmax.f32 %v2651_v19, 0.0  ;;  %v626_v19 = vrot.slane %v4427_v8, 2 }
  0x7c   : > { %v616_v27 = vrot.slane %v4422_v0, 2  ;;  %v2932_v0 = vsel %vm557_vm1, %v613_v60, %v614_v35 }
  0x7d   : > { %v621_v44 = vrot.slane %v4424_v33, 2  ;;  %4425 = vst [vmem:[#allocation56_spill] sm:$0xff] %v2932_v0  ;;  %v2946_v33 = vsel %vm557_vm1, %v618_v11, %v619_v59  ;;  %v628_v11 = vrot.slane %v2719_v34, 2 }
  0x7e   : > { %676 = vrot.lane.b32.xlu1 %v2898_v5, %s2337_s24  ;;  %v2926_v38 = vsel %vm557_vm1, %v614_v35, %v616_v27  ;;  %v624_v27 = vrot.slane %v2680_v47, 2  ;;  %4428 = vst [vmem:[#allocation58_spill] sm:$0xff] %v2946_v33  ;;  %v623_v35 = vrot.slane %v2695_v63, 2 }
  0x7f   : > { %674 = vrot.lane.b32.xlu0 %v2904_v24, %s2337_s24  ;;  %4423 = vst [vmem:[#allocation55_spill] sm:$0xff] %v2926_v38  ;;  %v2940_v49 = vsel %vm557_vm1, %v619_v59, %v621_v44  ;;  %v629_v44 = vrot.slane %v2712_v22, 2 }
  0x80   : > { %4426 = vst [vmem:[#allocation57_spill] sm:$0xff] %v2940_v49  ;;  %v2954_v60 = vsel %vm557_vm1, %v624_v27, %v626_v19  ;;  %v2962_v59 = vsel %vm557_vm1, %v623_v35, %v624_v27 }
  0x81   : > { %4429 = vst [vmem:[#allocation59_spill] sm:$0xff] %v2954_v60  ;;  %4432 = vst [vmem:[#allocation61_spill] sm:$0xff] %v2962_v59  ;;  %v2972_v19 = vsel %vm557_vm1, %v629_v44, %v631_v31  ;;  %v2980_v35 = vsel %vm557_vm1, %v628_v11, %v629_v44 }
  0x82   : > { %680 = vrot.lane.b32.xlu1 %v2912_v26, %s2337_s24  ;;  %4434 = vst [vmem:[#allocation63_spill] sm:$0xff] %v2972_v19  ;;  %4437 = vst [vmem:[#allocation65_spill] sm:$0xff] %v2980_v35 }
  0x83   : > { %678 = vrot.lane.b32.xlu0 %v2918_v39, %s2337_s24 }
  0x86   : > { %684 = vrot.lane.b32.xlu1 %v2926_v38, %s2337_s24  ;;  %v273_v38 = vld [vmem:[%s2393_s22 + $0x188] sm:$0xff] }
  0x87   : > { %682 = vrot.lane.b32.xlu0 %v2932_v0, %s2337_s24  ;;  %v3123_v26 = vmax.f32 %v273_v38, 0.0 }
  0x89   : > { %4450 = vst [vmem:[#allocation78_spill] sm:$0xff] %v3123_v26 }
  0x8a   : > { %688 = vrot.lane.b32.xlu1 %v2940_v49, %s2337_s24 }
  0x8b   : > { %686 = vrot.lane.b32.xlu0 %v2946_v33, %s2337_s24 }
  0x8c   : > { %v2959_v8 = vpop.permute.xlu1 %465 }
  0x8d   : > { %4431 = vst [vmem:[#allocation60_spill] sm:$0xff] %v2959_v8  ;;  %v2965_v17 = vpop.permute.xlu0 %461  ;;  %v636_v8 = vrot.slane %v4435_v62, 2  ;;  %v2995_v62 = vsel %vm557_vm1, %v633_v6, %v634_v12 }
  0x8e   : > { %4433 = vst [vmem:[#allocation62_spill] sm:$0xff] %v2965_v17  ;;  %692 = vrot.lane.b32.xlu1 %v2954_v60, %s2337_s24  ;;  %4440 = vst [vmem:[#allocation68_spill] sm:$0xff] %v2995_v62 }
  0x8f   : > { %690 = vrot.lane.b32.xlu0 %v2962_v59, %s2337_s24  ;;  %v2990_v31 = vsel %vm557_vm1, %v634_v12, %v636_v8 }
  0x90   : > { %v2977_v27 = vpop.permute.xlu1 %467  ;;  %4439 = vst [vmem:[#allocation67_spill] sm:$0xff] %v2990_v31 }
  0x91   : > { %4436 = vst [vmem:[#allocation64_spill] sm:$0xff] %v2977_v27  ;;  %v2983_v17 = vpop.permute.xlu0 %463 }
  0x92   : > { %4438 = vst [vmem:[#allocation66_spill] sm:$0xff] %v2983_v17  ;;  %696 = vrot.lane.b32.xlu1 %v2972_v19, %s2337_s24 }
  0x93   : > { %694 = vrot.lane.b32.xlu0 %v2980_v35, %s2337_s24 }
  0x94   : > { %v2992_v52 = vpop.permute.xlu1 %471 }
  0x95   : > { %v2997_v44 = vpop.permute.xlu0 %469 }
  0x96   : > { %700 = vrot.lane.b32.xlu1 %v2990_v31, %s2337_s24 }
  0x97   : > { %698 = vrot.lane.b32.xlu0 %v2995_v62, %s2337_s24 }
  0x98   : > { %v3003_v11 = vpop.permute.xlu1 %475 }
  0x99   : > { %v3005_v19 = vpop.permute.xlu0 %473 }
  0x9a   : > { %738 = vrot.lane.b32.xlu1 %v2400_v4, %s2338_s25 }
  0x9b   : > { %736 = vrot.lane.b32.xlu0 %v2398_v3, %s2338_s25 }
  0x9c   : > { %v3011_v6 = vpop.permute.xlu1 %479 }
  0x9d   : > { %v3013_v8 = vpop.permute.xlu0 %477 }
  0x9e   : > { %742 = vrot.lane.b32.xlu1 %v2426_v20, %s2338_s25 }
  0x9f   : > { %740 = vrot.lane.b32.xlu0 %v2435_v25, %s2338_s25 }
  0xa0   : > { %v3019_v12 = vpop.permute.xlu1 %483 }
  0xa1   : > { %v3021_v31 = vpop.permute.xlu0 %481 }
  0xa2   : > { %746 = vrot.lane.b32.xlu1 %v2444_v29, %s2338_s25 }
  0xa3   : > { %744 = vrot.lane.b32.xlu0 %v2456_v36, %s2338_s25 }
  0xa4   : > { %v3027_v62 = vpop.permute.xlu1 %487 }
  0xa5   : > { %v3029_v4 = vpop.permute.xlu0 %485 }
  0xa6   : > { %750 = vrot.lane.b32.xlu1 %v2472_v43, %s2338_s25 }
  0xa7   : > { %748 = vrot.lane.b32.xlu0 %v2480_v48, %s2338_s25 }
  0xa8   : > { %v3035_v27 = vpop.permute.xlu1 %491 }
  0xa9   : > { %v3037_v35 = vpop.permute.xlu0 %489 }
  0xaa   : > { %754 = vrot.lane.b32.xlu1 %v2488_v51, %s2338_s25 }
  0xab   : > { %752 = vrot.lane.b32.xlu0 %v2503_v58, %s2338_s25 }
  0xac   : > { %v3043_v3 = vpop.permute.xlu1 %495 }
  0xad   : > { %4441 = vst [vmem:[#allocation69_spill] sm:$0xff] %v3043_v3  ;;  %v3045_v60 = vpop.permute.xlu0 %493 }
  0xae   : > { %4442 = vst [vmem:[#allocation70_spill] sm:$0xff] %v3045_v60  ;;  %758 = vrot.lane.b32.xlu1 %v2520_v1, %s2338_s25 }
  0xaf   : > { %756 = vrot.lane.b32.xlu0 %v2531_v14, %s2338_s25 }
  0xb0   : > { %v3051_v17 = vpop.permute.xlu1 %499 }
  0xb1   : > { %4443 = vst [vmem:[#allocation71_spill] sm:$0xff] %v3051_v17  ;;  %v3053_v59 = vpop.permute.xlu0 %497 }
  0xb2   : > { %4444 = vst [vmem:[#allocation72_spill] sm:$0xff] %v3053_v59  ;;  %762 = vrot.lane.b32.xlu1 %v2536_v18, %s2338_s25 }
  0xb3   : > { %760 = vrot.lane.b32.xlu0 %v2551_v32, %s2338_s25 }
  0xb4   : > { %v3059_v42 = vpop.permute.xlu1 %503 }
  0xb5   : > { %v3061_v3 = vpop.permute.xlu0 %501 }
  0xb6   : > { %766 = vrot.lane.b32.xlu1 %v2568_v45, %s2338_s25 }
  0xb7   : > { %764 = vrot.lane.b32.xlu0 %v2575_v54, %s2338_s25 }
  0xb8   : > { %v3067_v60 = vpop.permute.xlu1 %507 }
  0xb9   : > { %v3069_v17 = vpop.permute.xlu0 %505 }
  0xba   : > { %770 = vrot.lane.b32.xlu1 %v2593_v15, %s2338_s25 }
  0xbb   : > { %768 = vrot.lane.b32.xlu0 %v2603_v37, %s2338_s25 }
  0xbc   : > { %v3075_v59 = vpop.permute.xlu1 %511 }
  0xbd   : > { %v3077_v49 = vpop.permute.xlu0 %509 }
  0xbe   : > { %774 = vrot.lane.b32.xlu1 %v2608_v57, %s2338_s25 }
  0xbf   : > { %772 = vrot.lane.b32.xlu0 %v2623_v2, %s2338_s25 }
  0xc0   : > { %v3083_v45 = vpop.permute.xlu1 %515 }
  0xc1   : > { %v3085_v54 = vpop.permute.xlu0 %513 }
  0xc2   : > { %778 = vrot.lane.b32.xlu1 %v2640_v40, %s2338_s25 }
  0xc3   : > { %776 = vrot.lane.b32.xlu0 %v2647_v16, %s2338_s25 }
  0xc4   : > { %v3091_v15 = vpop.permute.xlu1 %519 }
  0xc5   : > { %v3093_v37 = vpop.permute.xlu0 %517 }
  0xc6   : > { %782 = vrot.lane.b32.xlu1 %v2665_v13, %s2338_s25 }
  0xc7   : > { %780 = vrot.lane.b32.xlu0 %v2675_v50, %s2338_s25 }
  0xc8   : > { %v3099_v56 = vpop.permute.xlu1 %523 }
  0xc9   : > { %v3101_v33 = vpop.permute.xlu0 %521 }
  0xca   : > { %4445 = vst [vmem:[#allocation73_spill] sm:$0xff] %v3101_v33  ;;  %786 = vrot.lane.b32.xlu1 %v2680_v47, %s2338_s25 }
  0xcb   : > { %784 = vrot.lane.b32.xlu0 %v2695_v63, %s2338_s25 }
  0xcc   : > { %v3107_v21 = vpop.permute.xlu1 %640 }
  0xcd   : > { %4446 = vst [vmem:[#allocation74_spill] sm:$0xff] %v3107_v21  ;;  %v3109_v61 = vpop.permute.xlu0 %638  ;;  %v3127_v21 = vmax.f32 %v272_v28, 0.0  ;;  %v1344_v28 = vsel %vm1336_vm2, %v2444_v29, %v3003_v11  ;;  %v1346_v11 = vsel %vm1336_vm2, %v2472_v43, %v3011_v6 }
  0xce   : > { %4447 = vst [vmem:[#allocation75_spill] sm:$0xff] %v3109_v61  ;;  %790 = vrot.lane.b32.xlu1 %v2712_v22, %s2338_s25  ;;  %v1342_v61 = vsel %vm1336_vm2, %v2426_v20, %v2992_v52 }
  0xcf   : > { %788 = vrot.lane.b32.xlu0 %v2719_v34, %s2338_s25  ;;  %4451 = vst [vmem:[#allocation79_spill] sm:$0xff] %v3127_v21 }
  0xd0   : > { %v3116_v0 = vpop.permute.xlu1 %644 }
  0xd1   : > { %4448 = vst [vmem:[#allocation76_spill] sm:$0xff] %v3116_v0  ;;  %v3119_v9 = vpop.permute.xlu0 %642 }
  0xd2   : > { %4449 = vst [vmem:[#allocation77_spill] sm:$0xff] %v3119_v9  ;;  %794 = vrot.lane.b32.xlu1 %v2736_v53, %s2338_s25  ;;  %v1341_v9 = vsel %vm1336_vm2, %v2435_v25, %v2997_v44 }
  0xd3   : > { %792 = vrot.lane.b32.xlu0 %v2743_v46, %s2338_s25 }
  0xd4   : > { %v649_v0 = vpop.permute.xlu1 %648 }
  0xd5   : > { %v3136_v33 = vsel %vm1369_vm3, %v1342_v61, %v649_v0  ;;  %v647_v38 = vpop.permute.xlu0 %646  ;;  %v1343_v61 = vsel %vm1336_vm2, %v2456_v36, %v3005_v19  ;;  %v1345_v19 = vsel %vm1336_vm2, %v2480_v48, %v3013_v8  ;;  %v1347_v8 = vsel %vm1336_vm2, %v2503_v58, %v3021_v31 }
  0xd6   : > { %v3139_v53 = vsel %vm1369_vm3, %v1341_v9, %v647_v38  ;;  %798 = vrot.lane.b32.xlu1 %v3123_v26, %s2338_s25  ;;  %v1349_v31 = vsel %vm1336_vm2, %v2531_v14, %v3029_v4  ;;  %v1351_v4 = vsel %vm1336_vm2, %v2551_v32, %v3037_v35 }
  0xd7   : > { %796 = vrot.lane.b32.xlu0 %v3127_v21, %s2338_s25  ;;  %v4456_v21 = vld [vmem:[#allocation25_spill] sm:$0xff] }
  0xd8   : > { %v653_v52 = vpop.permute.xlu1 %652 }
  0xd9   : > { %v3152_v0 = vsel %vm1369_vm3, %v1344_v28, %v653_v52  ;;  %v651_v9 = vpop.permute.xlu0 %650 }
  0xda   : > { %v3155_v44 = vsel %vm1369_vm3, %v1343_v61, %v651_v9  ;;  %840 = vrot.lane.b32.xlu1 %v2448_v30, %s2339_s26  ;;  %v1348_v30 = vsel %vm1336_vm2, %v2488_v51, %v3019_v12  ;;  %v1350_v12 = vsel %vm1336_vm2, %v2520_v1, %v3027_v62  ;;  %v1352_v62 = vsel %vm1336_vm2, %v2536_v18, %v3035_v27 }
  0xdb   : > { %838 = vrot.lane.b32.xlu0 %v2431_v23, %s2339_s26  ;;  %v4452_v23 = vld [vmem:[#allocation6_spill] sm:$0xff] }
  0xdc   : > { %v657_v38 = vpop.permute.xlu1 %656 }
  0xdd   : > { %v3168_v28 = vsel %vm1369_vm3, %v1346_v11, %v657_v38  ;;  %v655_v52 = vpop.permute.xlu0 %654 }
  0xde   : > { %v3171_v61 = vsel %vm1369_vm3, %v1345_v19, %v655_v52  ;;  %844 = vrot.lane.b32.xlu1 %v2468_v41, %s2339_s26  ;;  %v4453_v19 = vld [vmem:[#allocation7_spill] sm:$0xff]  ;;  %v4454_v52 = vld [vmem:[#allocation8_spill] sm:$0xff] }
  0xdf   : > { %842 = vrot.lane.b32.xlu0 %v4452_v23, %s2339_s26 }
  0xe0   : > { %v661_v6 = vpop.permute.xlu1 %660 }
  0xe1   : > { %v3184_v9 = vsel %vm1369_vm3, %v1348_v30, %v661_v6  ;;  %v659_v11 = vpop.permute.xlu0 %658 }
  0xe2   : > { %v3187_v38 = vsel %vm1369_vm3, %v1347_v8, %v659_v11  ;;  %848 = vrot.lane.b32.xlu1 %v4453_v19, %s2339_s26  ;;  %v4455_v11 = vld [vmem:[#allocation24_spill] sm:$0xff] }
  0xe3   : > { %846 = vrot.lane.b32.xlu0 %v4454_v52, %s2339_s26 }
  0xe4   : > { %v665_v26 = vpop.permute.xlu1 %664 }
  0xe5   : > { %v3200_v30 = vsel %vm1369_vm3, %v1350_v12, %v665_v26  ;;  %v663_v6 = vpop.permute.xlu0 %662 }
  0xe6   : > { %v3203_v8 = vsel %vm1369_vm3, %v1349_v31, %v663_v6  ;;  %872 = vrot.lane.b32.xlu1 %v4455_v11, %s2339_s26 }
  0xe7   : > { %870 = vrot.lane.b32.xlu0 %v4456_v21, %s2339_s26 }
  0xe8   : > { %v669_v1 = vpop.permute.xlu1 %668 }
  0xe9   : > { %v3216_v26 = vsel %vm1369_vm3, %v1352_v62, %v669_v1  ;;  %v667_v12 = vpop.permute.xlu0 %666 }
  0xea   : > { %v3219_v31 = vsel %vm1369_vm3, %v1351_v4, %v667_v12  ;;  %971 = vrot.lane.b32.xlu1 %v2904_v24, %s2340_s27 }
  0xeb   : > { %939 = vrot.lane.b32.xlu0 %v2792_v7, %s2340_s27  ;;  %v1358_v7 = vsel %vm1336_vm2, %v2608_v57, %v3059_v42  ;;  %v1601_v42 = vld [vmem:[%s4215_s1 + $0x8] sm:$0xff] }
  0xec   : > { %v3225_v27 = vpop.permute.xlu1 %672 }
  0xed   : > { %v3227_v6 = vpop.permute.xlu0 %670 }
  0xee   : > { %973 = vrot.lane.b32.xlu1 %v2898_v5, %s2340_s27 }
  0xef   : > { %941 = vrot.lane.b32.xlu0 %v2786_v55, %s2340_s27  ;;  %v1357_v55 = vsel %vm1336_vm2, %v2623_v2, %v3061_v3 }
  0xf0   : > { %v3233_v1 = vpop.permute.xlu1 %676 }
  0xf1   : > { %v3235_v35 = vpop.permute.xlu0 %674 }
  0xf2   : > { %1069 = vrot.lane.b32.xlu1 %v2623_v2, %s2341_s28  ;;  %v1360_v2 = vsel %vm1336_vm2, %v2640_v40, %v3067_v60  ;;  %v1602_v60 = vld [vmem:[%s4215_s1 + $0x10] sm:$0xff] }
  0xf3   : > { %1037 = vrot.lane.b32.xlu0 %v2435_v25, %s2341_s28  ;;  %v1600_v25 = vld [vmem:[%s4215_s1] sm:$0xff] }
  0xf4   : > { %v681_v62 = vpop.permute.xlu1 %680  ;;  %v2265_v3 = vpack.c.bf16 %v1601_v42, %v1600_v25  ;;  %v1362_v42 = vsel %vm1336_vm2, %v2665_v13, %v3075_v59  ;;  %v1364_v59 = vsel %vm1336_vm2, %v2680_v47, %v3083_v45  ;;  %v4458_v45 = vld [vmem:[#allocation26_spill] sm:$0xff] }
  0xf5   : > { %v3248_v4 = vsel %vm1369_vm3, %v1358_v7, %v681_v62  ;;  %v679_v12 = vpop.permute.xlu0 %678 }
  0xf6   : > { %v3251_v5 = vsel %vm1369_vm3, %v1357_v55, %v679_v12  ;;  %1071 = vrot.lane.b32.xlu1 %v2608_v57, %s2341_s28  ;;  %v1359_v57 = vsel %vm1336_vm2, %v2647_v16, %v3069_v17  ;;  %2266 = vmatprep.subr.bf16.mxu0 %v2265_v3  ;;  %v1603_v17 = vld [vmem:[%s4215_s1 + $0x18] sm:$0xff] }
  0xf7   : > { %1039 = vrot.lane.b32.xlu0 %v2426_v20, %s2341_s28  ;;  %2273 = vmatprep.subr.bf16.mxu1 %v2265_v3  ;;  %v4457_v20 = vld [vmem:[#allocation27_spill] sm:$0xff]  ;;  %v2269_v25 = vpack.c.bf16 %v1603_v17, %v1602_v60 }
  0xf8   : > { %v685_v7 = vpop.permute.xlu1 %684  ;;  %2268 = vmatpush3.bf16.msra.mxu0 %v2265_v3  ;;  %2276 = vmatpush3.bf16.msra.mxu1 %v2265_v3 }
  0xf9   : > { %v3270_v62 = vsel %vm1369_vm3, %v1360_v2, %v685_v7  ;;  %v683_v55 = vpop.permute.xlu0 %682  ;;  %v1361_v7 = vsel %vm1336_vm2, %v2675_v50, %v3077_v49  ;;  %2270 = vmatprep.subr.bf16.mxu0 %v2269_v25  ;;  %2274 = vmatprep.subr.bf16.mxu1 %v2269_v25  ;;  %v1604_v49 = vld [vmem:[%s4215_s1 + $0x20] sm:$0xf] }
  0xfa   : > { %v3273_v12 = vsel %vm1369_vm3, %v1359_v57, %v683_v55  ;;  %1171 = vrot.lane.b32.xlu1 %v4457_v20, %s2342_s7 }
  0xfb   : > { %1139 = vrot.lane.b32.xlu0 %v4452_v23, %s2342_s7 }
  0xfc   : > { %v689_v2 = vpop.permute.xlu1 %688  ;;  %2272 = vmatpush3.bf16.msra.mxu0 %v2269_v25  ;;  %2277 = vmatpush3.bf16.msra.mxu1 %v2269_v25  ;;  %v1365_v25 = vsel %vm1336_vm2, %v2719_v34, %v3093_v37 }
  0xfd   : > { %v3292_v57 = vsel %vm1369_vm3, %v1362_v42, %v689_v2  ;;  %v687_v55 = vpop.permute.xlu0 %686  ;;  %2215 = vmatprep.subr.msk.mxu0 %vm1702_vm4, %v1604_v49  ;;  %2275 = vmatprep.subr.msk.mxu1 %vm1702_vm4, %v1604_v49 }
  0xfe   : > { %v3295_v24 = vsel %vm1369_vm3, %v1361_v7, %v687_v55  ;;  %1141 = vrot.lane.b32.xlu1 %v2468_v41, %s2342_s7  ;;  %v1363_v41 = vsel %vm1336_vm2, %v2695_v63, %v3085_v54  ;;  %v1366_v54 = vsel %vm1336_vm2, %v2712_v22, %v3091_v15  ;;  %v4459_v15 = vld [vmem:[#allocation33_spill] sm:$0xff] }
  0xff   : > { %874 = vrot.lane.b32.xlu0 %v4457_v20, %s2339_s26  ;;  %v1368_v55 = vsel %vm1336_vm2, %v4459_v15, %v3099_v56 }
 0x100   : > { %v693_v23 = vpop.permute.xlu1 %692  ;;  %2216 = vmatpush3.msk.msra.mxu0 %vm1702_vm4, %v1604_v49  ;;  %2278 = vmatpush3.msk.msra.mxu1 %vm1702_vm4, %v1604_v49 }
 0x101   : > { %v3311_v3 = vsel %vm1369_vm3, %v1364_v59, %v693_v23  ;;  %v691_v20 = vpop.permute.xlu0 %690  ;;  %v4460_v59 = vld [vmem:[#allocation73_spill] sm:$0xff] }
 0x102   : > { %v3314_v60 = vsel %vm1369_vm3, %v1363_v41, %v691_v20  ;;  %1240 = vrot.lane.b32.xlu1 %v2806_v10, %s2343_s14  ;;  %v1367_v37 = vsel %vm1336_vm2, %v2743_v46, %v4460_v59 }
 0x103   : > { %1173 = vrot.lane.b32.xlu0 %v4458_v45, %s2342_s7 }
 0x104   : > { %v697_v17 = vpop.permute.xlu1 %696 }
 0x105   : > { %v3327_v42 = vsel %vm1369_vm3, %v1366_v54, %v697_v17  ;;  %v695_v2 = vpop.permute.xlu0 %694  ;;  %v4461_v54 = vld [vmem:[#allocation54_spill] sm:$0xff]  ;;  %v4462_v17 = vld [vmem:[#allocation39_spill] sm:$0xff] }
 0x106   : > { %v3330_v7 = vsel %vm1369_vm3, %v1365_v25, %v695_v2  ;;  %876 = vrot.lane.b32.xlu1 %v4458_v45, %s2339_s26 }
 0x107   : > { %1272 = vrot.lane.b32.xlu0 %v2918_v39, %s2343_s14 }
 0x108   : > { %v701_v49 = vpop.permute.xlu1 %700 }
 0x109   : > { %v3343_v23 = vsel %vm1369_vm3, %v1368_v55, %v701_v49  ;;  %v699_v41 = vpop.permute.xlu0 %698 }
 0x10a   : > { %v3346_v20 = vsel %vm1369_vm3, %v1367_v37, %v699_v41  ;;  %975 = vrot.lane.b32.xlu1 %v2918_v39, %s2340_s27 }
 0x10b   : > { %943 = vrot.lane.b32.xlu0 %v2806_v10, %s2340_s27 }
 0x10c   : > { %v3352_v45 = vpop.permute.xlu1 %738 }
 0x10d   : > { %v3354_v56 = vpop.permute.xlu0 %736 }
 0x10e   : > { %1274 = vrot.lane.b32.xlu1 %v4461_v54, %s2343_s14 }
 0x10f   : > { %1242 = vrot.lane.b32.xlu0 %v4462_v17, %s2343_s14 }
 0x110   : > { %v3360_v25 = vpop.permute.xlu1 %742 }
 0x111   : > { %v3362_v2 = vpop.permute.xlu0 %740 }
 0x112   : > { %977 = vrot.lane.b32.xlu1 %v4461_v54, %s2340_s27  ;;  %v4463_v54 = vld [vmem:[#allocation29_spill] sm:$0xff] }
 0x113   : > { %945 = vrot.lane.b32.xlu0 %v4462_v17, %s2340_s27 }
 0x114   : > { %v747_v10 = vpop.permute.xlu1 %746 }
 0x115   : > { %v3370_v39 = vsel %vm1402_vm5, %v3136_v33, %v747_v10  ;;  %v745_v55 = vpop.permute.xlu0 %744  ;;  %v4468_v10 = vld [vmem:[#allocation41_spill] sm:$0xff] }
 0x116   : > { %v3374_v49 = vsel %vm1402_vm5, %v3139_v53, %v745_v55  ;;  %1073 = vrot.lane.b32.xlu1 %v2647_v16, %s2341_s28 }
 0x117   : > { %1041 = vrot.lane.b32.xlu0 %v2456_v36, %s2341_s28 }
 0x118   : > { %v751_v59 = vpop.permute.xlu1 %750 }
 0x119   : > { %v3382_v37 = vsel %vm1402_vm5, %v3152_v0, %v751_v59  ;;  %v749_v41 = vpop.permute.xlu0 %748 }
 0x11a   : > { %v3386_v33 = vsel %vm1402_vm5, %v3155_v44, %v749_v41  ;;  %1075 = vrot.lane.b32.xlu1 %v2640_v40, %s2341_s28 }
 0x11b   : > { %1043 = vrot.lane.b32.xlu0 %v2444_v29, %s2341_s28 }
 0x11c   : > { %v755_v16 = vpop.permute.xlu1 %754 }
 0x11d   : > { %v3394_v36 = vsel %vm1402_vm5, %v3168_v28, %v755_v16  ;;  %v753_v53 = vpop.permute.xlu0 %752 }
 0x11e   : > { %v3398_v0 = vsel %vm1402_vm5, %v3171_v61, %v753_v53  ;;  %1175 = vrot.lane.b32.xlu1 %v4463_v54, %s2342_s7  ;;  %v4473_v53 = vld [vmem:[#allocation55_spill] sm:$0xff] }
 0x11f   : > { %1143 = vrot.lane.b32.xlu0 %v4454_v52, %s2342_s7 }
 0x120   : > { %v759_v40 = vpop.permute.xlu1 %758 }
 0x121   : > { %v3406_v29 = vsel %vm1402_vm5, %v3184_v9, %v759_v40  ;;  %v757_v44 = vpop.permute.xlu0 %756 }
 0x122   : > { %4464 = vst [vmem:[#allocation6_spill] sm:$0xff] %v3406_v29  ;;  %v3410_v28 = vsel %vm1402_vm5, %v3187_v38, %v757_v44  ;;  %1145 = vrot.lane.b32.xlu1 %v4453_v19, %s2342_s7  ;;  %v4469_v38 = vld [vmem:[#allocation28_spill] sm:$0xff] }
 0x123   : > { %4465 = vst [vmem:[#allocation7_spill] sm:$0xff] %v3410_v28  ;;  %878 = vrot.lane.b32.xlu0 %v4463_v54, %s2339_s26  ;;  %v4474_v54 = vld [vmem:[#allocation40_spill] sm:$0xff] }
 0x124   : > { %v763_v61 = vpop.permute.xlu1 %762 }
 0x125   : > { %v3418_v52 = vsel %vm1402_vm5, %v3200_v30, %v763_v61  ;;  %v761_v17 = vpop.permute.xlu0 %760 }
 0x126   : > { %4466 = vst [vmem:[#allocation8_spill] sm:$0xff] %v3418_v52  ;;  %v3422_v9 = vsel %vm1402_vm5, %v3203_v8, %v761_v17  ;;  %1244 = vrot.lane.b32.xlu1 %v4468_v10, %s2343_s14  ;;  %v4472_v8 = vld [vmem:[#allocation56_spill] sm:$0xff]  ;;  %v4490_v52 = vld [vmem:[#allocation62_spill] sm:$0xff] }
 0x127   : > { %4467 = vst [vmem:[#allocation24_spill] sm:$0xff] %v3422_v9  ;;  %1177 = vrot.lane.b32.xlu0 %v4469_v38, %s2342_s7 }
 0x128   : > { %v767_v19 = vpop.permute.xlu1 %766 }
 0x129   : > { %v3430_v55 = vsel %vm1402_vm5, %v3216_v26, %v767_v19  ;;  %v765_v59 = vpop.permute.xlu0 %764 }
 0x12a   : > { %4470 = vst [vmem:[#allocation25_spill] sm:$0xff] %v3430_v55  ;;  %v3434_v30 = vsel %vm1402_vm5, %v3219_v31, %v765_v59  ;;  %880 = vrot.lane.b32.xlu1 %v4469_v38, %s2339_s26 }
 0x12b   : > { %4471 = vst [vmem:[#allocation27_spill] sm:$0xff] %v3434_v30  ;;  %1276 = vrot.lane.b32.xlu0 %v4472_v8, %s2343_s14  ;;  %v4489_v30 = vld [vmem:[#allocation13_spill] sm:$0xff] }
 0x12c   : > { %v3440_v41 = vpop.permute.xlu1 %770 }
 0x12d   : > { %v3442_v16 = vpop.permute.xlu0 %768 }
 0x12e   : > { %979 = vrot.lane.b32.xlu1 %v4472_v8, %s2340_s27 }
 0x12f   : > { %947 = vrot.lane.b32.xlu0 %v4468_v10, %s2340_s27 }
 0x130   : > { %v3448_v26 = vpop.permute.xlu1 %774 }
 0x131   : > { %v3450_v31 = vpop.permute.xlu0 %772 }
 0x132   : > { %1278 = vrot.lane.b32.xlu1 %v4473_v53, %s2343_s14 }
 0x133   : > { %1246 = vrot.lane.b32.xlu0 %v4474_v54, %s2343_s14 }
 0x134   : > { %v779_v40 = vpop.permute.xlu1 %778 }
 0x135   : > { %v3458_v44 = vsel %vm1402_vm5, %v3248_v4, %v779_v40  ;;  %v777_v61 = vpop.permute.xlu0 %776 }
 0x136   : > { %v3462_v17 = vsel %vm1402_vm5, %v3251_v5, %v777_v61  ;;  %981 = vrot.lane.b32.xlu1 %v4473_v53, %s2340_s27  ;;  %v4476_v53 = vld [vmem:[#allocation31_spill] sm:$0xff] }
 0x137   : > { %949 = vrot.lane.b32.xlu0 %v4474_v54, %s2340_s27 }
 0x138   : > { %v783_v10 = vpop.permute.xlu1 %782 }
 0x139   : > { %v3470_v38 = vsel %vm1402_vm5, %v3270_v62, %v783_v10  ;;  %v781_v19 = vpop.permute.xlu0 %780  ;;  %v4482_v10 = vld [vmem:[#allocation30_spill] sm:$0xff] }
 0x13a   : > { %v3474_v4 = vsel %vm1402_vm5, %v3273_v12, %v781_v19  ;;  %1077 = vrot.lane.b32.xlu1 %v2675_v50, %s2341_s28 }
 0x13b   : > { %1045 = vrot.lane.b32.xlu0 %v2480_v48, %s2341_s28 }
 0x13c   : > { %v787_v5 = vpop.permute.xlu1 %786 }
 0x13d   : > { %v3482_v59 = vsel %vm1402_vm5, %v3292_v57, %v787_v5  ;;  %v785_v8 = vpop.permute.xlu0 %784 }
 0x13e   : > { %v3486_v62 = vsel %vm1402_vm5, %v3295_v24, %v785_v8  ;;  %1079 = vrot.lane.b32.xlu1 %v2665_v13, %s2341_s28  ;;  %v4477_v24 = vld [vmem:[#allocation11_spill] sm:$0xff]  ;;  %v4484_v8 = vld [vmem:[#allocation58_spill] sm:$0xff] }
 0x13f   : > { %1047 = vrot.lane.b32.xlu0 %v2472_v43, %s2341_s28 }
 0x140   : > { %v791_v50 = vpop.permute.xlu1 %790 }
 0x141   : > { %v3494_v48 = vsel %vm1402_vm5, %v3311_v3, %v791_v50  ;;  %v789_v12 = vpop.permute.xlu0 %788 }
 0x142   : > { %4475 = vst [vmem:[#allocation26_spill] sm:$0xff] %v3494_v48  ;;  %v3498_v57 = vsel %vm1402_vm5, %v3314_v60, %v789_v12  ;;  %1179 = vrot.lane.b32.xlu1 %v4476_v53, %s2342_s7 }
 0x143   : > { %1147 = vrot.lane.b32.xlu0 %v4477_v24, %s2342_s7 }
 0x144   : > { %v795_v13 = vpop.permute.xlu1 %794 }
 0x145   : > { %v3506_v43 = vsel %vm1402_vm5, %v3327_v42, %v795_v13  ;;  %v793_v54 = vpop.permute.xlu0 %792 }
 0x146   : > { %4478 = vst [vmem:[#allocation33_spill] sm:$0xff] %v3506_v43  ;;  %v3510_v3 = vsel %vm1402_vm5, %v3330_v7, %v793_v54  ;;  %882 = vrot.lane.b32.xlu1 %v4476_v53, %s2339_s26  ;;  %v4483_v7 = vld [vmem:[#allocation9_spill] sm:$0xff] }
 0x147   : > { %4479 = vst [vmem:[#allocation73_spill] sm:$0xff] %v3510_v3  ;;  %850 = vrot.lane.b32.xlu0 %v4477_v24, %s2339_s26  ;;  %v4486_v54 = vld [vmem:[#allocation57_spill] sm:$0xff] }
 0x148   : > { %v799_v60 = vpop.permute.xlu1 %798 }
 0x149   : > { %v3518_v40 = vsel %vm1402_vm5, %v3343_v23, %v799_v60  ;;  %v797_v61 = vpop.permute.xlu0 %796  ;;  %v4485_v23 = vld [vmem:[#allocation43_spill] sm:$0xff]  ;;  %v4487_v60 = vld [vmem:[#allocation42_spill] sm:$0xff] }
 0x14a   : > { %4480 = vst [vmem:[#allocation54_spill] sm:$0xff] %v3518_v40  ;;  %v3522_v42 = vsel %vm1402_vm5, %v3346_v20, %v797_v61  ;;  %1181 = vrot.lane.b32.xlu1 %v4482_v10, %s2342_s7  ;;  %v4488_v40 = vld [vmem:[#allocation34_spill] sm:$0xff] }
 0x14b   : > { %4481 = vst [vmem:[#allocation39_spill] sm:$0xff] %v3522_v42  ;;  %1149 = vrot.lane.b32.xlu0 %v4483_v7, %s2342_s7 }
 0x14c   : > { %v3528_v19 = vpop.permute.xlu1 %840 }
 0x14d   : > { %v839_v5 = vpop.permute.xlu0 %838 }
 0x14e   : > { %1280 = vrot.lane.b32.xlu1 %v4484_v8, %s2343_s14 }
 0x14f   : > { %1248 = vrot.lane.b32.xlu0 %v4485_v23, %s2343_s14 }
 0x150   : > { %v3534_v50 = vpop.permute.xlu1 %844 }
 0x151   : > { %v3536_v12 = vpop.permute.xlu0 %842 }
 0x152   : > { %884 = vrot.lane.b32.xlu1 %v4482_v10, %s2339_s26 }
 0x153   : > { %852 = vrot.lane.b32.xlu0 %v4483_v7, %s2339_s26 }
 0x154   : > { %v3542_v20 = vpop.permute.xlu1 %848 }
 0x155   : > { %v3544_v53 = vpop.permute.xlu0 %846 }
 0x156   : > { %983 = vrot.lane.b32.xlu1 %v4484_v8, %s2340_s27 }
 0x157   : > { %951 = vrot.lane.b32.xlu0 %v4485_v23, %s2340_s27 }
 0x158   : > { %v3550_v24 = vpop.permute.xlu1 %872 }
 0x159   : > { %v871_v13 = vpop.permute.xlu0 %870 }
 0x15a   : > { %1282 = vrot.lane.b32.xlu1 %v4486_v54, %s2343_s14 }
 0x15b   : > { %1250 = vrot.lane.b32.xlu0 %v4487_v60, %s2343_s14 }
 0x15c   : > { %v972_v61 = vpop.permute.xlu1 %971 }
 0x15d   : > { %v940_v10 = vpop.permute.xlu0 %939 }
 0x15e   : > { %985 = vrot.lane.b32.xlu1 %v4486_v54, %s2340_s27 }
 0x15f   : > { %953 = vrot.lane.b32.xlu0 %v4487_v60, %s2340_s27 }
 0x160   : > { %v3560_v7 = vpop.permute.xlu1 %973 }
 0x161   : > { %v3562_v8 = vpop.permute.xlu0 %941 }
 0x162   : > { %1081 = vrot.lane.b32.xlu1 %v2695_v63, %s2341_s28 }
 0x163   : > { %1049 = vrot.lane.b32.xlu0 %v2503_v58, %s2341_s28  ;;  %v4491_v58 = vld [vmem:[#allocation4_spill] sm:$0xff] }
 0x164   : > { %v1070_v23 = vpop.permute.xlu1 %1069  ;;  %v1337_v43 = vsel %vm1336_vm2, %v4491_v58, %v4490_v52 }
 0x165   : > { %v1038_v55 = vpop.permute.xlu0 %1037 }
 0x166   : > { %1083 = vrot.lane.b32.xlu1 %v2680_v47, %s2341_s28  ;;  %v4492_v47 = vld [vmem:[#allocation75_spill] sm:$0xff] }
 0x167   : > { %1051 = vrot.lane.b32.xlu0 %v2488_v51, %s2341_s28  ;;  %v1370_v51 = vsel %vm1369_vm3, %v1337_v43, %v4492_v47  ;;  %v4494_v43 = vld [vmem:[#allocation70_spill] sm:$0xff]  ;;  %v4495_v47 = vld [vmem:[#allocation17_spill] sm:$0xff] }
 0x168   : > { %v1072_v54 = vpop.permute.xlu1 %1071  ;;  %v1403_v9 = vsel %vm1402_vm5, %v1370_v51, %v3354_v56  ;;  %v4496_v56 = vld [vmem:[#allocation12_spill] sm:$0xff] }
 0x169   : > { %v1040_v60 = vpop.permute.xlu0 %1039  ;;  %v1436_v29 = vsel %vm1435_vm6, %v1403_v9, %v839_v5 }
 0x16a   : > { %1183 = vrot.lane.b32.xlu1 %v4488_v40, %s2342_s7  ;;  %v1469_v58 = vsel %vm1468_vm7, %v1436_v29, %v940_v10 }
 0x16b   : > { %1151 = vrot.lane.b32.xlu0 %v4489_v30, %s2342_s7  ;;  %v1502_v48 = vsel %vm1501_vm8, %v1469_v58, %v1038_v55  ;;  %v4497_v55 = vld [vmem:[#allocation61_spill] sm:$0xff] }
 0x16c   : > { %v1172_v63 = vpop.permute.xlu1 %1171 }
 0x16d   : > { %v1140_v42 = vpop.permute.xlu0 %1139 }
 0x16e   : > { %886 = vrot.lane.b32.xlu1 %v4488_v40, %s2339_s26  ;;  %v4493_v40 = vld [vmem:[#allocation32_spill] sm:$0xff]  ;;  %v1535_v5 = vsel %vm1534_vm9, %v1502_v48, %v1140_v42 }
 0x16f   : > { %854 = vrot.lane.b32.xlu0 %v4489_v30, %s2339_s26  ;;  %v1353_v30 = vsel %vm1336_vm2, %v4495_v47, %v4494_v43 }
 0x170   : > { %v1142_v3 = vpop.permute.xlu1 %1141  ;;  %v1386_v9 = vsel %vm1369_vm3, %v1353_v30, %v3227_v6  ;;  %v4498_v6 = vld [vmem:[#allocation45_spill] sm:$0xff] }
 0x171   : > { %v3588_v52 = vpop.permute.xlu0 %874  ;;  %v1419_v10 = vsel %vm1402_vm5, %v1386_v9, %v3442_v16  ;;  %v4499_v9 = vld [vmem:[#allocation69_spill] sm:$0xff] }
 0x172   : > { %1185 = vrot.lane.b32.xlu1 %v4493_v40, %s2342_s7  ;;  %v1452_v43 = vsel %vm1435_vm6, %v1419_v10, %v871_v13 }
 0x173   : > { %1153 = vrot.lane.b32.xlu0 %v4496_v56, %s2342_s7  ;;  %v1485_v58 = vsel %vm1468_vm7, %v1452_v43, %v972_v61  ;;  %v4501_v61 = vld [vmem:[#allocation66_spill] sm:$0xff] }
 0x174   : > { %v1241_v29 = vpop.permute.xlu1 %1240  ;;  %v1518_v48 = vsel %vm1501_vm8, %v1485_v58, %v1070_v23 }
 0x175   : > { %v1174_v51 = vpop.permute.xlu0 %1173  ;;  %v1568_v28 = vsel %vm1567_vm10, %v1535_v5, %v1241_v29  ;;  %v1551_v16 = vsel %vm1534_vm9, %v1518_v48, %v1172_v63  ;;  %v4500_v5 = vld [vmem:[#allocation15_spill] sm:$0xff]  ;;  %v4502_v29 = vld [vmem:[#allocation5_spill] sm:$0xff]  ;;  %v4503_v63 = vld [vmem:[#allocation74_spill] sm:$0xff] }
 0x176   : > { %1284 = vrot.lane.b32.xlu1 %v4497_v55, %s2343_s14  ;;  %2217 = vmatprep.mubr.msk.f32.mxu0 %vm1605_vm11, %v1568_v28  ;;  %v1354_v13 = vsel %vm1336_vm2, %v4500_v5, %v4499_v9  ;;  %v1338_v10 = vsel %vm1336_vm2, %v4502_v29, %v4501_v61  ;;  %v4504_v61 = vld [vmem:[#allocation59_spill] sm:$0xff] }
 0x177   : > { %1252 = vrot.lane.b32.xlu0 %v4498_v6, %s2343_s14  ;;  %v1387_v23 = vsel %vm1369_vm3, %v1354_v13, %v3225_v27  ;;  %v1371_v43 = vsel %vm1369_vm3, %v1338_v10, %v4503_v63  ;;  %v4506_v10 = vld [vmem:[#allocation10_spill] sm:$0xff] }
 0x178   : > { %v3613_v42 = vpop.permute.xlu1 %876  ;;  %v1404_v48 = vsel %vm1402_vm5, %v1371_v43, %v3352_v45  ;;  %v4507_v43 = vld [vmem:[#allocation60_spill] sm:$0xff] }
 0x179   : > { %v1273_v30 = vpop.permute.xlu0 %1272  ;;  %v1437_v27 = vsel %vm1435_vm6, %v1404_v48, %v3528_v19 }
 0x17a   : > { %888 = vrot.lane.b32.xlu1 %v4493_v40, %s2339_s26  ;;  %v1584_v28 = vsel %vm1567_vm10, %v1551_v16, %v1273_v30  ;;  %v1420_v40 = vsel %vm1402_vm5, %v1387_v23, %v3440_v41  ;;  %v1470_v41 = vsel %vm1468_vm7, %v1437_v27, %v3562_v8  ;;  %v4505_v8 = vld [vmem:[#allocation44_spill] sm:$0xff] }
 0x17b   : > { %856 = vrot.lane.b32.xlu0 %v4496_v56, %s2339_s26  ;;  %2241 = vmatprep.mubr.msk.f32.mxu1 %vm1605_vm11, %v1584_v28  ;;  %v1453_v16 = vsel %vm1435_vm6, %v1420_v40, %v3550_v24  ;;  %v1503_v45 = vsel %vm1501_vm8, %v1470_v41, %v1040_v60  ;;  %v4508_v40 = vld [vmem:[#allocation2_spill] sm:$0xff]  ;;  %v4511_v27 = vld [vmem:[#allocation16_spill] sm:$0xff] }
 0x17c   : > { %v976_v58 = vpop.permute.xlu1 %975  ;;  %v1486_v56 = vsel %vm1468_vm7, %v1453_v16, %v3560_v7  ;;  %v1536_v19 = vsel %vm1534_vm9, %v1503_v45, %v1142_v3  ;;  %v1339_v48 = vsel %vm1336_vm2, %v4508_v40, %v4507_v43  ;;  %v4509_v16 = vld [vmem:[#allocation36_spill] sm:$0xff] }
 0x17d   : > { %v944_v30 = vpop.permute.xlu0 %943  ;;  %v1519_v9 = vsel %vm1501_vm8, %v1486_v56, %v1072_v54 }
 0x17e   : > { %987 = vrot.lane.b32.xlu1 %v4497_v55, %s2340_s27  ;;  %v1552_v24 = vsel %vm1534_vm9, %v1519_v9, %v1174_v51 }
 0x17f   : > { %955 = vrot.lane.b32.xlu0 %v4498_v6, %s2340_s27 }
 0x180   : > { %v1275_v13 = vpop.permute.xlu1 %1274 }
 0x181   : > { %v1585_v7 = vsel %vm1567_vm10, %v1552_v24, %v1275_v13  ;;  %v1243_v28 = vpop.permute.xlu0 %1242  ;;  %v4512_v24 = vld [vmem:[#allocation72_spill] sm:$0xff]  ;;  %v4513_v13 = vld [vmem:[#allocation21_spill] sm:$0xff] }
 0x182   : > { %v1569_v55 = vsel %vm1567_vm10, %v1536_v19, %v1243_v28  ;;  %1286 = vrot.lane.b32.xlu1 %v4504_v61, %s2343_s14  ;;  %2242 = vmatmul.mubr.msk.f32.vlgmr.msra.gmra.mrb[0].mxu1 %vm1605_vm11, %v1585_v7  ;;  %v1355_v19 = vsel %vm1336_vm2, %v4513_v13, %v4512_v24 }
 0x183   : > { %1254 = vrot.lane.b32.xlu0 %v4505_v8, %s2343_s14  ;;  %2218 = vmatmul.mubr.msk.f32.vlgmr.msra.gmra.mrb[0].mxu0 %vm1605_vm11, %v1569_v55 }
 0x184   : > { %v978_v54 = vpop.permute.xlu1 %977 }
 0x185   : > { %v946_v60 = vpop.permute.xlu0 %945 }
 0x186   : > { %989 = vrot.lane.b32.xlu1 %v4504_v61, %s2340_s27 }
 0x187   : > { %957 = vrot.lane.b32.xlu0 %v4505_v8, %s2340_s27 }
 0x188   : > { %v1074_v3 = vpop.permute.xlu1 %1073 }
 0x189   : > { %v1042_v51 = vpop.permute.xlu0 %1041 }
 0x18a   : > { %1085 = vrot.lane.b32.xlu1 %v2719_v34, %s2341_s28  ;;  %v4510_v34 = vld [vmem:[#allocation77_spill] sm:$0xff] }
 0x18b   : > { %1053 = vrot.lane.b32.xlu0 %v2531_v14, %s2341_s28  ;;  %v1372_v14 = vsel %vm1369_vm3, %v1339_v48, %v4510_v34  ;;  %v4516_v48 = vld [vmem:[#allocation71_spill] sm:$0xff] }
 0x18c   : > { %v1076_v6 = vpop.permute.xlu1 %1075 }
 0x18d   : > { %v1044_v29 = vpop.permute.xlu0 %1043 }
 0x18e   : > { %1087 = vrot.lane.b32.xlu1 %v2712_v22, %s2341_s28  ;;  %v1405_v22 = vsel %vm1402_vm5, %v1372_v14, %v3362_v2  ;;  %v1388_v2 = vsel %vm1369_vm3, %v1355_v19, %v3235_v35  ;;  %v4515_v35 = vld [vmem:[#allocation14_spill] sm:$0xff]  ;;  %v4518_v14 = vld [vmem:[#allocation65_spill] sm:$0xff] }
 0x18f   : > { %1055 = vrot.lane.b32.xlu0 %v4506_v10, %s2341_s28  ;;  %v1438_v41 = vsel %vm1435_vm6, %v1405_v22, %v3536_v12 }
 0x190   : > { %v1176_v23 = vpop.permute.xlu1 %1175  ;;  %v1471_v45 = vsel %vm1468_vm7, %v1438_v41, %v944_v30  ;;  %v1421_v30 = vsel %vm1402_vm5, %v1388_v2, %v3450_v31  ;;  %v4521_v41 = vld [vmem:[#allocation47_spill] sm:$0xff] }
 0x191   : > { %v1144_v63 = vpop.permute.xlu0 %1143  ;;  %v1504_v7 = vsel %vm1501_vm8, %v1471_v45, %v1042_v51  ;;  %v1454_v8 = vsel %vm1435_vm6, %v1421_v30, %v3588_v52  ;;  %v4514_v51 = vld [vmem:[#allocation35_spill] sm:$0xff] }
 0x192   : > { %1187 = vrot.lane.b32.xlu1 %v4509_v16, %s2342_s7  ;;  %v1537_v12 = vsel %vm1534_vm9, %v1504_v7, %v1144_v63  ;;  %v1487_v10 = vsel %vm1468_vm7, %v1454_v8, %v976_v58  ;;  %v4519_v58 = vld [vmem:[#allocation64_spill] sm:$0xff] }
 0x193   : > { %1155 = vrot.lane.b32.xlu0 %v4511_v27, %s2342_s7  ;;  %v1520_v63 = vsel %vm1501_vm8, %v1487_v10, %v1074_v3 }
 0x194   : > { %v1146_v56 = vpop.permute.xlu1 %1145  ;;  %v1553_v31 = vsel %vm1534_vm9, %v1520_v63, %v1176_v23  ;;  %v4522_v23 = vld [vmem:[#allocation76_spill] sm:$0xff] }
 0x195   : > { %v3685_v9 = vpop.permute.xlu0 %878 }
 0x196   : > { %890 = vrot.lane.b32.xlu1 %v4509_v16, %s2339_s26  ;;  %v4517_v16 = vld [vmem:[#allocation19_spill] sm:$0xff] }
 0x197   : > { %858 = vrot.lane.b32.xlu0 %v4511_v27, %s2339_s26  ;;  %v1356_v52 = vsel %vm1336_vm2, %v4517_v16, %v4516_v48  ;;  %v4520_v27 = vld [vmem:[#allocation3_spill] sm:$0xff] }
 0x198   : > { %v1245_v28 = vpop.permute.xlu1 %1244  ;;  %v1340_v22 = vsel %vm1336_vm2, %v4520_v27, %v4519_v58  ;;  %v1389_v3 = vsel %vm1369_vm3, %v1356_v52, %v3233_v1 }
 0x199   : > { %v1570_v55 = vsel %vm1567_vm10, %v1537_v12, %v1245_v28  ;;  %v1178_v61 = vpop.permute.xlu0 %1177  ;;  %v1373_v45 = vsel %vm1369_vm3, %v1340_v22, %v4522_v23  ;;  %v1422_v24 = vsel %vm1402_vm5, %v1389_v3, %v3448_v26 }
 0x19a   : > { %1189 = vrot.lane.b32.xlu1 %v4514_v51, %s2342_s7  ;;  %2220 = vmatprep.mubr.msk.f32.mxu0 %vm1605_vm11, %v1570_v55  ;;  %v1406_v7 = vsel %vm1402_vm5, %v1373_v45, %v3360_v25  ;;  %v1455_v2 = vsel %vm1435_vm6, %v1422_v24, %v3613_v42  ;;  %v4527_v45 = vld [vmem:[#allocation37_spill] sm:$0xff]  ;;  %v4528_v24 = vld [vmem:[#allocation18_spill] sm:$0xff] }
 0x19b   : > { %1157 = vrot.lane.b32.xlu0 %v4515_v35, %s2342_s7  ;;  %v1439_v1 = vsel %vm1435_vm6, %v1406_v7, %v3534_v50  ;;  %v1488_v28 = vsel %vm1468_vm7, %v1455_v2, %v978_v54  ;;  %v4529_v2 = vld [vmem:[#allocation68_spill] sm:$0xff] }
 0x19c   : > { %v3711_v43 = vpop.permute.xlu1 %880  ;;  %v1472_v30 = vsel %vm1468_vm7, %v1439_v1, %v946_v60  ;;  %v1521_v26 = vsel %vm1501_vm8, %v1488_v28, %v1076_v6 }
 0x19d   : > { %v1277_v40 = vpop.permute.xlu0 %1276  ;;  %v1505_v25 = vsel %vm1501_vm8, %v1472_v30, %v1044_v29  ;;  %v1554_v42 = vsel %vm1534_vm9, %v1521_v26, %v1178_v61  ;;  %v4523_v29 = vld [vmem:[#allocation63_spill] sm:$0xff]  ;;  %v1457_v28 = vsel %vm1435_vm6, %v3458_v44, %v3711_v43  ;;  %v1441_v26 = vsel %vm1435_vm6, %v3370_v39, %v3542_v20 }
 0x19e   : > { %v1586_v34 = vsel %vm1567_vm10, %v1553_v31, %v1277_v40  ;;  %1288 = vrot.lane.b32.xlu1 %v4518_v14, %s2343_s14  ;;  %v1538_v8 = vsel %vm1534_vm9, %v1505_v25, %v1146_v56  ;;  %v4524_v56 = vld [vmem:[#allocation46_spill] sm:$0xff] }
 0x19f   : > { %1256 = vrot.lane.b32.xlu0 %v4521_v41, %s2343_s14  ;;  %2244 = vmatprep.mubr.msk.f32.mxu1 %vm1605_vm11, %v1586_v34  ;;  %v4525_v34 = vld [vmem:[#allocation38_spill] sm:$0xff] }
 0x1a0   : > { %v980_v19 = vpop.permute.xlu1 %979 }
 0x1a1   : > { %v948_v12 = vpop.permute.xlu0 %947 }
 0x1a2   : > { %892 = vrot.lane.b32.xlu1 %v4514_v51, %s2339_s26 }
 0x1a3   : > { %860 = vrot.lane.b32.xlu0 %v4515_v35, %s2339_s26 }
 0x1a4   : > { %v1279_v55 = vpop.permute.xlu1 %1278 }
 0x1a5   : > { %v1587_v50 = vsel %vm1567_vm10, %v1554_v42, %v1279_v55  ;;  %v1247_v54 = vpop.permute.xlu0 %1246 }
 0x1a6   : > { %v1571_v10 = vsel %vm1567_vm10, %v1538_v8, %v1247_v54  ;;  %991 = vrot.lane.b32.xlu1 %v4518_v14, %s2340_s27  ;;  %2245 = vmatmul.mubr.msk.f32.gmra.mrb[2].mxu1 %vm1605_vm11, %v1587_v50 }
 0x1a7   : > { %959 = vrot.lane.b32.xlu0 %v4521_v41, %s2340_s27  ;;  %2221 = vmatmul.mubr.msk.f32.gmra.mrb[2].mxu0 %vm1605_vm11, %v1571_v10 }
 0x1a8   : > { %v982_v60 = vpop.permute.xlu1 %981 }
 0x1a9   : > { %v950_v6 = vpop.permute.xlu0 %949  ;;  %v1490_v25 = vsel %vm1468_vm7, %v1457_v28, %v982_v60  ;;  %v4536_v28 = vld [vmem:[#allocation22_spill] sm:$0xff] }
 0x1aa   : > { %1290 = vrot.lane.b32.xlu1 %v4523_v29, %s2343_s14  ;;  %v1474_v42 = vsel %vm1468_vm7, %v1441_v26, %v950_v6  ;;  %v4531_v6 = vld [vmem:[#allocation67_spill] sm:$0xff] }
 0x1ab   : > { %1258 = vrot.lane.b32.xlu0 %v4524_v56, %s2343_s14 }
 0x1ac   : > { %v1078_v61 = vpop.permute.xlu1 %1077 }
 0x1ad   : > { %v1046_v51 = vpop.permute.xlu0 %1045 }
 0x1ae   : > { %993 = vrot.lane.b32.xlu1 %v4523_v29, %s2340_s27  ;;  %v4532_v29 = vld [vmem:[#allocation48_spill] sm:$0xff] }
 0x1af   : > { %961 = vrot.lane.b32.xlu0 %v4524_v56, %s2340_s27 }
 0x1b0   : > { %v1080_v35 = vpop.permute.xlu1 %1079 }
 0x1b1   : > { %v1048_v63 = vpop.permute.xlu0 %1047  ;;  %v1523_v55 = vsel %vm1501_vm8, %v1490_v25, %v1080_v35 }
 0x1b2   : > { %1089 = vrot.lane.b32.xlu1 %v2743_v46, %s2341_s28  ;;  %v4526_v46 = vld [vmem:[#allocation20_spill] sm:$0xff]  ;;  %v1507_v8 = vsel %vm1501_vm8, %v1474_v42, %v1048_v63  ;;  %v4533_v63 = vld [vmem:[#allocation79_spill] sm:$0xff] }
 0x1b3   : > { %1057 = vrot.lane.b32.xlu0 %v2551_v32, %s2341_s28  ;;  %v1456_v32 = vsel %vm1435_vm6, %v3462_v17, %v3685_v9  ;;  %v4537_v42 = vld [vmem:[#allocation51_spill] sm:$0xff] }
 0x1b4   : > { %v1180_v31 = vpop.permute.xlu1 %1179 }
 0x1b5   : > { %v1148_v40 = vpop.permute.xlu0 %1147 }
 0x1b6   : > { %1091 = vrot.lane.b32.xlu1 %v4459_v15, %s2341_s28  ;;  %v1489_v15 = vsel %vm1468_vm7, %v1456_v32, %v980_v19 }
 0x1b7   : > { %1059 = vrot.lane.b32.xlu0 %v2536_v18, %s2341_s28  ;;  %v1440_v18 = vsel %vm1435_vm6, %v3374_v49, %v3544_v53  ;;  %v1522_v22 = vsel %vm1501_vm8, %v1489_v15, %v1078_v61 }
 0x1b8   : > { %v3772_v48 = vpop.permute.xlu1 %882  ;;  %v1473_v27 = vsel %vm1468_vm7, %v1440_v18, %v948_v12  ;;  %v1555_v17 = vsel %vm1534_vm9, %v1522_v22, %v1180_v31  ;;  %v4530_v12 = vld [vmem:[#allocation49_spill] sm:$0xff]  ;;  %v833_v31 = vrot.slane %v4533_v63, 1  ;;  %v4535_v22 = vld [vmem:[#allocation23_spill] sm:$0xff] }
 0x1b9   : > { %v3774_v52 = vpop.permute.xlu0 %850  ;;  %v1506_v3 = vsel %vm1501_vm8, %v1473_v27, %v1046_v51 }
 0x1ba   : > { %1191 = vrot.lane.b32.xlu1 %v4525_v34, %s2342_s7  ;;  %v1539_v41 = vsel %vm1534_vm9, %v1506_v3, %v1148_v40  ;;  %v4534_v40 = vld [vmem:[#allocation78_spill] sm:$0xff] }
 0x1bb   : > { %1159 = vrot.lane.b32.xlu0 %v4526_v46, %s2342_s7 }
 0x1bc   : > { %v1182_v14 = vpop.permute.xlu1 %1181 }
 0x1bd   : > { %v1150_v58 = vpop.permute.xlu0 %1149  ;;  %v1556_v44 = vsel %vm1534_vm9, %v1523_v55, %v1182_v14 }
 0x1be   : > { %894 = vrot.lane.b32.xlu1 %v4525_v34, %s2339_s26  ;;  %v1540_v50 = vsel %vm1534_vm9, %v1507_v8, %v1150_v58  ;;  %v834_v34 = vrot.slane %v4534_v40, 1 }
 0x1bf   : > { %862 = vrot.lane.b32.xlu0 %v4526_v46, %s2339_s26  ;;  %v274_v46 = vld [vmem:[%s2393_s22 + $0x190] sm:$0x3] }
 0x1c0   : > { %v1281_v9 = vpop.permute.xlu1 %1280  ;;  %v328_v58 = vmax.f32 %v274_v46, 0.0  ;;  %v835_v18 = vsel %vm380_vm0, %v833_v31, %v834_v34  ;;  %v276_v31 = vld [vmem:[%s2393_s22 + $0x1a0] sm:$0xff] }
 0x1c1   : > { %v1588_v49 = vsel %vm1567_vm10, %v1555_v17, %v1281_v9  ;;  %v1249_v53 = vpop.permute.xlu0 %1248  ;;  %v1458_v17 = vsel %vm1435_vm6, %v3474_v4, %v3772_v48  ;;  %v934_v4 = vrot.slane %v4533_v63, 2  ;;  %v935_v48 = vrot.slane %v4534_v40, 2 }
 0x1c2   : > { %v1572_v23 = vsel %vm1567_vm10, %v1539_v41, %v1249_v53  ;;  %1193 = vrot.lane.b32.xlu1 %v4527_v45, %s2342_s7  ;;  %2247 = vmatprep.mubr.msk.f32.mxu1 %vm1605_vm11, %v1588_v49  ;;  %v330_v46 = vmax.f32 %v276_v31, 0.0 }
 0x1c3   : > { %1161 = vrot.lane.b32.xlu0 %v4528_v24, %s2342_s7  ;;  %2223 = vmatprep.mubr.msk.f32.mxu0 %vm1605_vm11, %v1572_v23 }
 0x1c4   : > { %v3804_v19 = vpop.permute.xlu1 %884 }
 0x1c5   : > { %v3806_v7 = vpop.permute.xlu0 %852  ;;  %v1459_v8 = vsel %vm1435_vm6, %v3470_v38, %v3804_v19 }
 0x1c6   : > { %1292 = vrot.lane.b32.xlu1 %v4529_v2, %s2343_s14 }
 0x1c7   : > { %1260 = vrot.lane.b32.xlu0 %v4530_v12, %s2343_s14 }
 0x1c8   : > { %v984_v1 = vpop.permute.xlu1 %983 }
 0x1c9   : > { %v952_v30 = vpop.permute.xlu0 %951  ;;  %v1491_v41 = vsel %vm1468_vm7, %v1458_v17, %v984_v1 }
 0x1ca   : > { %896 = vrot.lane.b32.xlu1 %v4527_v45, %s2339_s26 }
 0x1cb   : > { %864 = vrot.lane.b32.xlu0 %v4528_v24, %s2339_s26 }
 0x1cc   : > { %v1283_v43 = vpop.permute.xlu1 %1282 }
 0x1cd   : > { %v1589_v39 = vsel %vm1567_vm10, %v1556_v44, %v1283_v43  ;;  %v1251_v20 = vpop.permute.xlu0 %1250  ;;  %v1443_v43 = vsel %vm1435_vm6, %v3382_v37, %v3806_v7 }
 0x1ce   : > { %v1573_v54 = vsel %vm1567_vm10, %v1540_v50, %v1251_v20  ;;  %995 = vrot.lane.b32.xlu1 %v4529_v2, %s2340_s27  ;;  %2248 = vmatmul.mubr.msk.f32.gmra.mrb[4].mxu1 %vm1605_vm11, %v1589_v39 }
 0x1cf   : > { %963 = vrot.lane.b32.xlu0 %v4530_v12, %s2340_s27  ;;  %2224 = vmatmul.mubr.msk.f32.gmra.mrb[4].mxu0 %vm1605_vm11, %v1573_v54  ;;  %v937_v54 = vrot.slane %v328_v58, 2 }
 0x1d0   : > { %v986_v10 = vpop.permute.xlu1 %985 }
 0x1d1   : > { %v954_v60 = vpop.permute.xlu0 %953  ;;  %v1492_v50 = vsel %vm1468_vm7, %v1459_v8, %v986_v10  ;;  %v4540_v8 = vld [vmem:[#allocation52_spill] sm:$0xff] }
 0x1d2   : > { %1294 = vrot.lane.b32.xlu1 %v4531_v6, %s2343_s14  ;;  %v1476_v39 = vsel %vm1468_vm7, %v1443_v43, %v954_v60 }
 0x1d3   : > { %1262 = vrot.lane.b32.xlu0 %v4532_v29, %s2343_s14 }
 0x1d4   : > { %v1082_v56 = vpop.permute.xlu1 %1081 }
 0x1d5   : > { %v1050_v61 = vpop.permute.xlu0 %1049  ;;  %v1524_v23 = vsel %vm1501_vm8, %v1491_v41, %v1082_v56 }
 0x1d6   : > { %997 = vrot.lane.b32.xlu1 %v4531_v6, %s2340_s27 }
 0x1d7   : > { %965 = vrot.lane.b32.xlu0 %v4532_v29, %s2340_s27  ;;  %v938_v29 = vsel %vm557_vm1, %v935_v48, %v937_v54 }
 0x1d8   : > { %v1084_v51 = vpop.permute.xlu1 %1083 }
 0x1d9   : > { %v1052_v35 = vpop.permute.xlu0 %1051  ;;  %v1525_v20 = vsel %vm1501_vm8, %v1492_v50, %v1084_v51  ;;  %v4538_v51 = vld [vmem:[#allocation50_spill] sm:$0xff] }
 0x1da   : > { %1093 = vrot.lane.b32.xlu1 %v4533_v63, %s2341_s28  ;;  %v1509_v6 = vsel %vm1501_vm8, %v1476_v39, %v1052_v35  ;;  %v275_v35 = vld [vmem:[%s2393_s22 + $0x198] sm:$0xff] }
 0x1db   : > { %1061 = vrot.lane.b32.xlu0 %v4495_v47, %s2341_s28  ;;  %v836_v47 = vrot.slane %v328_v58, 1 }
 0x1dc   : > { %v1184_v14 = vpop.permute.xlu1 %1183 }
 0x1dd   : > { %v1152_v32 = vpop.permute.xlu0 %1151  ;;  %v837_v49 = vsel %vm380_vm0, %v834_v34, %v836_v47  ;;  %v329_v34 = vmax.f32 %v275_v35, 0.0  ;;  %v1135_v47 = vrot.slane %v330_v46, 1 }
 0x1de   : > { %1095 = vrot.lane.b32.xlu1 %v4534_v40, %s2341_s28 }
 0x1df   : > { %1063 = vrot.lane.b32.xlu0 %v4500_v5, %s2341_s28  ;;  %v1442_v5 = vsel %vm1435_vm6, %v3386_v33, %v3774_v52  ;;  %v1557_v33 = vsel %vm1534_vm9, %v1524_v23, %v1184_v14  ;;  %v1236_v23 = vrot.slane %v330_v46, 2 }
 0x1e0   : > { %v3856_v15 = vpop.permute.xlu1 %886  ;;  %v1475_v53 = vsel %vm1468_vm7, %v1442_v5, %v952_v30  ;;  %v936_v30 = vsel %vm557_vm1, %v934_v4, %v935_v48 }
 0x1e1   : > { %v3858_v27 = vpop.permute.xlu0 %854  ;;  %v1508_v45 = vsel %vm1501_vm8, %v1475_v53, %v1050_v61  ;;  %v1235_v53 = vrot.slane %v329_v34, 2 }
 0x1e2   : > { %1195 = vrot.lane.b32.xlu1 %v835_v18, %s2342_s7  ;;  %v1541_v24 = vsel %vm1534_vm9, %v1508_v45, %v1152_v32  ;;  %v277_v32 = vld [vmem:[%s2393_s22 + $0x1a8] sm:$0x3]  ;;  %v1444_v45 = vsel %vm1435_vm6, %v3398_v0, %v3858_v27 }
 0x1e3   : > { %1163 = vrot.lane.b32.xlu0 %v4535_v22, %s2342_s7 }
 0x1e4   : > { %v1186_v3 = vpop.permute.xlu1 %1185 }
 0x1e5   : > { %v1154_v9 = vpop.permute.xlu0 %1153  ;;  %v1558_v38 = vsel %vm1534_vm9, %v1525_v20, %v1186_v3 }
 0x1e6   : > { %898 = vrot.lane.b32.xlu1 %v835_v18, %s2339_s26  ;;  %v1542_v37 = vsel %vm1534_vm9, %v1509_v6, %v1154_v9  ;;  %v1134_v18 = vrot.slane %v329_v34, 1 }
 0x1e7   : > { %866 = vrot.lane.b32.xlu0 %v4535_v22, %s2339_s26  ;;  %v331_v22 = vmax.f32 %v277_v32, 0.0 }
 0x1e8   : > { %v1285_v52 = vpop.permute.xlu1 %1284  ;;  %v1136_v9 = vsel %vm380_vm0, %v1134_v18, %v1135_v47 }
 0x1e9   : > { %v1590_v2 = vsel %vm1567_vm10, %v1557_v33, %v1285_v52  ;;  %v1253_v12 = vpop.permute.xlu0 %1252  ;;  %v1137_v5 = vrot.slane %v331_v22, 1 }
 0x1ea   : > { %v1574_v1 = vsel %vm1567_vm10, %v1541_v24, %v1253_v12  ;;  %1197 = vrot.lane.b32.xlu1 %v837_v49, %s2342_s7  ;;  %2250 = vmatprep.mubr.msk.f32.mxu1 %vm1605_vm11, %v1590_v2  ;;  %v1237_v24 = vsel %vm557_vm1, %v1235_v53, %v1236_v23  ;;  %v1238_v2 = vrot.slane %v331_v22, 2 }
 0x1eb   : > { %1165 = vrot.lane.b32.xlu0 %v4536_v28, %s2342_s7  ;;  %2226 = vmatprep.mubr.msk.f32.mxu0 %vm1605_vm11, %v1574_v1 }
 0x1ec   : > { %v3889_v26 = vpop.permute.xlu1 %888 }
 0x1ed   : > { %v3891_v25 = vpop.permute.xlu0 %856  ;;  %v1461_v43 = vsel %vm1435_vm6, %v3482_v59, %v3889_v26 }
 0x1ee   : > { %1296 = vrot.lane.b32.xlu1 %v936_v30, %s2343_s14  ;;  %v1445_v39 = vsel %vm1435_vm6, %v3394_v36, %v3891_v25 }
 0x1ef   : > { %1264 = vrot.lane.b32.xlu0 %v4537_v42, %s2343_s14 }
 0x1f0   : > { %v988_v55 = vpop.permute.xlu1 %987 }
 0x1f1   : > { %v956_v44 = vpop.permute.xlu0 %955 }
 0x1f2   : > { %900 = vrot.lane.b32.xlu1 %v837_v49, %s2339_s26 }
 0x1f3   : > { %868 = vrot.lane.b32.xlu0 %v4536_v28, %s2339_s26  ;;  %s4042_s26 = scalar_lea.vmem %s4218_s4, %s2169_s21 }
 0x1f4   : > { %v1287_v19 = vpop.permute.xlu1 %1286 }
 0x1f5   : > { %v1591_v7 = vsel %vm1567_vm10, %v1558_v38, %v1287_v19  ;;  %v1255_v10 = vpop.permute.xlu0 %1254 }
 0x1f6   : > { %v1575_v60 = vsel %vm1567_vm10, %v1542_v37, %v1255_v10  ;;  %999 = vrot.lane.b32.xlu1 %v936_v30, %s2340_s27  ;;  %2251 = vmatmul.mubr.msk.f32.gmra.mrb[6].mxu1 %vm1605_vm11, %v1591_v7  ;;  %v1239_v30 = vsel %vm557_vm1, %v1236_v23, %v1238_v2  ;;  %v4542_v23 = vld [vmem:[#allocation26_spill] sm:$0xff] }
 0x1f7   : > { %967 = vrot.lane.b32.xlu0 %v4537_v42, %s2340_s27  ;;  %2227 = vmatmul.mubr.msk.f32.gmra.mrb[6].mxu0 %vm1605_vm11, %v1575_v60 }
 0x1f8   : > { %v3919_v56 = vpop.permute.xlu1 %989 }
 0x1f9   : > { %v3921_v61 = vpop.permute.xlu0 %957  ;;  %v1494_v20 = vsel %vm1468_vm7, %v1461_v43, %v3919_v56 }
 0x1fa   : > { %1298 = vrot.lane.b32.xlu1 %v938_v29, %s2343_s14  ;;  %v1478_v54 = vsel %vm1468_vm7, %v1445_v39, %v3921_v61 }
 0x1fb   : > { %1266 = vrot.lane.b32.xlu0 %v4538_v51, %s2343_s14 }
 0x1fc   : > { %v1086_v63 = vpop.permute.xlu1 %1085 }
 0x1fd   : > { %v1054_v40 = vpop.permute.xlu0 %1053 }
 0x1fe   : > { %1001 = vrot.lane.b32.xlu1 %v938_v29, %s2340_s27 }
 0x1ff   : > { %969 = vrot.lane.b32.xlu0 %v4538_v51, %s2340_s27 }
 0x200   : > { %v1088_v14 = vpop.permute.xlu1 %1087 }
 0x201   : > { %v1056_v58 = vpop.permute.xlu0 %1055  ;;  %v1527_v6 = vsel %vm1501_vm8, %v1494_v20, %v1088_v14  ;;  %v4541_v14 = vld [vmem:[#allocation7_spill] sm:$0xff] }
 0x202   : > { %1097 = vrot.lane.b32.xlu1 %v329_v34, %s2341_s28  ;;  %v1511_v38 = vsel %vm1501_vm8, %v1478_v54, %v1056_v58 }
 0x203   : > { %1065 = vrot.lane.b32.xlu0 %v4513_v13, %s2341_s28  ;;  %v1138_v13 = vsel %vm380_vm0, %v1135_v47, %v1137_v5 }
 0x204   : > { %v1188_v3 = vpop.permute.xlu1 %1187 }
 0x205   : > { %v1156_v17 = vpop.permute.xlu0 %1155 }
 0x206   : > { %1099 = vrot.lane.b32.xlu1 %v330_v46, %s2341_s28 }
 0x207   : > { %1067 = vrot.lane.b32.xlu0 %v4517_v16, %s2341_s28  ;;  %v1460_v16 = vsel %vm1435_vm6, %v3486_v62, %v3856_v15 }
 0x208   : > { %v891_v41 = vpop.permute.xlu1 %890  ;;  %v1493_v33 = vsel %vm1468_vm7, %v1460_v16, %v988_v55 }
 0x209   : > { %v3939_v49 = vpop.permute.xlu0 %858  ;;  %v1526_v52 = vsel %vm1501_vm8, %v1493_v33, %v1086_v63  ;;  %v1462_v34 = vsel %vm1435_vm6, %v3498_v57, %v891_v41 }
 0x20a   : > { %1199 = vrot.lane.b32.xlu1 %v1136_v9, %s2342_s7  ;;  %v1559_v15 = vsel %vm1534_vm9, %v1526_v52, %v1188_v3  ;;  %v1446_v32 = vsel %vm1435_vm6, %v4541_v14, %v3939_v49 }
 0x20b   : > { %1167 = vrot.lane.b32.xlu0 %v4456_v21, %s2342_s7  ;;  %v1477_v21 = vsel %vm1468_vm7, %v1444_v45, %v956_v44 }
 0x20c   : > { %v1190_v4 = vpop.permute.xlu1 %1189  ;;  %v1510_v62 = vsel %vm1501_vm8, %v1477_v21, %v1054_v40 }
 0x20d   : > { %v1158_v48 = vpop.permute.xlu0 %1157  ;;  %v1543_v0 = vsel %vm1534_vm9, %v1510_v62, %v1156_v17  ;;  %v1560_v19 = vsel %vm1534_vm9, %v1527_v6, %v1190_v4 }
 0x20e   : > { %1201 = vrot.lane.b32.xlu1 %v1138_v13, %s2342_s7  ;;  %v1544_v59 = vsel %vm1534_vm9, %v1511_v38, %v1158_v48  ;;  %v4543_v48 = vld [vmem:[#allocation6_spill] sm:$0xff] }
 0x20f   : > { %1169 = vrot.lane.b32.xlu0 %v4455_v11, %s2342_s7  ;;  %v4539_v11 = vld [vmem:[#allocation53_spill] sm:$0xff] }
 0x210   : > { %v1289_v12 = vpop.permute.xlu1 %1288 }
 0x211   : > { %v1592_v27 = vsel %vm1567_vm10, %v1559_v15, %v1289_v12  ;;  %v1257_v1 = vpop.permute.xlu0 %1256 }
 0x212   : > { %v1576_v28 = vsel %vm1567_vm10, %v1543_v0, %v1257_v1  ;;  %1300 = vrot.lane.b32.xlu1 %v1237_v24, %s2343_s14  ;;  %2253 = vmatprep.mubr.msk.f32.mxu1 %vm1605_vm11, %v1592_v27 }
 0x213   : > { %1268 = vrot.lane.b32.xlu0 %v4539_v11, %s2343_s14  ;;  %2229 = vmatprep.mubr.msk.f32.mxu0 %vm1605_vm11, %v1576_v28 }
 0x214   : > { %v893_v42 = vpop.permute.xlu1 %892 }
 0x215   : > { %v861_v55 = vpop.permute.xlu0 %860  ;;  %v1463_v4 = vsel %vm1435_vm6, %v4542_v23, %v893_v42 }
 0x216   : > { %1302 = vrot.lane.b32.xlu1 %v1239_v30, %s2343_s14  ;;  %v1447_v45 = vsel %vm1435_vm6, %v4543_v48, %v861_v55 }
 0x217   : > { %1270 = vrot.lane.b32.xlu0 %v4540_v8, %s2343_s14  ;;  %v4030_v8 = vld [vmem:[%s4216_s2] ss:$0 sm:$0xff] }
 0x218   : > { %v992_v44 = vpop.permute.xlu1 %991 }
 0x219   : > { %v960_v50 = vpop.permute.xlu0 %959  ;;  %v1495_v58 = vsel %vm1468_vm7, %v1462_v34, %v992_v44 }
 0x21a   : > { %v1479_v18 = vsel %vm1468_vm7, %v1446_v32, %v960_v50  ;;  %v4036_v50 = vld [vmem:[%s4217_s3] ss:$0 sm:$0xff] }
 0x21c   : > { %v1291_v37 = vpop.permute.xlu1 %1290 }
 0x21d   : > { %v1593_v26 = vsel %vm1567_vm10, %v1560_v19, %v1291_v37  ;;  %v1259_v7 = vpop.permute.xlu0 %1258 }
 0x21e   : > { %v1577_v36 = vsel %vm1567_vm10, %v1544_v59, %v1259_v7  ;;  %2254 = vmatmul.mubr.msk.f32.gmra.mrb[8].mxu1 %vm1605_vm11, %v1593_v26 }
 0x21f   : > { %2230 = vmatmul.mubr.msk.f32.gmra.mrb[8].mxu0 %vm1605_vm11, %v1577_v36 }
 0x220   : > { %v994_v25 = vpop.permute.xlu1 %993 }
 0x221   : > { %v962_v10 = vpop.permute.xlu0 %961  ;;  %v1496_v33 = vsel %vm1468_vm7, %v1463_v4, %v994_v25 }
 0x222   : > { %v1480_v21 = vsel %vm1468_vm7, %v1447_v45, %v962_v10 }
 0x224   : > { %v1090_v60 = vpop.permute.xlu1 %1089 }
 0x225   : > { %v1058_v29 = vpop.permute.xlu0 %1057  ;;  %v1528_v47 = vsel %vm1501_vm8, %v1495_v58, %v1090_v60 }
 0x226   : > { %v1512_v22 = vsel %vm1501_vm8, %v1479_v18, %v1058_v29 }
 0x228   : > { %v1092_v56 = vpop.permute.xlu1 %1091 }
 0x229   : > { %v1060_v61 = vpop.permute.xlu0 %1059  ;;  %v1529_v52 = vsel %vm1501_vm8, %v1496_v33, %v1092_v56  ;;  %v4544_v56 = vld [vmem:[#allocation73_spill] sm:$0xff] }
 0x22a   : > { %v1513_v24 = vsel %vm1501_vm8, %v1480_v21, %v1060_v61 }
 0x22c   : > { %v1192_v51 = vpop.permute.xlu1 %1191 }
 0x22d   : > { %v1160_v35 = vpop.permute.xlu0 %1159  ;;  %v1561_v3 = vsel %vm1534_vm9, %v1528_v47, %v1192_v51 }
 0x22e   : > { %v1545_v9 = vsel %vm1534_vm9, %v1512_v22, %v1160_v35  ;;  %v4545_v35 = vld [vmem:[#allocation24_spill] sm:$0xff] }
 0x230   : > { %v3990_v63 = vpop.permute.xlu1 %894 }
 0x231   : > { %v3992_v31 = vpop.permute.xlu0 %862  ;;  %v1464_v61 = vsel %vm1435_vm6, %v4544_v56, %v3990_v63 }
 0x234   : > { %v1194_v40 = vpop.permute.xlu1 %1193 }
 0x235   : > { %v1162_v46 = vpop.permute.xlu0 %1161  ;;  %v1562_v2 = vsel %vm1534_vm9, %v1529_v52, %v1194_v40  ;;  %v1448_v40 = vsel %vm1435_vm6, %v4545_v35, %v3992_v31 }
 0x236   : > { %v1546_v15 = vsel %vm1534_vm9, %v1513_v24, %v1162_v46 }
 0x238   : > { %v1293_v17 = vpop.permute.xlu1 %1292 }
 0x239   : > { %v1594_v57 = vsel %vm1567_vm10, %v1561_v3, %v1293_v17  ;;  %v1261_v5 = vpop.permute.xlu0 %1260 }
 0x23a   : > { %v1578_v41 = vsel %vm1567_vm10, %v1545_v9, %v1261_v5  ;;  %2256 = vmatprep.mubr.msk.f32.mxu1 %vm1605_vm11, %v1594_v57  ;;  %v4546_v57 = vld [vmem:[#allocation33_spill] sm:$0xff] }
 0x23b   : > { %2232 = vmatprep.mubr.msk.f32.mxu0 %vm1605_vm11, %v1578_v41 }
 0x23c   : > { %v4009_v49 = vpop.permute.xlu1 %896 }
 0x23d   : > { %v4011_v13 = vpop.permute.xlu0 %864  ;;  %v1465_v5 = vsel %vm1435_vm6, %v4546_v57, %v4009_v49 }
 0x240   : > { %v996_v53 = vpop.permute.xlu1 %995 }
 0x241   : > { %v964_v16 = vpop.permute.xlu0 %963  ;;  %v1497_v34 = vsel %vm1468_vm7, %v1464_v61, %v996_v53  ;;  %v4547_v53 = vld [vmem:[#allocation8_spill] sm:$0xff] }
 0x242   : > { %v1481_v46 = vsel %vm1468_vm7, %v1448_v40, %v964_v16  ;;  %v1449_v23 = vsel %vm1435_vm6, %v4547_v53, %v4011_v13 }
 0x244   : > { %v1295_v62 = vpop.permute.xlu1 %1294 }
 0x245   : > { %v1595_v12 = vsel %vm1567_vm10, %v1562_v2, %v1295_v62  ;;  %v1263_v0 = vpop.permute.xlu0 %1262 }
 0x246   : > { %v1579_v27 = vsel %vm1567_vm10, %v1546_v15, %v1263_v0  ;;  %2257 = vmatmul.mubr.msk.f32.gmra.mrb[10].mxu1 %vm1605_vm11, %v1595_v12 }
 0x247   : > { %2233 = vmatmul.mubr.msk.f32.gmra.mrb[10].mxu0 %vm1605_vm11, %v1579_v27 }
 0x248   : > { %v998_v1 = vpop.permute.xlu1 %997 }
 0x249   : > { %v966_v28 = vpop.permute.xlu0 %965  ;;  %v1498_v4 = vsel %vm1468_vm7, %v1465_v5, %v998_v1 }
 0x24a   : > { %v1482_v16 = vsel %vm1468_vm7, %v1449_v23, %v966_v28 }
 0x24c   : > { %v1094_v11 = vpop.permute.xlu1 %1093 }
 0x24d   : > { %v1062_v30 = vpop.permute.xlu0 %1061  ;;  %v1530_v14 = vsel %vm1501_vm8, %v1497_v34, %v1094_v11  ;;  %v4550_v34 = vld [vmem:[#allocation54_spill] sm:$0xff] }
 0x24e   : > { %v1514_v32 = vsel %vm1501_vm8, %v1481_v46, %v1062_v30 }
 0x250   : > { %v1096_v42 = vpop.permute.xlu1 %1095 }
 0x251   : > { %v1064_v55 = vpop.permute.xlu0 %1063  ;;  %v1531_v48 = vsel %vm1501_vm8, %v1498_v4, %v1096_v42 }
 0x252   : > { %v1515_v45 = vsel %vm1501_vm8, %v1482_v16, %v1064_v55 }
 0x254   : > { %v1196_v44 = vpop.permute.xlu1 %1195 }
 0x255   : > { %v1164_v43 = vpop.permute.xlu0 %1163  ;;  %v2243_v39 = vpop.f32.mrb[0].mxu1  ;;  %v1563_v58 = vsel %vm1534_vm9, %v1530_v14, %v1196_v44 }
 0x256   : > { %v2219_v20 = vpop.f32.mrb[0].mxu0  ;;  %v1955_v54 = vmul.f32 %v2243_v39, %v4030_v8  ;;  %v1852_v6 = vpop.f32.mrb[1].mxu1  ;;  %v1547_v47 = vsel %vm1534_vm9, %v1514_v32, %v1164_v43 }
 0x257   : > { %v1939_v38 = vmul.f32 %v2219_v20, %v4030_v8  ;;  %v1772_v19 = vpop.f32.mrb[1].mxu0  ;;  %v1954_v37 = vmul.f32 %v4030_v8, %v1852_v6 }
 0x258   : > { %v1994_v59 = vadd.f32 %v4036_v50, %v1955_v54  ;;  %v1938_v26 = vmul.f32 %v4030_v8, %v1772_v19  ;;  %v4048_v7 = vpop.permute.xlu1 %898 }
 0x259   : > { %v1978_v36 = vadd.f32 %v4036_v50, %v1939_v38  ;;  %v1993_v25 = vadd.f32 %v4036_v50, %v1954_v37  ;;  %v4052_v10 = vpop.permute.xlu0 %866 }
 0x25a   : > { %2026 = vst [vmem:[%s4042_s26 + $0x88] sm:$0xff] %v1994_v59  ;;  %v1977_v60 = vadd.f32 %v4036_v50, %v1938_v26  ;;  %v4548_v59 = vld [vmem:[#allocation39_spill] sm:$0xff] }
 0x25b   : > { %2010 = vst [vmem:[%s4042_s26 + $0x8] sm:$0xff] %v1978_v36  ;;  %2025 = vst [vmem:[%s4042_s26 + $0x80] sm:$0xff] %v1993_v25  ;;  %v1466_v26 = vsel %vm1435_vm6, %v4548_v59, %v4048_v7  ;;  %v4549_v25 = vld [vmem:[#allocation27_spill] sm:$0xff] }
 0x25c   : > { %2009 = vst [vmem:[%s4042_s26] sm:$0xff] %v1977_v60  ;;  %v1198_v29 = vpop.permute.xlu1 %1197  ;;  %v1450_v60 = vsel %vm1435_vm6, %v4549_v25, %v4052_v10  ;;  %v4551_v10 = vld [vmem:[#allocation25_spill] sm:$0xff] }
 0x25d   : > { %v1166_v51 = vpop.permute.xlu0 %1165  ;;  %v1564_v33 = vsel %vm1534_vm9, %v1531_v48, %v1198_v29 }
 0x25e   : > { %v1548_v52 = vsel %vm1534_vm9, %v1515_v45, %v1166_v51 }
 0x260   : > { %v1297_v18 = vpop.permute.xlu1 %1296 }
 0x261   : > { %v1596_v63 = vsel %vm1567_vm10, %v1563_v58, %v1297_v18  ;;  %v1265_v22 = vpop.permute.xlu0 %1264 }
 0x262   : > { %v1580_v3 = vsel %vm1567_vm10, %v1547_v47, %v1265_v22  ;;  %2259 = vmatprep.mubr.msk.f32.mxu1 %vm1605_vm11, %v1596_v63 }
 0x263   : > { %2235 = vmatprep.mubr.msk.f32.mxu0 %vm1605_vm11, %v1580_v3 }
 0x264   : > { %v901_v31 = vpop.permute.xlu1 %900 }
 0x265   : > { %v869_v17 = vpop.permute.xlu0 %868  ;;  %v1467_v46 = vsel %vm1435_vm6, %v4550_v34, %v901_v31 }
 0x266   : > { %v1451_v58 = vsel %vm1435_vm6, %v4551_v10, %v869_v17 }
 0x268   : > { %v1000_v9 = vpop.permute.xlu1 %999 }
 0x269   : > { %v968_v41 = vpop.permute.xlu0 %967  ;;  %v1499_v29 = vsel %vm1468_vm7, %v1466_v26, %v1000_v9 }
 0x26a   : > { %v1483_v56 = vsel %vm1468_vm7, %v1450_v60, %v968_v41 }
 0x26c   : > { %v1299_v21 = vpop.permute.xlu1 %1298 }
 0x26d   : > { %v1597_v49 = vsel %vm1567_vm10, %v1564_v33, %v1299_v21  ;;  %v1267_v24 = vpop.permute.xlu0 %1266 }
 0x26e   : > { %v1581_v2 = vsel %vm1567_vm10, %v1548_v52, %v1267_v24  ;;  %2260 = vmatmul.mubr.msk.f32.gmra.mrb[12].mxu1 %vm1605_vm11, %v1597_v49 }
 0x26f   : > { %2236 = vmatmul.mubr.msk.f32.gmra.mrb[12].mxu0 %vm1605_vm11, %v1581_v2 }
 0x270   : > { %v1002_v13 = vpop.permute.xlu1 %1001 }
 0x271   : > { %v970_v62 = vpop.permute.xlu0 %969  ;;  %v1500_v18 = vsel %vm1468_vm7, %v1467_v46, %v1002_v13 }
 0x272   : > { %v1484_v63 = vsel %vm1468_vm7, %v1451_v58, %v970_v62 }
 0x274   : > { %v1098_v15 = vpop.permute.xlu1 %1097 }
 0x275   : > { %v1066_v12 = vpop.permute.xlu0 %1065  ;;  %v1532_v61 = vsel %vm1501_vm8, %v1499_v29, %v1098_v15 }
 0x276   : > { %v1516_v51 = vsel %vm1501_vm8, %v1483_v56, %v1066_v12 }
 0x278   : > { %v1100_v0 = vpop.permute.xlu1 %1099 }
 0x279   : > { %v1068_v27 = vpop.permute.xlu0 %1067  ;;  %v2246_v1 = vpop.f32.mrb[2].mxu1  ;;  %v1533_v22 = vsel %vm1501_vm8, %v1500_v18, %v1100_v0 }
 0x27a   : > { %v2222_v28 = vpop.f32.mrb[2].mxu0  ;;  %v1957_v11 = vmul.f32 %v2246_v1, %v4030_v8  ;;  %v1862_v30 = vpop.f32.mrb[3].mxu1  ;;  %v1517_v3 = vsel %vm1501_vm8, %v1484_v63, %v1068_v27 }
 0x27b   : > { %v1941_v42 = vmul.f32 %v2222_v28, %v4030_v8  ;;  %v1782_v55 = vpop.f32.mrb[3].mxu0  ;;  %v1956_v44 = vmul.f32 %v4030_v8, %v1862_v30 }
 0x27c   : > { %v1996_v43 = vadd.f32 %v4036_v50, %v1957_v11  ;;  %v1940_v39 = vmul.f32 %v4030_v8, %v1782_v55  ;;  %v1200_v20 = vpop.permute.xlu1 %1199 }
 0x27d   : > { %v1980_v54 = vadd.f32 %v4036_v50, %v1941_v42  ;;  %v1995_v6 = vadd.f32 %v4036_v50, %v1956_v44  ;;  %v1168_v38 = vpop.permute.xlu0 %1167  ;;  %v1565_v35 = vsel %vm1534_vm9, %v1532_v61, %v1200_v20 }
 0x27e   : > { %2028 = vst [vmem:[%s4042_s26 + $0x98] sm:$0xff] %v1996_v43  ;;  %v1979_v19 = vadd.f32 %v4036_v50, %v1940_v39  ;;  %v1549_v7 = vsel %vm1534_vm9, %v1516_v51, %v1168_v38 }
 0x27f   : > { %2012 = vst [vmem:[%s4042_s26 + $0x18] sm:$0xff] %v1980_v54  ;;  %2027 = vst [vmem:[%s4042_s26 + $0x90] sm:$0xff] %v1995_v6 }
 0x280   : > { %2011 = vst [vmem:[%s4042_s26 + $0x10] sm:$0xff] %v1979_v19  ;;  %v1202_v37 = vpop.permute.xlu1 %1201 }
 0x281   : > { %v1170_v36 = vpop.permute.xlu0 %1169  ;;  %v1566_v31 = vsel %vm1534_vm9, %v1533_v22, %v1202_v37 }
 0x282   : > { %v1550_v57 = vsel %vm1534_vm9, %v1517_v3, %v1170_v36 }
 0x284   : > { %v1301_v40 = vpop.permute.xlu1 %1300 }
 0x285   : > { %v1598_v14 = vsel %vm1567_vm10, %v1565_v35, %v1301_v40  ;;  %v1269_v32 = vpop.permute.xlu0 %1268 }
 0x286   : > { %v1582_v47 = vsel %vm1567_vm10, %v1549_v7, %v1269_v32  ;;  %2262 = vmatprep.mubr.msk.f32.mxu1 %vm1605_vm11, %v1598_v14 }
 0x287   : > { %2238 = vmatprep.mubr.msk.f32.mxu0 %vm1605_vm11, %v1582_v47 }
 0x288   : > { %v1303_v9 = vpop.permute.xlu1 %1302 }
 0x289   : > { %v1599_v17 = vsel %vm1567_vm10, %v1566_v31, %v1303_v9  ;;  %v1271_v5 = vpop.permute.xlu0 %1270 }
 0x28a   : > { %v1583_v41 = vsel %vm1567_vm10, %v1550_v57, %v1271_v5  ;;  %2263 = vmatmul.mubr.msk.f32.gmra.mrb[14].mxu1 %vm1605_vm11, %v1599_v17 }
 0x28b   : > { %2239 = vmatmul.mubr.msk.f32.gmra.mrb[14].mxu0 %vm1605_vm11, %v1583_v41 }
 0x2a1   : > { %v2249_v53 = vpop.f32.mrb[4].mxu1 }
 0x2a2   : > { %v2225_v23 = vpop.f32.mrb[4].mxu0  ;;  %v1959_v4 = vmul.f32 %v2249_v53, %v4030_v8  ;;  %v1872_v16 = vpop.f32.mrb[5].mxu1 }
 0x2a3   : > { %v1943_v48 = vmul.f32 %v2225_v23, %v4030_v8  ;;  %v1792_v45 = vpop.f32.mrb[5].mxu0  ;;  %v1958_v33 = vmul.f32 %v4030_v8, %v1872_v16 }
 0x2a4   : > { %v1998_v21 = vadd.f32 %v4036_v50, %v1959_v4  ;;  %v1942_v52 = vmul.f32 %v4030_v8, %v1792_v45 }
 0x2a5   : > { %v1982_v49 = vadd.f32 %v4036_v50, %v1943_v48  ;;  %v1997_v24 = vadd.f32 %v4036_v50, %v1958_v33 }
 0x2a6   : > { %2030 = vst [vmem:[%s4042_s26 + $0xa8] sm:$0xff] %v1998_v21  ;;  %v1981_v2 = vadd.f32 %v4036_v50, %v1942_v52 }
 0x2a7   : > { %2014 = vst [vmem:[%s4042_s26 + $0x28] sm:$0xff] %v1982_v49  ;;  %2029 = vst [vmem:[%s4042_s26 + $0xa0] sm:$0xff] %v1997_v24 }
 0x2a8   : > { %2013 = vst [vmem:[%s4042_s26 + $0x20] sm:$0xff] %v1981_v2 }
 0x2c9   : > { %v2252_v13 = vpop.f32.mrb[6].mxu1 }
 0x2ca   : > { %v2228_v62 = vpop.f32.mrb[6].mxu0  ;;  %v1961_v15 = vmul.f32 %v2252_v13, %v4030_v8  ;;  %v1882_v12 = vpop.f32.mrb[7].mxu1 }
 0x2cb   : > { %v1945_v0 = vmul.f32 %v2228_v62, %v4030_v8  ;;  %v1802_v27 = vpop.f32.mrb[7].mxu0  ;;  %v1960_v1 = vmul.f32 %v4030_v8, %v1882_v12 }
 0x2cc   : > { %v2000_v28 = vadd.f32 %v4036_v50, %v1961_v15  ;;  %v1944_v11 = vmul.f32 %v4030_v8, %v1802_v27 }
 0x2cd   : > { %v1984_v30 = vadd.f32 %v4036_v50, %v1945_v0  ;;  %v1999_v42 = vadd.f32 %v4036_v50, %v1960_v1 }
 0x2ce   : > { %2032 = vst [vmem:[%s4042_s26 + $0xb8] sm:$0xff] %v2000_v28  ;;  %v1983_v55 = vadd.f32 %v4036_v50, %v1944_v11 }
 0x2cf   : > { %2016 = vst [vmem:[%s4042_s26 + $0x38] sm:$0xff] %v1984_v30  ;;  %2031 = vst [vmem:[%s4042_s26 + $0xb0] sm:$0xff] %v1999_v42 }
 0x2d0   : > { %2015 = vst [vmem:[%s4042_s26 + $0x30] sm:$0xff] %v1983_v55 }
 0x2f1   : > { %v2255_v44 = vpop.f32.mrb[8].mxu1 }
 0x2f2   : > { %v2231_v43 = vpop.f32.mrb[8].mxu0  ;;  %v1963_v39 = vmul.f32 %v2255_v44, %v4030_v8  ;;  %v1892_v20 = vpop.f32.mrb[9].mxu1 }
 0x2f3   : > { %v1947_v54 = vmul.f32 %v2231_v43, %v4030_v8  ;;  %v1812_v6 = vpop.f32.mrb[9].mxu0  ;;  %v1962_v38 = vmul.f32 %v4030_v8, %v1892_v20 }
 0x2f4   : > { %v2002_v19 = vadd.f32 %v4036_v50, %v1963_v39  ;;  %v1946_v37 = vmul.f32 %v4030_v8, %v1812_v6 }
 0x2f5   : > { %v1986_v59 = vadd.f32 %v4036_v50, %v1947_v54  ;;  %v2001_v26 = vadd.f32 %v4036_v50, %v1962_v38 }
 0x2f6   : > { %2034 = vst [vmem:[%s4042_s26 + $0xc8] sm:$0xff] %v2002_v19  ;;  %v1985_v36 = vadd.f32 %v4036_v50, %v1946_v37 }
 0x2f7   : > { %2018 = vst [vmem:[%s4042_s26 + $0x48] sm:$0xff] %v1986_v59  ;;  %2033 = vst [vmem:[%s4042_s26 + $0xc0] sm:$0xff] %v2001_v26 }
 0x2f8   : > { %2017 = vst [vmem:[%s4042_s26 + $0x40] sm:$0xff] %v1985_v36 }
 0x319   : > { %v2258_v25 = vpop.f32.mrb[10].mxu1 }
 0x31a   : > { %v2234_v60 = vpop.f32.mrb[10].mxu0  ;;  %v1965_v29 = vmul.f32 %v2258_v25, %v4030_v8  ;;  %v1902_v56 = vpop.f32.mrb[11].mxu1 }
 0x31b   : > { %v1949_v61 = vmul.f32 %v2234_v60, %v4030_v8  ;;  %v1822_v51 = vpop.f32.mrb[11].mxu0  ;;  %v1964_v35 = vmul.f32 %v4030_v8, %v1902_v56 }
 0x31c   : > { %v2004_v40 = vadd.f32 %v4036_v50, %v1965_v29  ;;  %v1948_v34 = vmul.f32 %v4030_v8, %v1822_v51 }
 0x31d   : > { %v1988_v46 = vadd.f32 %v4036_v50, %v1949_v61  ;;  %v2003_v7 = vadd.f32 %v4036_v50, %v1964_v35 }
 0x31e   : > { %2036 = vst [vmem:[%s4042_s26 + $0xd8] sm:$0xff] %v2004_v40  ;;  %v1987_v14 = vadd.f32 %v4036_v50, %v1948_v34 }
 0x31f   : > { %2020 = vst [vmem:[%s4042_s26 + $0x58] sm:$0xff] %v1988_v46  ;;  %2035 = vst [vmem:[%s4042_s26 + $0xd0] sm:$0xff] %v2003_v7 }
 0x320   : > { %2019 = vst [vmem:[%s4042_s26 + $0x50] sm:$0xff] %v1987_v14 }
 0x341   : > { %v2261_v32 = vpop.f32.mrb[12].mxu1 }
 0x342   : > { %v2237_v10 = vpop.f32.mrb[12].mxu0  ;;  %v1967_v58 = vmul.f32 %v2261_v32, %v4030_v8  ;;  %v1912_v18 = vpop.f32.mrb[13].mxu1 }
 0x343   : > { %v1951_v47 = vmul.f32 %v2237_v10, %v4030_v8  ;;  %v1832_v63 = vpop.f32.mrb[13].mxu0  ;;  %v1966_v22 = vmul.f32 %v4030_v8, %v1912_v18 }
 0x344   : > { %v2006_v3 = vadd.f32 %v4036_v50, %v1967_v58  ;;  %v1950_v31 = vmul.f32 %v4030_v8, %v1832_v63 }
 0x345   : > { %v1990_v9 = vadd.f32 %v4036_v50, %v1951_v47  ;;  %v2005_v57 = vadd.f32 %v4036_v50, %v1966_v22 }
 0x346   : > { %2038 = vst [vmem:[%s4042_s26 + $0xe8] sm:$0xff] %v2006_v3  ;;  %v1989_v17 = vadd.f32 %v4036_v50, %v1950_v31 }
 0x347   : > { %2022 = vst [vmem:[%s4042_s26 + $0x68] sm:$0xff] %v1990_v9  ;;  %2037 = vst [vmem:[%s4042_s26 + $0xe0] sm:$0xff] %v2005_v57 }
 0x348   : > { %2021 = vst [vmem:[%s4042_s26 + $0x60] sm:$0xff] %v1989_v17 }
 0x35d   : > { %v2264_v5 = vpop.f32.mrb[14].mxu1 }
 0x35e   : > { %v2240_v41 = vpop.f32.mrb[14].mxu0  ;;  %v1969_v53 = vmul.f32 %v2264_v5, %v4030_v8  ;;  %v1922_v23 = vpop.f32.mrb[15].mxu1 }
 0x35f   : > { %v1953_v4 = vmul.f32 %v2240_v41, %v4030_v8  ;;  %v1842_v16 = vpop.f32.mrb[15].mxu0  ;;  %v1968_v48 = vmul.f32 %v4030_v8, %v1922_v23 }
 0x360   : > { %v2008_v45 = vadd.f32 %v4036_v50, %v1969_v53  ;;  %v1952_v33 = vmul.f32 %v4030_v8, %v1842_v16 }
 0x361   : > { %v1992_v21 = vadd.f32 %v4036_v50, %v1953_v4  ;;  %v2007_v52 = vadd.f32 %v4036_v50, %v1968_v48 }
 0x362   : > { %2040 = vst [vmem:[%s4042_s26 + $0xf8] sm:$0xff] %v2008_v45  ;;  %v1991_v49 = vadd.f32 %v4036_v50, %v1952_v33 }
 0x363   : > { %2024 = vst [vmem:[%s4042_s26 + $0x78] sm:$0xff] %v1992_v21  ;;  %2039 = vst [vmem:[%s4042_s26 + $0xf0] sm:$0xff] %v2007_v52 }
 0x364   : > { %2023 = vst [vmem:[%s4042_s26 + $0x70] sm:$0xff] %v1991_v49 }
 0x365 PF: > { %s14_s17 = sadd.s32 1, %s2334_s17   ;;  %s4552_s15 = smov %s2330_s16 }
 0x366   : > { %p11_p5 = scmp.ge.s32.totalorder %s14_s17, 4   ;;  %s4553_s16 = smov %s4555_s18 }
 0x368   :  { %13 = sbr.rel (!%p11_p5) target bundleno = 2 (0x2), region = 67 }

</bundles_post_ra>
